<compile_context>
chip_gen: v5e
topology: v5e:2x2
jax: 0.10.0
libtpu: 0.0.40
codegen_flags: <defaults>
</compile_context>

<pallas_src>
from functools import partial

import jax
import jax.numpy as jnp
from jax.experimental import pallas as pl
from jax.experimental.pallas import tpu as pltpu


# ----------------------------- Pallas kernels ------------------------------

def _conv_bn_lrelu_kernel(p_ref, w_ref, g_ref, b_ref, o_ref, *, slope, eps, inv_m):
    """Fused Conv(k=4, s=2, p=1 as matmul) + BatchNorm2d(train) + LeakyReLU.

    p_ref : (K, M)    f32  im2col patches^T (M = N*Ho*Wo on the lane axis)
    w_ref : (Cout, K) f32  conv weight, reshaped + transposed
    g_ref : (Cout, 1) f32  BN gamma
    b_ref : (Cout, 1) f32  BN beta
    o_ref : (Cout, M) f32  layer output (lane-dense, channel-first)
    """
    y = jnp.dot(w_ref[...], p_ref[...], preferred_element_type=jnp.float32)
    # Training-mode BN over M (the conv bias cancels exactly here, so it is
    # never added in the first place).
    mean = jnp.sum(y, axis=1, keepdims=True) * inv_m
    d = y - mean
    var = jnp.sum(d * d, axis=1, keepdims=True) * inv_m          # biased variance
    scale = g_ref[...] * jax.lax.rsqrt(var + eps)
    z = d * scale + b_ref[...]
    o_ref[...] = jnp.maximum(z, slope * z)                        # LeakyReLU(0.2)


def _fc_kernel(x_ref, w_ref, b_ref, o_ref):
    # x: (N, fin), w: (fin, 2*latent) = [fc1 | fc2], b: (1, 2*latent)
    o_ref[...] = (
        jnp.dot(x_ref[...], w_ref[...], preferred_element_type=jnp.float32)
        + b_ref[...]
    )


# ------------------------------ layer wrappers ------------------------------

def conv_bn_lrelu(pT, wT, gamma, beta, *, eps=1e-5, slope=0.2):
    """One fused layer: (K, M) patches^T  ->  (Cout, M) activations."""
    K, M = pT.shape
    Cout = wT.shape[0]
    return pl.pallas_call(
        partial(_conv_bn_lrelu_kernel, slope=slope, eps=eps, inv_m=1.0 / M),
        out_shape=jax.ShapeDtypeStruct((Cout, M), jnp.float32),
        grid=(1,),
        in_specs=[
            pl.BlockSpec((K, M), lambda i: (0, 0)),
            pl.BlockSpec((Cout, K), lambda i: (0, 0)),
            pl.BlockSpec((Cout, 1), lambda i: (0, 0)),
            pl.BlockSpec((Cout, 1), lambda i: (0, 0)),
        ],
        out_specs=pl.BlockSpec((Cout, M), lambda i: (0, 0)),
        compiler_params=pltpu.CompilerParams(
            dimension_semantics=("arbitrary",),
            vmem_limit_bytes=32 * 1024 * 1024,
        ),
    )(pT, wT, gamma, beta)


def fc_heads(x, w, b):
    """Merged fc1/fc2:  (N, fin) @ (fin, 2*latent) + bias."""
    Nx, K = x.shape
    C = w.shape[1]
    return pl.pallas_call(
        _fc_kernel,
        out_shape=jax.ShapeDtypeStruct((Nx, C), jnp.float32),
        grid=(1,),
        in_specs=[
            pl.BlockSpec((Nx, K), lambda i: (0, 0)),
            pl.BlockSpec((K, C), lambda i: (0, 0)),
            pl.BlockSpec((1, C), lambda i: (0, 0)),
        ],
        out_specs=pl.BlockSpec((Nx, C), lambda i: (0, 0)),
        compiler_params=pltpu.CompilerParams(
            dimension_semantics=("arbitrary",),
            vmem_limit_bytes=32 * 1024 * 1024,
        ),
    )(x, w, b)


def _im2col_T(x_cnhw):
    """(C, N, H, W) -> patches^T (16*C, N*(H//2)*(W//2)) for k=4, s=2, p=1.

    Row order is (kh, kw, cin).  Built with one space-to-depth reshape plus 16
    contiguous slices (no strided gathers) — cheap XLA glue in f32.
    """
    C, N, H, W = x_cnhw.shape
    Ho, Wo = H // 2, W // 2
    xp = jnp.pad(x_cnhw, ((0, 0), (0, 0), (1, 1), (1, 1)))
    s2d = xp.reshape(C, N, Ho + 1, 2, Wo + 1, 2)
    taps = [
        s2d[:, :, kh // 2:kh // 2 + Ho, kh % 2, kw // 2:kw // 2 + Wo, kw % 2]
        for kh in range(4) for kw in range(4)
    ]
    return jnp.stack(taps, axis=0).reshape(16 * C, N * Ho * Wo)


# ------------------------------ Encoder model ------------------------------

def init_encoder_params(key, nc, fmaps, latent):
    chans = [nc, fmaps, fmaps * 2, fmaps * 4, fmaps * 8, fmaps * 8]
    keys = jax.random.split(key, 12)
    params = {}
    for l in range(5):
        cin, cout = chans[l], chans[l + 1]
        fan_in = cin * 16
        params[f"conv{l+1}_w"] = (
            jax.random.normal(keys[2 * l], (4, 4, cin, cout), jnp.float32)
            / jnp.sqrt(float(fan_in))
        )
        # nn.Conv2d has a bias, but it is a mathematical no-op before
        # training-mode BatchNorm (cancels in the mean subtraction) -> omitted.
        params[f"bn{l+1}_gamma"] = jnp.ones((cout,), jnp.float32)   # BN default init
        params[f"bn{l+1}_beta"] = jnp.zeros((cout,), jnp.float32)
    fin = fmaps * 8 * 4 * 4
    params["fc1_w"] = jax.random.normal(keys[10], (fin, latent), jnp.float32) / jnp.sqrt(float(fin))
    params["fc1_b"] = jnp.zeros((latent,), jnp.float32)
    params["fc2_w"] = jax.random.normal(keys[11], (fin, latent), jnp.float32) / jnp.sqrt(float(fin))
    params["fc2_b"] = jnp.zeros((latent,), jnp.float32)
    return params


def prepare_encoder_params(params):
    """One-time weight repacking (outside jit): conv W^T (Cout, 16*Cin),
    BN vectors as (Cout, 1), and merged [fc1 | fc2] weight/bias."""
    prep = {"layers": []}
    l = 1
    while f"conv{l}_w" in params:
        w = params[f"conv{l}_w"]                          # (4, 4, Cin, Cout)
        cout = w.shape[-1]
        prep["layers"].append((
            w.reshape(-1, cout).T.astype(jnp.float32),    # (Cout, 16*Cin)
            params[f"bn{l}_gamma"].reshape(cout, 1).astype(jnp.float32),
            params[f"bn{l}_beta"].reshape(cout, 1).astype(jnp.float32),
        ))
        l += 1
    prep["fc_w"] = jnp.concatenate(
        [params["fc1_w"], params["fc2_w"]], axis=1).astype(jnp.float32)
    prep["fc_b"] = jnp.concatenate(
        [params["fc1_b"], params["fc2_b"]]).reshape(1, -1).astype(jnp.float32)
    return prep


def encoder_forward(prep, x_nchw):
    """x_nchw: (N, nc, H, W) with H = W = 128 (5 stride-2 stages -> 4x4)."""
    N = x_nchw.shape[0]
    # channel-first internal layout (C, N, H, W): M = N*H*W rides the lane axis.
    h = jnp.transpose(x_nchw, (1, 0, 2, 3)).astype(jnp.float32)
    for wT, gamma, beta in prep["layers"]:
        C, _, H, W = h.shape
        pT = _im2col_T(h)                                 # (16*C, N*Ho*Wo)
        y = conv_bn_lrelu(pT, wT, gamma, beta)            # (Cout, N*Ho*Wo)
        h = y.reshape(wT.shape[0], N, H // 2, W // 2)
    C5, _, H5, W5 = h.shape
    # Match PyTorch h5.view(N, -1): per-sample (C, H, W)-order flatten.
    h5 = jnp.transpose(h, (1, 0, 2, 3)).reshape(N, C5 * H5 * W5)
    out = fc_heads(h5, prep["fc_w"], prep["fc_b"])        # (N, 2*latent)
    latent = prep["fc_w"].shape[1] // 2
    return out[:, :latent], out[:, latent:]


# ---------------------------------- main -----------------------------------

if __name__ == "__main__":
    nc, fmaps, latent = 3, 4, 32
    N, H, W = 2, 128, 128          # 5 stride-2 downsamples: 128 -> 4 (matches fc)

    key = jax.random.PRNGKey(0)
    kx, kp = jax.random.split(key)
    x = jax.random.normal(kx, (N, nc, H, W), jnp.float32)
    params = init_encoder_params(kp, nc, fmaps, latent)
    prep = prepare_encoder_params(params)   # outside jit: no per-call concat/reshape

    fwd = jax.jit(encoder_forward)
    mu, logvar = fwd(prep, x)
    jax.block_until_ready((mu, logvar))

    assert mu.shape == (N, latent) and logvar.shape == (N, latent)
    assert bool(jnp.all(jnp.isfinite(mu))) and bool(jnp.all(jnp.isfinite(logvar)))
    print("KERNEL_OK")
</pallas_src>

<mosaic_0001>
module attributes {stable_mosaic.version = 11 : i64} {
  func.func @_conv_bn_lrelu_kernel(%arg0: i32, %arg1: memref<48x8192xf32, #tpu.memory_space<vmem>>, %arg2: memref<4x48xf32, #tpu.memory_space<vmem>>, %arg3: memref<4x1xf32, #tpu.memory_space<vmem>>, %arg4: memref<4x1xf32, #tpu.memory_space<vmem>>, %arg5: memref<4x8192xf32, #tpu.memory_space<vmem>>) attributes {dimension_semantics = [#tpu.dimension_semantics<arbitrary>], iteration_bounds = array<i64: 1>, scalar_prefetch = 0 : i64, scratch_operands = 0 : i64, tpu.core_type = #tpu.core_type<tc>, window_params = [{pipeline_mode = #tpu.pipeline_mode<synchronous>, transform_indices = @transform_0, window_bounds = array<i64: 48, 8192>}, {pipeline_mode = #tpu.pipeline_mode<synchronous>, transform_indices = @transform_1, window_bounds = array<i64: 4, 48>}, {pipeline_mode = #tpu.pipeline_mode<synchronous>, transform_indices = @transform_2, window_bounds = array<i64: 4, 1>}, {pipeline_mode = #tpu.pipeline_mode<synchronous>, transform_indices = @transform_3, window_bounds = array<i64: 4, 1>}, {pipeline_mode = #tpu.pipeline_mode<synchronous>, transform_indices = @transform_4, window_bounds = array<i64: 4, 8192>}]} {
    %c0 = arith.constant 0 : index
    %c0_0 = arith.constant 0 : index
    %0 = vector.load %arg2[%c0, %c0_0] : memref<4x48xf32, #tpu.memory_space<vmem>>, vector<4x48xf32>
    %c0_1 = arith.constant 0 : index
    %c0_2 = arith.constant 0 : index
    %1 = vector.load %arg1[%c0_1, %c0_2] : memref<48x8192xf32, #tpu.memory_space<vmem>>, vector<48x8192xf32>
    %cst = arith.constant dense<0.000000e+00> : vector<4x8192xf32>
    %2 = tpu.matmul %0, %1, %cst {dimension_numbers = #tpu.dot_dimension_numbers<[1], [0], [0], [1], [0, 0, 1, 1], [], []>} : vector<4x48xf32>, vector<48x8192xf32>, vector<4x8192xf32> -> vector<4x8192xf32>
    %cst_3 = arith.constant dense<0.000000e+00> : vector<4xf32>
    %3 = vector.multi_reduction <add>, %2, %cst_3 [1] : vector<4x8192xf32> to vector<4xf32>
    %4 = vector.shape_cast %3 : vector<4xf32> to vector<4x1xf32>
    %cst_4 = arith.constant 1.22070313E-4 : f32
    %5 = vector.broadcast %cst_4 : f32 to vector<4x1xf32>
    %6 = arith.mulf %4, %5 : vector<4x1xf32>
    %7 = vector.broadcast %6 : vector<4x1xf32> to vector<4x8192xf32>
    %8 = arith.subf %2, %7 : vector<4x8192xf32>
    %9 = arith.mulf %8, %8 : vector<4x8192xf32>
    %cst_5 = arith.constant dense<0.000000e+00> : vector<4xf32>
    %10 = vector.multi_reduction <add>, %9, %cst_5 [1] : vector<4x8192xf32> to vector<4xf32>
    %11 = vector.shape_cast %10 : vector<4xf32> to vector<4x1xf32>
    %cst_6 = arith.constant 1.22070313E-4 : f32
    %12 = vector.broadcast %cst_6 : f32 to vector<4x1xf32>
    %13 = arith.mulf %11, %12 : vector<4x1xf32>
    %c0_7 = arith.constant 0 : index
    %c0_8 = arith.constant 0 : index
    %14 = vector.load %arg3[%c0_7, %c0_8] : memref<4x1xf32, #tpu.memory_space<vmem>>, vector<4x1xf32>
    %cst_9 = arith.constant 9.99999974E-6 : f32
    %15 = vector.broadcast %cst_9 : f32 to vector<4x1xf32>
    %16 = arith.addf %13, %15 : vector<4x1xf32>
    %17 = math.rsqrt %16 : vector<4x1xf32>
    %18 = arith.mulf %14, %17 : vector<4x1xf32>
    %19 = vector.broadcast %18 : vector<4x1xf32> to vector<4x8192xf32>
    %20 = arith.mulf %8, %19 : vector<4x8192xf32>
    %c0_10 = arith.constant 0 : index
    %c0_11 = arith.constant 0 : index
    %21 = vector.load %arg4[%c0_10, %c0_11] : memref<4x1xf32, #tpu.memory_space<vmem>>, vector<4x1xf32>
    %22 = vector.broadcast %21 : vector<4x1xf32> to vector<4x8192xf32>
    %23 = arith.addf %20, %22 : vector<4x8192xf32>
    %cst_12 = arith.constant 2.000000e-01 : f32
    %24 = vector.broadcast %cst_12 : f32 to vector<4x8192xf32>
    %25 = arith.mulf %24, %23 : vector<4x8192xf32>
    %26 = arith.maximumf %23, %25 : vector<4x8192xf32>
    %c0_13 = arith.constant 0 : index
    %c0_14 = arith.constant 0 : index
    %27 = vector.load %arg5[%c0_13, %c0_14] : memref<4x8192xf32, #tpu.memory_space<vmem>>, vector<4x8192xf32>
    tpu.vector_store %arg5[%c0_13, %c0_14], %26 {strides = array<i32>} : memref<4x8192xf32, #tpu.memory_space<vmem>>, vector<4x8192xf32>,
    return
  }
  func.func @transform_0(%arg0: i32) -> (i32, i32) {
    %c0_i32 = arith.constant 0 : i32
    %c0_i32_0 = arith.constant 0 : i32
    %c0_i32_1 = arith.constant 0 : i32
    return %c0_i32, %c0_i32_0 : i32, i32
  }
  func.func @transform_1(%arg0: i32) -> (i32, i32) {
    %c0_i32 = arith.constant 0 : i32
    %c0_i32_0 = arith.constant 0 : i32
    %c0_i32_1 = arith.constant 0 : i32
    return %c0_i32, %c0_i32_0 : i32, i32
  }
  func.func @transform_2(%arg0: i32) -> (i32, i32) {
    %c0_i32 = arith.constant 0 : i32
    %c0_i32_0 = arith.constant 0 : i32
    %c0_i32_1 = arith.constant 0 : i32
    return %c0_i32, %c0_i32_0 : i32, i32
  }
  func.func @transform_3(%arg0: i32) -> (i32, i32) {
    %c0_i32 = arith.constant 0 : i32
    %c0_i32_0 = arith.constant 0 : i32
    %c0_i32_1 = arith.constant 0 : i32
    return %c0_i32, %c0_i32_0 : i32, i32
  }
  func.func @transform_4(%arg0: i32) -> (i32, i32) {
    %c0_i32 = arith.constant 0 : i32
    %c0_i32_0 = arith.constant 0 : i32
    %c0_i32_1 = arith.constant 0 : i32
    return %c0_i32, %c0_i32_0 : i32, i32
  }
}

module attributes {stable_mosaic.version = 11 : i64} {
  func.func @_conv_bn_lrelu_kernel(%arg0: i32, %arg1: memref<64x2048xf32, #tpu.memory_space<vmem>>, %arg2: memref<8x64xf32, #tpu.memory_space<vmem>>, %arg3: memref<8x1xf32, #tpu.memory_space<vmem>>, %arg4: memref<8x1xf32, #tpu.memory_space<vmem>>, %arg5: memref<8x2048xf32, #tpu.memory_space<vmem>>) attributes {dimension_semantics = [#tpu.dimension_semantics<arbitrary>], iteration_bounds = array<i64: 1>, scalar_prefetch = 0 : i64, scratch_operands = 0 : i64, tpu.core_type = #tpu.core_type<tc>, window_params = [{pipeline_mode = #tpu.pipeline_mode<synchronous>, transform_indices = @transform_0, window_bounds = array<i64: 64, 2048>}, {pipeline_mode = #tpu.pipeline_mode<synchronous>, transform_indices = @transform_1, window_bounds = array<i64: 8, 64>}, {pipeline_mode = #tpu.pipeline_mode<synchronous>, transform_indices = @transform_2, window_bounds = array<i64: 8, 1>}, {pipeline_mode = #tpu.pipeline_mode<synchronous>, transform_indices = @transform_3, window_bounds = array<i64: 8, 1>}, {pipeline_mode = #tpu.pipeline_mode<synchronous>, transform_indices = @transform_4, window_bounds = array<i64: 8, 2048>}]} {
    %c0 = arith.constant 0 : index
    %c0_0 = arith.constant 0 : index
    %0 = vector.load %arg2[%c0, %c0_0] : memref<8x64xf32, #tpu.memory_space<vmem>>, vector<8x64xf32>
    %c0_1 = arith.constant 0 : index
    %c0_2 = arith.constant 0 : index
    %1 = vector.load %arg1[%c0_1, %c0_2] : memref<64x2048xf32, #tpu.memory_space<vmem>>, vector<64x2048xf32>
    %cst = arith.constant dense<0.000000e+00> : vector<8x2048xf32>
    %2 = tpu.matmul %0, %1, %cst {dimension_numbers = #tpu.dot_dimension_numbers<[1], [0], [0], [1], [0, 0, 1, 1], [], []>} : vector<8x64xf32>, vector<64x2048xf32>, vector<8x2048xf32> -> vector<8x2048xf32>
    %cst_3 = arith.constant dense<0.000000e+00> : vector<8xf32>
    %3 = vector.multi_reduction <add>, %2, %cst_3 [1] : vector<8x2048xf32> to vector<8xf32>
    %4 = vector.shape_cast %3 : vector<8xf32> to vector<8x1xf32>
    %cst_4 = arith.constant 4.8828125E-4 : f32
    %5 = vector.broadcast %cst_4 : f32 to vector<8x1xf32>
    %6 = arith.mulf %4, %5 : vector<8x1xf32>
    %7 = vector.broadcast %6 : vector<8x1xf32> to vector<8x2048xf32>
    %8 = arith.subf %2, %7 : vector<8x2048xf32>
    %9 = arith.mulf %8, %8 : vector<8x2048xf32>
    %cst_5 = arith.constant dense<0.000000e+00> : vector<8xf32>
    %10 = vector.multi_reduction <add>, %9, %cst_5 [1] : vector<8x2048xf32> to vector<8xf32>
    %11 = vector.shape_cast %10 : vector<8xf32> to vector<8x1xf32>
    %cst_6 = arith.constant 4.8828125E-4 : f32
    %12 = vector.broadcast %cst_6 : f32 to vector<8x1xf32>
    %13 = arith.mulf %11, %12 : vector<8x1xf32>
    %c0_7 = arith.constant 0 : index
    %c0_8 = arith.constant 0 : index
    %14 = vector.load %arg3[%c0_7, %c0_8] : memref<8x1xf32, #tpu.memory_space<vmem>>, vector<8x1xf32>
    %cst_9 = arith.constant 9.99999974E-6 : f32
    %15 = vector.broadcast %cst_9 : f32 to vector<8x1xf32>
    %16 = arith.addf %13, %15 : vector<8x1xf32>
    %17 = math.rsqrt %16 : vector<8x1xf32>
    %18 = arith.mulf %14, %17 : vector<8x1xf32>
    %19 = vector.broadcast %18 : vector<8x1xf32> to vector<8x2048xf32>
    %20 = arith.mulf %8, %19 : vector<8x2048xf32>
    %c0_10 = arith.constant 0 : index
    %c0_11 = arith.constant 0 : index
    %21 = vector.load %arg4[%c0_10, %c0_11] : memref<8x1xf32, #tpu.memory_space<vmem>>, vector<8x1xf32>
    %22 = vector.broadcast %21 : vector<8x1xf32> to vector<8x2048xf32>
    %23 = arith.addf %20, %22 : vector<8x2048xf32>
    %cst_12 = arith.constant 2.000000e-01 : f32
    %24 = vector.broadcast %cst_12 : f32 to vector<8x2048xf32>
    %25 = arith.mulf %24, %23 : vector<8x2048xf32>
    %26 = arith.maximumf %23, %25 : vector<8x2048xf32>
    %c0_13 = arith.constant 0 : index
    %c0_14 = arith.constant 0 : index
    %27 = vector.load %arg5[%c0_13, %c0_14] : memref<8x2048xf32, #tpu.memory_space<vmem>>, vector<8x2048xf32>
    tpu.vector_store %arg5[%c0_13, %c0_14], %26 {strides = array<i32>} : memref<8x2048xf32, #tpu.memory_space<vmem>>, vector<8x2048xf32>,
    return
  }
  func.func @transform_0(%arg0: i32) -> (i32, i32) {
    %c0_i32 = arith.constant 0 : i32
    %c0_i32_0 = arith.constant 0 : i32
    %c0_i32_1 = arith.constant 0 : i32
    return %c0_i32, %c0_i32_0 : i32, i32
  }
  func.func @transform_1(%arg0: i32) -> (i32, i32) {
    %c0_i32 = arith.constant 0 : i32
    %c0_i32_0 = arith.constant 0 : i32
    %c0_i32_1 = arith.constant 0 : i32
    return %c0_i32, %c0_i32_0 : i32, i32
  }
  func.func @transform_2(%arg0: i32) -> (i32, i32) {
    %c0_i32 = arith.constant 0 : i32
    %c0_i32_0 = arith.constant 0 : i32
    %c0_i32_1 = arith.constant 0 : i32
    return %c0_i32, %c0_i32_0 : i32, i32
  }
  func.func @transform_3(%arg0: i32) -> (i32, i32) {
    %c0_i32 = arith.constant 0 : i32
    %c0_i32_0 = arith.constant 0 : i32
    %c0_i32_1 = arith.constant 0 : i32
    return %c0_i32, %c0_i32_0 : i32, i32
  }
  func.func @transform_4(%arg0: i32) -> (i32, i32) {
    %c0_i32 = arith.constant 0 : i32
    %c0_i32_0 = arith.constant 0 : i32
    %c0_i32_1 = arith.constant 0 : i32
    return %c0_i32, %c0_i32_0 : i32, i32
  }
}

module attributes {stable_mosaic.version = 11 : i64} {
  func.func @_conv_bn_lrelu_kernel(%arg0: i32, %arg1: memref<128x512xf32, #tpu.memory_space<vmem>>, %arg2: memref<16x128xf32, #tpu.memory_space<vmem>>, %arg3: memref<16x1xf32, #tpu.memory_space<vmem>>, %arg4: memref<16x1xf32, #tpu.memory_space<vmem>>, %arg5: memref<16x512xf32, #tpu.memory_space<vmem>>) attributes {dimension_semantics = [#tpu.dimension_semantics<arbitrary>], iteration_bounds = array<i64: 1>, scalar_prefetch = 0 : i64, scratch_operands = 0 : i64, tpu.core_type = #tpu.core_type<tc>, window_params = [{pipeline_mode = #tpu.pipeline_mode<synchronous>, transform_indices = @transform_0, window_bounds = array<i64: 128, 512>}, {pipeline_mode = #tpu.pipeline_mode<synchronous>, transform_indices = @transform_1, window_bounds = array<i64: 16, 128>}, {pipeline_mode = #tpu.pipeline_mode<synchronous>, transform_indices = @transform_2, window_bounds = array<i64: 16, 1>}, {pipeline_mode = #tpu.pipeline_mode<synchronous>, transform_indices = @transform_3, window_bounds = array<i64: 16, 1>}, {pipeline_mode = #tpu.pipeline_mode<synchronous>, transform_indices = @transform_4, window_bounds = array<i64: 16, 512>}]} {
    %c0 = arith.constant 0 : index
    %c0_0 = arith.constant 0 : index
    %0 = vector.load %arg2[%c0, %c0_0] : memref<16x128xf32, #tpu.memory_space<vmem>>, vector<16x128xf32>
    %c0_1 = arith.constant 0 : index
    %c0_2 = arith.constant 0 : index
    %1 = vector.load %arg1[%c0_1, %c0_2] : memref<128x512xf32, #tpu.memory_space<vmem>>, vector<128x512xf32>
    %cst = arith.constant dense<0.000000e+00> : vector<16x512xf32>
    %2 = tpu.matmul %0, %1, %cst {dimension_numbers = #tpu.dot_dimension_numbers<[1], [0], [0], [1], [0, 0, 1, 1], [], []>} : vector<16x128xf32>, vector<128x512xf32>, vector<16x512xf32> -> vector<16x512xf32>
    %cst_3 = arith.constant dense<0.000000e+00> : vector<16xf32>
    %3 = vector.multi_reduction <add>, %2, %cst_3 [1] : vector<16x512xf32> to vector<16xf32>
    %4 = vector.shape_cast %3 : vector<16xf32> to vector<16x1xf32>
    %cst_4 = arith.constant 0.001953125 : f32
    %5 = vector.broadcast %cst_4 : f32 to vector<16x1xf32>
    %6 = arith.mulf %4, %5 : vector<16x1xf32>
    %7 = vector.broadcast %6 : vector<16x1xf32> to vector<16x512xf32>
    %8 = arith.subf %2, %7 : vector<16x512xf32>
    %9 = arith.mulf %8, %8 : vector<16x512xf32>
    %cst_5 = arith.constant dense<0.000000e+00> : vector<16xf32>
    %10 = vector.multi_reduction <add>, %9, %cst_5 [1] : vector<16x512xf32> to vector<16xf32>
    %11 = vector.shape_cast %10 : vector<16xf32> to vector<16x1xf32>
    %cst_6 = arith.constant 0.001953125 : f32
    %12 = vector.broadcast %cst_6 : f32 to vector<16x1xf32>
    %13 = arith.mulf %11, %12 : vector<16x1xf32>
    %c0_7 = arith.constant 0 : index
    %c0_8 = arith.constant 0 : index
    %14 = vector.load %arg3[%c0_7, %c0_8] : memref<16x1xf32, #tpu.memory_space<vmem>>, vector<16x1xf32>
    %cst_9 = arith.constant 9.99999974E-6 : f32
    %15 = vector.broadcast %cst_9 : f32 to vector<16x1xf32>
    %16 = arith.addf %13, %15 : vector<16x1xf32>
    %17 = math.rsqrt %16 : vector<16x1xf32>
    %18 = arith.mulf %14, %17 : vector<16x1xf32>
    %19 = vector.broadcast %18 : vector<16x1xf32> to vector<16x512xf32>
    %20 = arith.mulf %8, %19 : vector<16x512xf32>
    %c0_10 = arith.constant 0 : index
    %c0_11 = arith.constant 0 : index
    %21 = vector.load %arg4[%c0_10, %c0_11] : memref<16x1xf32, #tpu.memory_space<vmem>>, vector<16x1xf32>
    %22 = vector.broadcast %21 : vector<16x1xf32> to vector<16x512xf32>
    %23 = arith.addf %20, %22 : vector<16x512xf32>
    %cst_12 = arith.constant 2.000000e-01 : f32
    %24 = vector.broadcast %cst_12 : f32 to vector<16x512xf32>
    %25 = arith.mulf %24, %23 : vector<16x512xf32>
    %26 = arith.maximumf %23, %25 : vector<16x512xf32>
    %c0_13 = arith.constant 0 : index
    %c0_14 = arith.constant 0 : index
    %27 = vector.load %arg5[%c0_13, %c0_14] : memref<16x512xf32, #tpu.memory_space<vmem>>, vector<16x512xf32>
    tpu.vector_store %arg5[%c0_13, %c0_14], %26 {strides = array<i32>} : memref<16x512xf32, #tpu.memory_space<vmem>>, vector<16x512xf32>,
    return
  }
  func.func @transform_0(%arg0: i32) -> (i32, i32) {
    %c0_i32 = arith.constant 0 : i32
    %c0_i32_0 = arith.constant 0 : i32
    %c0_i32_1 = arith.constant 0 : i32
    return %c0_i32, %c0_i32_0 : i32, i32
  }
  func.func @transform_1(%arg0: i32) -> (i32, i32) {
    %c0_i32 = arith.constant 0 : i32
    %c0_i32_0 = arith.constant 0 : i32
    %c0_i32_1 = arith.constant 0 : i32
    return %c0_i32, %c0_i32_0 : i32, i32
  }
  func.func @transform_2(%arg0: i32) -> (i32, i32) {
    %c0_i32 = arith.constant 0 : i32
    %c0_i32_0 = arith.constant 0 : i32
    %c0_i32_1 = arith.constant 0 : i32
    return %c0_i32, %c0_i32_0 : i32, i32
  }
  func.func @transform_3(%arg0: i32) -> (i32, i32) {
    %c0_i32 = arith.constant 0 : i32
    %c0_i32_0 = arith.constant 0 : i32
    %c0_i32_1 = arith.constant 0 : i32
    return %c0_i32, %c0_i32_0 : i32, i32
  }
  func.func @transform_4(%arg0: i32) -> (i32, i32) {
    %c0_i32 = arith.constant 0 : i32
    %c0_i32_0 = arith.constant 0 : i32
    %c0_i32_1 = arith.constant 0 : i32
    return %c0_i32, %c0_i32_0 : i32, i32
  }
}

module attributes {stable_mosaic.version = 11 : i64} {
  func.func @_conv_bn_lrelu_kernel(%arg0: i32, %arg1: memref<256x128xf32, #tpu.memory_space<vmem>>, %arg2: memref<32x256xf32, #tpu.memory_space<vmem>>, %arg3: memref<32x1xf32, #tpu.memory_space<vmem>>, %arg4: memref<32x1xf32, #tpu.memory_space<vmem>>, %arg5: memref<32x128xf32, #tpu.memory_space<vmem>>) attributes {dimension_semantics = [#tpu.dimension_semantics<arbitrary>], iteration_bounds = array<i64: 1>, scalar_prefetch = 0 : i64, scratch_operands = 0 : i64, tpu.core_type = #tpu.core_type<tc>, window_params = [{pipeline_mode = #tpu.pipeline_mode<synchronous>, transform_indices = @transform_0, window_bounds = array<i64: 256, 128>}, {pipeline_mode = #tpu.pipeline_mode<synchronous>, transform_indices = @transform_1, window_bounds = array<i64: 32, 256>}, {pipeline_mode = #tpu.pipeline_mode<synchronous>, transform_indices = @transform_2, window_bounds = array<i64: 32, 1>}, {pipeline_mode = #tpu.pipeline_mode<synchronous>, transform_indices = @transform_3, window_bounds = array<i64: 32, 1>}, {pipeline_mode = #tpu.pipeline_mode<synchronous>, transform_indices = @transform_4, window_bounds = array<i64: 32, 128>}]} {
    %c0 = arith.constant 0 : index
    %c0_0 = arith.constant 0 : index
    %0 = vector.load %arg2[%c0, %c0_0] : memref<32x256xf32, #tpu.memory_space<vmem>>, vector<32x256xf32>
    %c0_1 = arith.constant 0 : index
    %c0_2 = arith.constant 0 : index
    %1 = vector.load %arg1[%c0_1, %c0_2] : memref<256x128xf32, #tpu.memory_space<vmem>>, vector<256x128xf32>
    %cst = arith.constant dense<0.000000e+00> : vector<32x128xf32>
    %2 = tpu.matmul %0, %1, %cst {dimension_numbers = #tpu.dot_dimension_numbers<[1], [0], [0], [1], [0, 0, 1, 1], [], []>} : vector<32x256xf32>, vector<256x128xf32>, vector<32x128xf32> -> vector<32x128xf32>
    %cst_3 = arith.constant dense<0.000000e+00> : vector<32xf32>
    %3 = vector.multi_reduction <add>, %2, %cst_3 [1] : vector<32x128xf32> to vector<32xf32>
    %4 = vector.shape_cast %3 : vector<32xf32> to vector<32x1xf32>
    %cst_4 = arith.constant 7.812500e-03 : f32
    %5 = vector.broadcast %cst_4 : f32 to vector<32x1xf32>
    %6 = arith.mulf %4, %5 : vector<32x1xf32>
    %7 = vector.broadcast %6 : vector<32x1xf32> to vector<32x128xf32>
    %8 = arith.subf %2, %7 : vector<32x128xf32>
    %9 = arith.mulf %8, %8 : vector<32x128xf32>
    %cst_5 = arith.constant dense<0.000000e+00> : vector<32xf32>
    %10 = vector.multi_reduction <add>, %9, %cst_5 [1] : vector<32x128xf32> to vector<32xf32>
    %11 = vector.shape_cast %10 : vector<32xf32> to vector<32x1xf32>
    %cst_6 = arith.constant 7.812500e-03 : f32
    %12 = vector.broadcast %cst_6 : f32 to vector<32x1xf32>
    %13 = arith.mulf %11, %12 : vector<32x1xf32>
    %c0_7 = arith.constant 0 : index
    %c0_8 = arith.constant 0 : index
    %14 = vector.load %arg3[%c0_7, %c0_8] : memref<32x1xf32, #tpu.memory_space<vmem>>, vector<32x1xf32>
    %cst_9 = arith.constant 9.99999974E-6 : f32
    %15 = vector.broadcast %cst_9 : f32 to vector<32x1xf32>
    %16 = arith.addf %13, %15 : vector<32x1xf32>
    %17 = math.rsqrt %16 : vector<32x1xf32>
    %18 = arith.mulf %14, %17 : vector<32x1xf32>
    %19 = vector.broadcast %18 : vector<32x1xf32> to vector<32x128xf32>
    %20 = arith.mulf %8, %19 : vector<32x128xf32>
    %c0_10 = arith.constant 0 : index
    %c0_11 = arith.constant 0 : index
    %21 = vector.load %arg4[%c0_10, %c0_11] : memref<32x1xf32, #tpu.memory_space<vmem>>, vector<32x1xf32>
    %22 = vector.broadcast %21 : vector<32x1xf32> to vector<32x128xf32>
    %23 = arith.addf %20, %22 : vector<32x128xf32>
    %cst_12 = arith.constant 2.000000e-01 : f32
    %24 = vector.broadcast %cst_12 : f32 to vector<32x128xf32>
    %25 = arith.mulf %24, %23 : vector<32x128xf32>
    %26 = arith.maximumf %23, %25 : vector<32x128xf32>
    %c0_13 = arith.constant 0 : index
    %c0_14 = arith.constant 0 : index
    %27 = vector.load %arg5[%c0_13, %c0_14] : memref<32x128xf32, #tpu.memory_space<vmem>>, vector<32x128xf32>
    tpu.vector_store %arg5[%c0_13, %c0_14], %26 {strides = array<i32>} : memref<32x128xf32, #tpu.memory_space<vmem>>, vector<32x128xf32>,
    return
  }
  func.func @transform_0(%arg0: i32) -> (i32, i32) {
    %c0_i32 = arith.constant 0 : i32
    %c0_i32_0 = arith.constant 0 : i32
    %c0_i32_1 = arith.constant 0 : i32
    return %c0_i32, %c0_i32_0 : i32, i32
  }
  func.func @transform_1(%arg0: i32) -> (i32, i32) {
    %c0_i32 = arith.constant 0 : i32
    %c0_i32_0 = arith.constant 0 : i32
    %c0_i32_1 = arith.constant 0 : i32
    return %c0_i32, %c0_i32_0 : i32, i32
  }
  func.func @transform_2(%arg0: i32) -> (i32, i32) {
    %c0_i32 = arith.constant 0 : i32
    %c0_i32_0 = arith.constant 0 : i32
    %c0_i32_1 = arith.constant 0 : i32
    return %c0_i32, %c0_i32_0 : i32, i32
  }
  func.func @transform_3(%arg0: i32) -> (i32, i32) {
    %c0_i32 = arith.constant 0 : i32
    %c0_i32_0 = arith.constant 0 : i32
    %c0_i32_1 = arith.constant 0 : i32
    return %c0_i32, %c0_i32_0 : i32, i32
  }
  func.func @transform_4(%arg0: i32) -> (i32, i32) {
    %c0_i32 = arith.constant 0 : i32
    %c0_i32_0 = arith.constant 0 : i32
    %c0_i32_1 = arith.constant 0 : i32
    return %c0_i32, %c0_i32_0 : i32, i32
  }
}

module attributes {stable_mosaic.version = 11 : i64} {
  func.func @_conv_bn_lrelu_kernel(%arg0: i32, %arg1: memref<512x32xf32, #tpu.memory_space<vmem>>, %arg2: memref<32x512xf32, #tpu.memory_space<vmem>>, %arg3: memref<32x1xf32, #tpu.memory_space<vmem>>, %arg4: memref<32x1xf32, #tpu.memory_space<vmem>>, %arg5: memref<32x32xf32, #tpu.memory_space<vmem>>) attributes {dimension_semantics = [#tpu.dimension_semantics<arbitrary>], iteration_bounds = array<i64: 1>, scalar_prefetch = 0 : i64, scratch_operands = 0 : i64, tpu.core_type = #tpu.core_type<tc>, window_params = [{pipeline_mode = #tpu.pipeline_mode<synchronous>, transform_indices = @transform_0, window_bounds = array<i64: 512, 32>}, {pipeline_mode = #tpu.pipeline_mode<synchronous>, transform_indices = @transform_1, window_bounds = array<i64: 32, 512>}, {pipeline_mode = #tpu.pipeline_mode<synchronous>, transform_indices = @transform_2, window_bounds = array<i64: 32, 1>}, {pipeline_mode = #tpu.pipeline_mode<synchronous>, transform_indices = @transform_3, window_bounds = array<i64: 32, 1>}, {pipeline_mode = #tpu.pipeline_mode<synchronous>, transform_indices = @transform_4, window_bounds = array<i64: 32, 32>}]} {
    %c0 = arith.constant 0 : index
    %c0_0 = arith.constant 0 : index
    %0 = vector.load %arg2[%c0, %c0_0] : memref<32x512xf32, #tpu.memory_space<vmem>>, vector<32x512xf32>
    %c0_1 = arith.constant 0 : index
    %c0_2 = arith.constant 0 : index
    %1 = vector.load %arg1[%c0_1, %c0_2] : memref<512x32xf32, #tpu.memory_space<vmem>>, vector<512x32xf32>
    %cst = arith.constant dense<0.000000e+00> : vector<32x32xf32>
    %2 = tpu.matmul %0, %1, %cst {dimension_numbers = #tpu.dot_dimension_numbers<[1], [0], [0], [1], [0, 0, 1, 1], [], []>} : vector<32x512xf32>, vector<512x32xf32>, vector<32x32xf32> -> vector<32x32xf32>
    %cst_3 = arith.constant dense<0.000000e+00> : vector<32xf32>
    %3 = vector.multi_reduction <add>, %2, %cst_3 [1] : vector<32x32xf32> to vector<32xf32>
    %4 = vector.shape_cast %3 : vector<32xf32> to vector<32x1xf32>
    %cst_4 = arith.constant 3.125000e-02 : f32
    %5 = vector.broadcast %cst_4 : f32 to vector<32x1xf32>
    %6 = arith.mulf %4, %5 : vector<32x1xf32>
    %7 = vector.broadcast %6 : vector<32x1xf32> to vector<32x32xf32>
    %8 = arith.subf %2, %7 : vector<32x32xf32>
    %9 = arith.mulf %8, %8 : vector<32x32xf32>
    %cst_5 = arith.constant dense<0.000000e+00> : vector<32xf32>
    %10 = vector.multi_reduction <add>, %9, %cst_5 [1] : vector<32x32xf32> to vector<32xf32>
    %11 = vector.shape_cast %10 : vector<32xf32> to vector<32x1xf32>
    %cst_6 = arith.constant 3.125000e-02 : f32
    %12 = vector.broadcast %cst_6 : f32 to vector<32x1xf32>
    %13 = arith.mulf %11, %12 : vector<32x1xf32>
    %c0_7 = arith.constant 0 : index
    %c0_8 = arith.constant 0 : index
    %14 = vector.load %arg3[%c0_7, %c0_8] : memref<32x1xf32, #tpu.memory_space<vmem>>, vector<32x1xf32>
    %cst_9 = arith.constant 9.99999974E-6 : f32
    %15 = vector.broadcast %cst_9 : f32 to vector<32x1xf32>
    %16 = arith.addf %13, %15 : vector<32x1xf32>
    %17 = math.rsqrt %16 : vector<32x1xf32>
    %18 = arith.mulf %14, %17 : vector<32x1xf32>
    %19 = vector.broadcast %18 : vector<32x1xf32> to vector<32x32xf32>
    %20 = arith.mulf %8, %19 : vector<32x32xf32>
    %c0_10 = arith.constant 0 : index
    %c0_11 = arith.constant 0 : index
    %21 = vector.load %arg4[%c0_10, %c0_11] : memref<32x1xf32, #tpu.memory_space<vmem>>, vector<32x1xf32>
    %22 = vector.broadcast %21 : vector<32x1xf32> to vector<32x32xf32>
    %23 = arith.addf %20, %22 : vector<32x32xf32>
    %cst_12 = arith.constant 2.000000e-01 : f32
    %24 = vector.broadcast %cst_12 : f32 to vector<32x32xf32>
    %25 = arith.mulf %24, %23 : vector<32x32xf32>
    %26 = arith.maximumf %23, %25 : vector<32x32xf32>
    %c0_13 = arith.constant 0 : index
    %c0_14 = arith.constant 0 : index
    %27 = vector.load %arg5[%c0_13, %c0_14] : memref<32x32xf32, #tpu.memory_space<vmem>>, vector<32x32xf32>
    tpu.vector_store %arg5[%c0_13, %c0_14], %26 {strides = array<i32>} : memref<32x32xf32, #tpu.memory_space<vmem>>, vector<32x32xf32>,
    return
  }
  func.func @transform_0(%arg0: i32) -> (i32, i32) {
    %c0_i32 = arith.constant 0 : i32
    %c0_i32_0 = arith.constant 0 : i32
    %c0_i32_1 = arith.constant 0 : i32
    return %c0_i32, %c0_i32_0 : i32, i32
  }
  func.func @transform_1(%arg0: i32) -> (i32, i32) {
    %c0_i32 = arith.constant 0 : i32
    %c0_i32_0 = arith.constant 0 : i32
    %c0_i32_1 = arith.constant 0 : i32
    return %c0_i32, %c0_i32_0 : i32, i32
  }
  func.func @transform_2(%arg0: i32) -> (i32, i32) {
    %c0_i32 = arith.constant 0 : i32
    %c0_i32_0 = arith.constant 0 : i32
    %c0_i32_1 = arith.constant 0 : i32
    return %c0_i32, %c0_i32_0 : i32, i32
  }
  func.func @transform_3(%arg0: i32) -> (i32, i32) {
    %c0_i32 = arith.constant 0 : i32
    %c0_i32_0 = arith.constant 0 : i32
    %c0_i32_1 = arith.constant 0 : i32
    return %c0_i32, %c0_i32_0 : i32, i32
  }
  func.func @transform_4(%arg0: i32) -> (i32, i32) {
    %c0_i32 = arith.constant 0 : i32
    %c0_i32_0 = arith.constant 0 : i32
    %c0_i32_1 = arith.constant 0 : i32
    return %c0_i32, %c0_i32_0 : i32, i32
  }
}

module attributes {stable_mosaic.version = 11 : i64} {
  func.func @_fc_kernel(%arg0: i32, %arg1: memref<2x512xf32, #tpu.memory_space<vmem>>, %arg2: memref<512x64xf32, #tpu.memory_space<vmem>>, %arg3: memref<1x64xf32, #tpu.memory_space<vmem>>, %arg4: memref<2x64xf32, #tpu.memory_space<vmem>>) attributes {dimension_semantics = [#tpu.dimension_semantics<arbitrary>], iteration_bounds = array<i64: 1>, scalar_prefetch = 0 : i64, scratch_operands = 0 : i64, tpu.core_type = #tpu.core_type<tc>, window_params = [{pipeline_mode = #tpu.pipeline_mode<synchronous>, transform_indices = @transform_0, window_bounds = array<i64: 2, 512>}, {pipeline_mode = #tpu.pipeline_mode<synchronous>, transform_indices = @transform_1, window_bounds = array<i64: 512, 64>}, {pipeline_mode = #tpu.pipeline_mode<synchronous>, transform_indices = @transform_2, window_bounds = array<i64: 1, 64>}, {pipeline_mode = #tpu.pipeline_mode<synchronous>, transform_indices = @transform_3, window_bounds = array<i64: 2, 64>}]} {
    %c0 = arith.constant 0 : index
    %c0_0 = arith.constant 0 : index
    %0 = vector.load %arg1[%c0, %c0_0] : memref<2x512xf32, #tpu.memory_space<vmem>>, vector<2x512xf32>
    %c0_1 = arith.constant 0 : index
    %c0_2 = arith.constant 0 : index
    %1 = vector.load %arg2[%c0_1, %c0_2] : memref<512x64xf32, #tpu.memory_space<vmem>>, vector<512x64xf32>
    %cst = arith.constant dense<0.000000e+00> : vector<2x64xf32>
    %2 = tpu.matmul %0, %1, %cst {dimension_numbers = #tpu.dot_dimension_numbers<[1], [0], [0], [1], [0, 0, 1, 1], [], []>} : vector<2x512xf32>, vector<512x64xf32>, vector<2x64xf32> -> vector<2x64xf32>
    %c0_3 = arith.constant 0 : index
    %c0_4 = arith.constant 0 : index
    %3 = vector.load %arg3[%c0_3, %c0_4] : memref<1x64xf32, #tpu.memory_space<vmem>>, vector<1x64xf32>
    %4 = vector.broadcast %3 : vector<1x64xf32> to vector<2x64xf32>
    %5 = arith.addf %2, %4 : vector<2x64xf32>
    %c0_5 = arith.constant 0 : index
    %c0_6 = arith.constant 0 : index
    %6 = vector.load %arg4[%c0_5, %c0_6] : memref<2x64xf32, #tpu.memory_space<vmem>>, vector<2x64xf32>
    tpu.vector_store %arg4[%c0_5, %c0_6], %5 {strides = array<i32>} : memref<2x64xf32, #tpu.memory_space<vmem>>, vector<2x64xf32>,
    return
  }
  func.func @transform_0(%arg0: i32) -> (i32, i32) {
    %c0_i32 = arith.constant 0 : i32
    %c0_i32_0 = arith.constant 0 : i32
    %c0_i32_1 = arith.constant 0 : i32
    return %c0_i32, %c0_i32_0 : i32, i32
  }
  func.func @transform_1(%arg0: i32) -> (i32, i32) {
    %c0_i32 = arith.constant 0 : i32
    %c0_i32_0 = arith.constant 0 : i32
    %c0_i32_1 = arith.constant 0 : i32
    return %c0_i32, %c0_i32_0 : i32, i32
  }
  func.func @transform_2(%arg0: i32) -> (i32, i32) {
    %c0_i32 = arith.constant 0 : i32
    %c0_i32_0 = arith.constant 0 : i32
    %c0_i32_1 = arith.constant 0 : i32
    return %c0_i32, %c0_i32_0 : i32, i32
  }
  func.func @transform_3(%arg0: i32) -> (i32, i32) {
    %c0_i32 = arith.constant 0 : i32
    %c0_i32_0 = arith.constant 0 : i32
    %c0_i32_1 = arith.constant 0 : i32
    return %c0_i32, %c0_i32_0 : i32, i32
  }
}

</mosaic_0001>

<bundles_post_ra>
// kernel: encoder_forward.6
= control target key start
LH: loop header
LB: loop body
LE: loop exit
PB: predicated region body
PF: predicated region fallthrough
CT: control target
= control target key end

     0   :  { %vm402_vm0 = vcmask 392192   ;;  %vm1686_vm1 = vcmask 1043456   ;;  %s5616_s0 = inlined_call_operand.vmem [shape: f32[48,8192], index: 0, kind: input, shape index: {}]   ;;  %s5617_s1 = inlined_call_operand.vmem [shape: f32[4,48], index: 1, kind: input, shape index: {}]   ;;  %s5618_s2 = inlined_call_operand.vmem [shape: f32[4,1], index: 2, kind: input, shape index: {}]   ;;  %s5619_s3 = inlined_call_operand.vmem [shape: f32[4,1], index: 3, kind: input, shape index: {}]   ;;  %s5620_s4 = inlined_call_operand.vmem [shape: f32[4,8192], index: 4, kind: output, shape index: {}]  }
   0x1   :  { %v338_v0 = vld [vmem:[%s5616_s0 + $0xa00] sm:$0xff]  ;;  %v340_v1 = vld [vmem:[%s5616_s0 + $0xa10] sm:$0xff]  ;;  %v339_v3 = vld [vmem:[%s5616_s0 + $0xa08] sm:$0xff] }
   0x2   :  { %v274_v2 = vld [vmem:[%s5616_s0 + $0x800] sm:$0xff]  ;;  %416 = vmatpush.msra.mxu0 %v338_v0  ;;  %456 = vmatpush.msra.mxu2 %v340_v1  ;;  %v276_v4 = vld [vmem:[%s5616_s0 + $0x810] sm:$0xff]  ;;  %v341_v5 = vld [vmem:[%s5616_s0 + $0xa18] sm:$0xff] }
   0x3   :  { %436 = vmatpush.msra.mxu1 %v339_v3  ;;  %476 = vmatpush.msra.mxu3 %v341_v5  ;;  %v210_v6 = vld [vmem:[%s5616_s0 + $0x600] sm:$0xff]  ;;  %v275_v7 = vld [vmem:[%s5616_s0 + $0x808] sm:$0xff]  ;;  %v212_v8 = vld [vmem:[%s5616_s0 + $0x610] sm:$0xff] }
   0x4   :  { %417 = vmatpush.msra.mxu0 %v274_v2  ;;  %457 = vmatpush.msra.mxu2 %v276_v4  ;;  %v277_v9 = vld [vmem:[%s5616_s0 + $0x818] sm:$0xff]  ;;  %v211_v10 = vld [vmem:[%s5616_s0 + $0x608] sm:$0xff]  ;;  %v146_v11 = vld [vmem:[%s5616_s0 + $0x400] sm:$0xff] }
   0x5   :  { %437 = vmatpush.msra.mxu1 %v275_v7  ;;  %477 = vmatpush.msra.mxu3 %v277_v9  ;;  %v148_v12 = vld [vmem:[%s5616_s0 + $0x410] sm:$0xff]  ;;  %v213_v13 = vld [vmem:[%s5616_s0 + $0x618] sm:$0xff]  ;;  %v147_v14 = vld [vmem:[%s5616_s0 + $0x408] sm:$0xff] }
   0x6   :  { %418 = vmatpush.msra.mxu0 %v210_v6  ;;  %458 = vmatpush.msra.mxu2 %v212_v8  ;;  %v149_v15 = vld [vmem:[%s5616_s0 + $0x418] sm:$0xff]  ;;  %v82_v16 = vld [vmem:[%s5616_s0 + $0x200] sm:$0xff]  ;;  %v84_v17 = vld [vmem:[%s5616_s0 + $0x210] sm:$0xff] }
   0x7   :  { %438 = vmatpush.msra.mxu1 %v211_v10  ;;  %478 = vmatpush.msra.mxu3 %v213_v13  ;;  %v83_v18 = vld [vmem:[%s5616_s0 + $0x208] sm:$0xff]  ;;  %v85_v19 = vld [vmem:[%s5616_s0 + $0x218] sm:$0xff]  ;;  %v18_v20 = vld [vmem:[%s5616_s0] sm:$0xff] }
   0x8   :  { %419 = vmatpush.msra.mxu0 %v146_v11  ;;  %459 = vmatpush.msra.mxu2 %v148_v12  ;;  %v20_v21 = vld [vmem:[%s5616_s0 + $0x10] sm:$0xff]  ;;  %v342_v22 = vld [vmem:[%s5616_s0 + $0xa20] sm:$0xff]  ;;  %v19_v24 = vld [vmem:[%s5616_s0 + $0x8] sm:$0xff] }
   0x9   :  { %439 = vmatpush.msra.mxu1 %v147_v14  ;;  %479 = vmatpush.msra.mxu3 %v149_v15  ;;  %v344_v23 = vld [vmem:[%s5616_s0 + $0xa30] sm:$0xff]  ;;  %v21_v25 = vld [vmem:[%s5616_s0 + $0x18] sm:$0xff]  ;;  %v278_v26 = vld [vmem:[%s5616_s0 + $0x820] sm:$0xff] }
   0xa   :  { %420 = vmatpush.msra.mxu0 %v82_v16  ;;  %460 = vmatpush.msra.mxu2 %v84_v17  ;;  %v343_v27 = vld [vmem:[%s5616_s0 + $0xa28] sm:$0xff]  ;;  %v280_v28 = vld [vmem:[%s5616_s0 + $0x830] sm:$0xff]  ;;  %v345_v29 = vld [vmem:[%s5616_s0 + $0xa38] sm:$0xff] }
   0xb   :  { %440 = vmatpush.msra.mxu1 %v83_v18  ;;  %480 = vmatpush.msra.mxu3 %v85_v19  ;;  %v214_v30 = vld [vmem:[%s5616_s0 + $0x620] sm:$0xff]  ;;  %v279_v31 = vld [vmem:[%s5616_s0 + $0x828] sm:$0xff]  ;;  %v216_v32 = vld [vmem:[%s5616_s0 + $0x630] sm:$0xff] }
   0xc   :  { %421 = vmatpush.msra.mxu0 %v18_v20  ;;  %461 = vmatpush.msra.mxu2 %v20_v21  ;;  %v281_v33 = vld [vmem:[%s5616_s0 + $0x838] sm:$0xff]  ;;  %v150_v34 = vld [vmem:[%s5616_s0 + $0x420] sm:$0xff]  ;;  %v215_v35 = vld [vmem:[%s5616_s0 + $0x628] sm:$0xff] }
   0xd   :  { %441 = vmatpush.msra.mxu1 %v19_v24  ;;  %481 = vmatpush.msra.mxu3 %v21_v25  ;;  %v152_v36 = vld [vmem:[%s5616_s0 + $0x430] sm:$0xff]  ;;  %v217_v37 = vld [vmem:[%s5616_s0 + $0x638] sm:$0xff]  ;;  %v86_v38 = vld [vmem:[%s5616_s0 + $0x220] sm:$0xff] }
   0xe   :  { %496 = vmatpush.msrb.mxu0 %v342_v22  ;;  %536 = vmatpush.msrb.mxu2 %v344_v23  ;;  %v151_v39 = vld [vmem:[%s5616_s0 + $0x428] sm:$0xff]  ;;  %v88_v40 = vld [vmem:[%s5616_s0 + $0x230] sm:$0xff]  ;;  %v153_v41 = vld [vmem:[%s5616_s0 + $0x438] sm:$0xff] }
   0xf   :  { %516 = vmatpush.msrb.mxu1 %v343_v27  ;;  %556 = vmatpush.msrb.mxu3 %v345_v29  ;;  %v2776_v42 = vld [vmem:[%s5617_s1] sm:$0xf]  ;;  %v87_v44 = vld [vmem:[%s5616_s0 + $0x228] sm:$0xff]  ;;  %v24_v45 = vld [vmem:[%s5616_s0 + $0x30] sm:$0xff] }
  0x10   :  { %497 = vmatpush.msrb.mxu0 %v278_v26  ;;  %537 = vmatpush.msrb.mxu2 %v280_v28  ;;  %v22_v43 = vld [vmem:[%s5616_s0 + $0x20] sm:$0xff]  ;;  %v89_v46 = vld [vmem:[%s5616_s0 + $0x238] sm:$0xff]  ;;  %v348_v48 = vld [vmem:[%s5616_s0 + $0xa50] sm:$0xff] }
  0x11   :  { %517 = vmatpush.msrb.mxu1 %v279_v31  ;;  %557 = vmatpush.msrb.mxu3 %v281_v33  ;;  %v346_v47 = vld [vmem:[%s5616_s0 + $0xa40] sm:$0xff]  ;;  %v23_v49 = vld [vmem:[%s5616_s0 + $0x28] sm:$0xff]  ;;  %v25_v50 = vld [vmem:[%s5616_s0 + $0x38] sm:$0xff] }
  0x12   :  { %498 = vmatpush.msrb.mxu0 %v214_v30  ;;  %538 = vmatpush.msrb.mxu2 %v216_v32  ;;  %v282_v51 = vld [vmem:[%s5616_s0 + $0x840] sm:$0xff]  ;;  %v347_v52 = vld [vmem:[%s5616_s0 + $0xa48] sm:$0xff]  ;;  %v284_v53 = vld [vmem:[%s5616_s0 + $0x850] sm:$0xff] }
  0x13   :  { %518 = vmatpush.msrb.mxu1 %v215_v35  ;;  %558 = vmatpush.msrb.mxu3 %v217_v37  ;;  %v349_v54 = vld [vmem:[%s5616_s0 + $0xa58] sm:$0xff]  ;;  %v218_v55 = vld [vmem:[%s5616_s0 + $0x640] sm:$0xff]  ;;  %v283_v56 = vld [vmem:[%s5616_s0 + $0x848] sm:$0xff] }
  0x14   :  { %499 = vmatpush.msrb.mxu0 %v150_v34  ;;  %539 = vmatpush.msrb.mxu2 %v152_v36  ;;  %v220_v57 = vld [vmem:[%s5616_s0 + $0x650] sm:$0xff]  ;;  %v285_v58 = vld [vmem:[%s5616_s0 + $0x858] sm:$0xff]  ;;  %v154_v59 = vld [vmem:[%s5616_s0 + $0x440] sm:$0xff] }
  0x15   :  { %519 = vmatpush.msrb.mxu1 %v151_v39  ;;  %559 = vmatpush.msrb.mxu3 %v153_v41  ;;  %v219_v60 = vld [vmem:[%s5616_s0 + $0x648] sm:$0xff]  ;;  %v156_v61 = vld [vmem:[%s5616_s0 + $0x450] sm:$0xff]  ;;  %v221_v62 = vld [vmem:[%s5616_s0 + $0x658] sm:$0xff] }
  0x16   :  { %500 = vmatpush.msrb.mxu0 %v86_v38  ;;  %540 = vmatpush.msrb.mxu2 %v88_v40  ;;  %v90_v63 = vld [vmem:[%s5616_s0 + $0x240] sm:$0xff]  ;;  %v155_v0 = vld [vmem:[%s5616_s0 + $0x448] sm:$0xff]  ;;  %v92_v1 = vld [vmem:[%s5616_s0 + $0x250] sm:$0xff] }
  0x17   :  { %2553 = vmatmul.msk.f32.vlgmr.msra.gmra.mxu2 %vm402_vm0, %v2776_v42  ;;  %520 = vmatpush.msrb.mxu1 %v87_v44  ;;  %v157_v2 = vld [vmem:[%s5616_s0 + $0x458] sm:$0xff]  ;;  %v26_v3 = vld [vmem:[%s5616_s0 + $0x40] sm:$0xff]  ;;  %v91_v4 = vld [vmem:[%s5616_s0 + $0x248] sm:$0xff] }
  0x18   :  { %501 = vmatpush.msrb.mxu0 %v22_v43  ;;  %541 = vmatpush.msrb.mxu2 %v24_v45  ;;  %v28_v5 = vld [vmem:[%s5616_s0 + $0x50] sm:$0xff]  ;;  %v93_v6 = vld [vmem:[%s5616_s0 + $0x258] sm:$0xff]  ;;  %v350_v7 = vld [vmem:[%s5616_s0 + $0xa60] sm:$0xff] }
  0x19   :  { %560 = vmatpush.msrb.mxu3 %v89_v46  ;;  %2551 = vmatmul.msk.f32.vlgmr.msra.gmra.mxu0 %vm402_vm0, %v2776_v42  ;;  %v352_v8 = vld [vmem:[%s5616_s0 + $0xa70] sm:$0xff]  ;;  %v27_v9 = vld [vmem:[%s5616_s0 + $0x48] sm:$0xff]  ;;  %v29_v10 = vld [vmem:[%s5616_s0 + $0x58] sm:$0xff] }
  0x1a   :  { %2554 = vmatmul.msk.f32.vlgmr.msra.gmra.mxu3 %vm402_vm0, %v2776_v42  ;;  %576 = vmatpush.msra.mxu0 %v346_v47  ;;  %v286_v11 = vld [vmem:[%s5616_s0 + $0x860] sm:$0xff]  ;;  %v351_v12 = vld [vmem:[%s5616_s0 + $0xa68] sm:$0xff]  ;;  %v288_v13 = vld [vmem:[%s5616_s0 + $0x870] sm:$0xff] }
  0x1b   :  { %616 = vmatpush.msra.mxu2 %v348_v48  ;;  %521 = vmatpush.msrb.mxu1 %v23_v49  ;;  %v353_v14 = vld [vmem:[%s5616_s0 + $0xa78] sm:$0xff]  ;;  %v222_v15 = vld [vmem:[%s5616_s0 + $0x660] sm:$0xff]  ;;  %v287_v16 = vld [vmem:[%s5616_s0 + $0x868] sm:$0xff] }
  0x1c   :  { %561 = vmatpush.msrb.mxu3 %v25_v50  ;;  %2552 = vmatmul.msk.f32.vlgmr.msra.gmra.mxu1 %vm402_vm0, %v2776_v42  ;;  %v224_v17 = vld [vmem:[%s5616_s0 + $0x670] sm:$0xff]  ;;  %v289_v18 = vld [vmem:[%s5616_s0 + $0x878] sm:$0xff]  ;;  %v158_v19 = vld [vmem:[%s5616_s0 + $0x460] sm:$0xff] }
  0x1d   :  { %577 = vmatpush.msra.mxu0 %v282_v51  ;;  %596 = vmatpush.msra.mxu1 %v347_v52  ;;  %v223_v20 = vld [vmem:[%s5616_s0 + $0x668] sm:$0xff]  ;;  %v160_v21 = vld [vmem:[%s5616_s0 + $0x470] sm:$0xff]  ;;  %v225_v22 = vld [vmem:[%s5616_s0 + $0x678] sm:$0xff] }
  0x1e   :  { %617 = vmatpush.msra.mxu2 %v284_v53  ;;  %636 = vmatpush.msra.mxu3 %v349_v54  ;;  %v94_v23 = vld [vmem:[%s5616_s0 + $0x260] sm:$0xff]  ;;  %v159_v24 = vld [vmem:[%s5616_s0 + $0x468] sm:$0xff]  ;;  %v96_v25 = vld [vmem:[%s5616_s0 + $0x270] sm:$0xff] }
  0x1f   :  { %578 = vmatpush.msra.mxu0 %v218_v55  ;;  %597 = vmatpush.msra.mxu1 %v283_v56  ;;  %v161_v26 = vld [vmem:[%s5616_s0 + $0x478] sm:$0xff]  ;;  %v30_v27 = vld [vmem:[%s5616_s0 + $0x60] sm:$0xff]  ;;  %v95_v28 = vld [vmem:[%s5616_s0 + $0x268] sm:$0xff] }
  0x20   :  { %618 = vmatpush.msra.mxu2 %v220_v57  ;;  %637 = vmatpush.msra.mxu3 %v285_v58  ;;  %v32_v29 = vld [vmem:[%s5616_s0 + $0x70] sm:$0xff]  ;;  %v97_v30 = vld [vmem:[%s5616_s0 + $0x278] sm:$0xff]  ;;  %v354_v31 = vld [vmem:[%s5616_s0 + $0xa80] sm:$0xff] }
  0x21   :  { %2557 = vmatmul.msk.f32.vlgmr.msrb.gmra.mxu2 %vm402_vm0, %v2776_v42  ;;  %579 = vmatpush.msra.mxu0 %v154_v59  ;;  %v356_v32 = vld [vmem:[%s5616_s0 + $0xa90] sm:$0xff]  ;;  %v31_v33 = vld [vmem:[%s5616_s0 + $0x68] sm:$0xff]  ;;  %v33_v34 = vld [vmem:[%s5616_s0 + $0x78] sm:$0xff] }
  0x22   :  { %598 = vmatpush.msra.mxu1 %v219_v60  ;;  %619 = vmatpush.msra.mxu2 %v156_v61  ;;  %v290_v35 = vld [vmem:[%s5616_s0 + $0x880] sm:$0xff]  ;;  %v355_v36 = vld [vmem:[%s5616_s0 + $0xa88] sm:$0xff]  ;;  %v292_v37 = vld [vmem:[%s5616_s0 + $0x890] sm:$0xff] }
  0x23   :  { %638 = vmatpush.msra.mxu3 %v221_v62  ;;  %2555 = vmatmul.msk.f32.vlgmr.msrb.gmra.mxu0 %vm402_vm0, %v2776_v42  ;;  %v357_v38 = vld [vmem:[%s5616_s0 + $0xa98] sm:$0xff]  ;;  %v226_v39 = vld [vmem:[%s5616_s0 + $0x680] sm:$0xff]  ;;  %v291_v40 = vld [vmem:[%s5616_s0 + $0x888] sm:$0xff] }
  0x24   :  { %2558 = vmatmul.msk.f32.vlgmr.msrb.gmra.mxu3 %vm402_vm0, %v2776_v42  ;;  %580 = vmatpush.msra.mxu0 %v90_v63  ;;  %v228_v41 = vld [vmem:[%s5616_s0 + $0x690] sm:$0xff]  ;;  %v293_v43 = vld [vmem:[%s5616_s0 + $0x898] sm:$0xff]  ;;  %v162_v44 = vld [vmem:[%s5616_s0 + $0x480] sm:$0xff] }
  0x25   :  { %599 = vmatpush.msra.mxu1 %v155_v0  ;;  %620 = vmatpush.msra.mxu2 %v92_v1  ;;  %v227_v45 = vld [vmem:[%s5616_s0 + $0x688] sm:$0xff]  ;;  %v164_v46 = vld [vmem:[%s5616_s0 + $0x490] sm:$0xff]  ;;  %v229_v47 = vld [vmem:[%s5616_s0 + $0x698] sm:$0xff] }
  0x26   :  { %639 = vmatpush.msra.mxu3 %v157_v2  ;;  %2556 = vmatmul.msk.f32.vlgmr.msrb.gmra.mxu1 %vm402_vm0, %v2776_v42  ;;  %v98_v48 = vld [vmem:[%s5616_s0 + $0x280] sm:$0xff]  ;;  %v163_v49 = vld [vmem:[%s5616_s0 + $0x488] sm:$0xff]  ;;  %v100_v50 = vld [vmem:[%s5616_s0 + $0x290] sm:$0xff] }
  0x27   :  { %581 = vmatpush.msra.mxu0 %v26_v3  ;;  %600 = vmatpush.msra.mxu1 %v91_v4  ;;  %v165_v51 = vld [vmem:[%s5616_s0 + $0x498] sm:$0xff]  ;;  %v34_v52 = vld [vmem:[%s5616_s0 + $0x80] sm:$0xff]  ;;  %v99_v53 = vld [vmem:[%s5616_s0 + $0x288] sm:$0xff] }
  0x28   :  { %621 = vmatpush.msra.mxu2 %v28_v5  ;;  %640 = vmatpush.msra.mxu3 %v93_v6  ;;  %v36_v54 = vld [vmem:[%s5616_s0 + $0x90] sm:$0xff]  ;;  %v101_v55 = vld [vmem:[%s5616_s0 + $0x298] sm:$0xff]  ;;  %v358_v56 = vld [vmem:[%s5616_s0 + $0xaa0] sm:$0xff] }
  0x29   :  { %656 = vmatpush.msrb.mxu0 %v350_v7  ;;  %601 = vmatpush.msra.mxu1 %v27_v9  ;;  %v360_v57 = vld [vmem:[%s5616_s0 + $0xab0] sm:$0xff]  ;;  %v35_v58 = vld [vmem:[%s5616_s0 + $0x88] sm:$0xff]  ;;  %v37_v59 = vld [vmem:[%s5616_s0 + $0x98] sm:$0xff] }
  0x2a   :  { %696 = vmatpush.msrb.mxu2 %v352_v8  ;;  %641 = vmatpush.msra.mxu3 %v29_v10  ;;  %v294_v60 = vld [vmem:[%s5616_s0 + $0x8a0] sm:$0xff]  ;;  %v359_v61 = vld [vmem:[%s5616_s0 + $0xaa8] sm:$0xff]  ;;  %v296_v62 = vld [vmem:[%s5616_s0 + $0x8b0] sm:$0xff] }
  0x2b   :  { %657 = vmatpush.msrb.mxu0 %v286_v11  ;;  %676 = vmatpush.msrb.mxu1 %v351_v12  ;;  %v361_v63 = vld [vmem:[%s5616_s0 + $0xab8] sm:$0xff]  ;;  %v230_v0 = vld [vmem:[%s5616_s0 + $0x6a0] sm:$0xff]  ;;  %v295_v1 = vld [vmem:[%s5616_s0 + $0x8a8] sm:$0xff] }
  0x2c   :  { %697 = vmatpush.msrb.mxu2 %v288_v13  ;;  %716 = vmatpush.msrb.mxu3 %v353_v14  ;;  %v232_v2 = vld [vmem:[%s5616_s0 + $0x6b0] sm:$0xff]  ;;  %v297_v3 = vld [vmem:[%s5616_s0 + $0x8b8] sm:$0xff]  ;;  %v166_v4 = vld [vmem:[%s5616_s0 + $0x4a0] sm:$0xff] }
  0x2d   :  { %2561 = vmatmul.msk.f32.vlgmr.msra.gmra.mxu2 %vm402_vm0, %v2776_v42  ;;  %658 = vmatpush.msrb.mxu0 %v222_v15  ;;  %v231_v5 = vld [vmem:[%s5616_s0 + $0x6a8] sm:$0xff]  ;;  %v168_v6 = vld [vmem:[%s5616_s0 + $0x4b0] sm:$0xff]  ;;  %v233_v7 = vld [vmem:[%s5616_s0 + $0x6b8] sm:$0xff] }
  0x2e   :  { %677 = vmatpush.msrb.mxu1 %v287_v16  ;;  %698 = vmatpush.msrb.mxu2 %v224_v17  ;;  %v102_v8 = vld [vmem:[%s5616_s0 + $0x2a0] sm:$0xff]  ;;  %v167_v9 = vld [vmem:[%s5616_s0 + $0x4a8] sm:$0xff]  ;;  %v104_v10 = vld [vmem:[%s5616_s0 + $0x2b0] sm:$0xff] }
  0x2f   :  { %717 = vmatpush.msrb.mxu3 %v289_v18  ;;  %2559 = vmatmul.msk.f32.vlgmr.msra.gmra.mxu0 %vm402_vm0, %v2776_v42  ;;  %v169_v11 = vld [vmem:[%s5616_s0 + $0x4b8] sm:$0xff]  ;;  %v38_v12 = vld [vmem:[%s5616_s0 + $0xa0] sm:$0xff]  ;;  %v103_v13 = vld [vmem:[%s5616_s0 + $0x2a8] sm:$0xff] }
  0x30   :  { %2562 = vmatmul.msk.f32.vlgmr.msra.gmra.mxu3 %vm402_vm0, %v2776_v42  ;;  %659 = vmatpush.msrb.mxu0 %v158_v19  ;;  %v40_v14 = vld [vmem:[%s5616_s0 + $0xb0] sm:$0xff]  ;;  %v105_v15 = vld [vmem:[%s5616_s0 + $0x2b8] sm:$0xff]  ;;  %v362_v16 = vld [vmem:[%s5616_s0 + $0xac0] sm:$0xff] }
  0x31   :  { %678 = vmatpush.msrb.mxu1 %v223_v20  ;;  %699 = vmatpush.msrb.mxu2 %v160_v21  ;;  %v364_v17 = vld [vmem:[%s5616_s0 + $0xad0] sm:$0xff]  ;;  %v39_v18 = vld [vmem:[%s5616_s0 + $0xa8] sm:$0xff]  ;;  %v41_v19 = vld [vmem:[%s5616_s0 + $0xb8] sm:$0xff] }
  0x32   :  { %718 = vmatpush.msrb.mxu3 %v225_v22  ;;  %2560 = vmatmul.msk.f32.vlgmr.msra.gmra.mxu1 %vm402_vm0, %v2776_v42  ;;  %v298_v20 = vld [vmem:[%s5616_s0 + $0x8c0] sm:$0xff]  ;;  %v363_v21 = vld [vmem:[%s5616_s0 + $0xac8] sm:$0xff]  ;;  %v300_v22 = vld [vmem:[%s5616_s0 + $0x8d0] sm:$0xff] }
  0x33   :  { %660 = vmatpush.msrb.mxu0 %v94_v23  ;;  %679 = vmatpush.msrb.mxu1 %v159_v24  ;;  %v365_v23 = vld [vmem:[%s5616_s0 + $0xad8] sm:$0xff]  ;;  %v234_v24 = vld [vmem:[%s5616_s0 + $0x6c0] sm:$0xff] }
  0x34   :  { %700 = vmatpush.msrb.mxu2 %v96_v25  ;;  %719 = vmatpush.msrb.mxu3 %v161_v26  ;;  %v299_v25 = vld [vmem:[%s5616_s0 + $0x8c8] sm:$0xff]  ;;  %v236_v26 = vld [vmem:[%s5616_s0 + $0x6d0] sm:$0xff] }
  0x35   :  { %661 = vmatpush.msrb.mxu0 %v30_v27  ;;  %680 = vmatpush.msrb.mxu1 %v95_v28  ;;  %v301_v27 = vld [vmem:[%s5616_s0 + $0x8d8] sm:$0xff]  ;;  %v170_v28 = vld [vmem:[%s5616_s0 + $0x4c0] sm:$0xff] }
  0x36   :  { %701 = vmatpush.msrb.mxu2 %v32_v29  ;;  %720 = vmatpush.msrb.mxu3 %v97_v30  ;;  %v235_v29 = vld [vmem:[%s5616_s0 + $0x6c8] sm:$0xff]  ;;  %v172_v30 = vld [vmem:[%s5616_s0 + $0x4d0] sm:$0xff] }
  0x37   :  { %2565 = vmatmul.msk.f32.vlgmr.msrb.gmra.mxu2 %vm402_vm0, %v2776_v42  ;;  %736 = vmatpush.msra.mxu0 %v354_v31  ;;  %v237_v31 = vld [vmem:[%s5616_s0 + $0x6d8] sm:$0xff] }
  0x38   :  { %776 = vmatpush.msra.mxu2 %v356_v32  ;;  %681 = vmatpush.msrb.mxu1 %v31_v33  ;;  %v106_v32 = vld [vmem:[%s5616_s0 + $0x2c0] sm:$0xff]  ;;  %v171_v33 = vld [vmem:[%s5616_s0 + $0x4c8] sm:$0xff] }
  0x39   :  { %721 = vmatpush.msrb.mxu3 %v33_v34  ;;  %2563 = vmatmul.msk.f32.vlgmr.msrb.gmra.mxu0 %vm402_vm0, %v2776_v42  ;;  %v108_v34 = vld [vmem:[%s5616_s0 + $0x2d0] sm:$0xff] }
  0x3a   :  { %2566 = vmatmul.msk.f32.vlgmr.msrb.gmra.mxu3 %vm402_vm0, %v2776_v42  ;;  %737 = vmatpush.msra.mxu0 %v290_v35  ;;  %v173_v35 = vld [vmem:[%s5616_s0 + $0x4d8] sm:$0xff] }
  0x3b   :  { %756 = vmatpush.msra.mxu1 %v355_v36  ;;  %777 = vmatpush.msra.mxu2 %v292_v37  ;;  %v42_v36 = vld [vmem:[%s5616_s0 + $0xc0] sm:$0xff]  ;;  %v107_v37 = vld [vmem:[%s5616_s0 + $0x2c8] sm:$0xff] }
  0x3c   :  { %796 = vmatpush.msra.mxu3 %v357_v38  ;;  %2564 = vmatmul.msk.f32.vlgmr.msrb.gmra.mxu1 %vm402_vm0, %v2776_v42  ;;  %v44_v38 = vld [vmem:[%s5616_s0 + $0xd0] sm:$0xff] }
  0x3d   :  { %738 = vmatpush.msra.mxu0 %v226_v39  ;;  %757 = vmatpush.msra.mxu1 %v291_v40  ;;  %v109_v39 = vld [vmem:[%s5616_s0 + $0x2d8] sm:$0xff]  ;;  %v366_v40 = vld [vmem:[%s5616_s0 + $0xae0] sm:$0xff] }
  0x3e   :  { %778 = vmatpush.msra.mxu2 %v228_v41  ;;  %797 = vmatpush.msra.mxu3 %v293_v43  ;;  %v368_v41 = vld [vmem:[%s5616_s0 + $0xaf0] sm:$0xff]  ;;  %v43_v43 = vld [vmem:[%s5616_s0 + $0xc8] sm:$0xff] }
  0x3f   :  { %739 = vmatpush.msra.mxu0 %v162_v44  ;;  %758 = vmatpush.msra.mxu1 %v227_v45  ;;  %v45_v44 = vld [vmem:[%s5616_s0 + $0xd8] sm:$0xff]  ;;  %v302_v45 = vld [vmem:[%s5616_s0 + $0x8e0] sm:$0xff] }
  0x40   :  { %779 = vmatpush.msra.mxu2 %v164_v46  ;;  %798 = vmatpush.msra.mxu3 %v229_v47  ;;  %v367_v46 = vld [vmem:[%s5616_s0 + $0xae8] sm:$0xff]  ;;  %v304_v47 = vld [vmem:[%s5616_s0 + $0x8f0] sm:$0xff] }
  0x41   :  { %740 = vmatpush.msra.mxu0 %v98_v48  ;;  %759 = vmatpush.msra.mxu1 %v163_v49  ;;  %v369_v48 = vld [vmem:[%s5616_s0 + $0xaf8] sm:$0xff]  ;;  %v238_v49 = vld [vmem:[%s5616_s0 + $0x6e0] sm:$0xff] }
  0x42   :  { %780 = vmatpush.msra.mxu2 %v100_v50  ;;  %799 = vmatpush.msra.mxu3 %v165_v51  ;;  %v303_v50 = vld [vmem:[%s5616_s0 + $0x8e8] sm:$0xff]  ;;  %v240_v51 = vld [vmem:[%s5616_s0 + $0x6f0] sm:$0xff] }
  0x43   :  { %741 = vmatpush.msra.mxu0 %v34_v52  ;;  %760 = vmatpush.msra.mxu1 %v99_v53  ;;  %v305_v52 = vld [vmem:[%s5616_s0 + $0x8f8] sm:$0xff]  ;;  %v174_v53 = vld [vmem:[%s5616_s0 + $0x4e0] sm:$0xff] }
  0x44   :  { %781 = vmatpush.msra.mxu2 %v36_v54  ;;  %800 = vmatpush.msra.mxu3 %v101_v55  ;;  %v239_v54 = vld [vmem:[%s5616_s0 + $0x6e8] sm:$0xff]  ;;  %v176_v55 = vld [vmem:[%s5616_s0 + $0x4f0] sm:$0xff] }
  0x45   :  { %2567 = vmatmul.msk.f32.vlgmr.msra.gmra.mxu0 %vm402_vm0, %v2776_v42  ;;  %2569 = vmatmul.msk.f32.vlgmr.msra.gmra.mxu2 %vm402_vm0, %v2776_v42 }
  0x46   :  { %816 = vmatpush.msrb.mxu0 %v358_v56  ;;  %856 = vmatpush.msrb.mxu2 %v360_v57  ;;  %v241_v56 = vld [vmem:[%s5616_s0 + $0x6f8] sm:$0xff]  ;;  %v110_v57 = vld [vmem:[%s5616_s0 + $0x2e0] sm:$0xff] }
  0x47   :  { %761 = vmatpush.msra.mxu1 %v35_v58  ;;  %801 = vmatpush.msra.mxu3 %v37_v59  ;;  %v175_v58 = vld [vmem:[%s5616_s0 + $0x4e8] sm:$0xff]  ;;  %v112_v59 = vld [vmem:[%s5616_s0 + $0x2f0] sm:$0xff] }
  0x48   :  { %2568 = vmatmul.msk.f32.vlgmr.msra.gmra.mxu1 %vm402_vm0, %v2776_v42  ;;  %2570 = vmatmul.msk.f32.vlgmr.msra.gmra.mxu3 %vm402_vm0, %v2776_v42 }
  0x49   :  { %817 = vmatpush.msrb.mxu0 %v294_v60  ;;  %836 = vmatpush.msrb.mxu1 %v359_v61  ;;  %v177_v60 = vld [vmem:[%s5616_s0 + $0x4f8] sm:$0xff]  ;;  %v46_v61 = vld [vmem:[%s5616_s0 + $0xe0] sm:$0xff] }
  0x4a   :  { %857 = vmatpush.msrb.mxu2 %v296_v62  ;;  %876 = vmatpush.msrb.mxu3 %v361_v63  ;;  %v111_v62 = vld [vmem:[%s5616_s0 + $0x2e8] sm:$0xff]  ;;  %v48_v63 = vld [vmem:[%s5616_s0 + $0xf0] sm:$0xff] }
  0x4b   :  { %818 = vmatpush.msrb.mxu0 %v230_v0  ;;  %837 = vmatpush.msrb.mxu1 %v295_v1  ;;  %v113_v0 = vld [vmem:[%s5616_s0 + $0x2f8] sm:$0xff]  ;;  %v370_v1 = vld [vmem:[%s5616_s0 + $0xb00] sm:$0xff] }
  0x4c   :  { %858 = vmatpush.msrb.mxu2 %v232_v2  ;;  %877 = vmatpush.msrb.mxu3 %v297_v3  ;;  %v372_v2 = vld [vmem:[%s5616_s0 + $0xb10] sm:$0xff]  ;;  %v47_v3 = vld [vmem:[%s5616_s0 + $0xe8] sm:$0xff] }
  0x4d   :  { %819 = vmatpush.msrb.mxu0 %v166_v4  ;;  %838 = vmatpush.msrb.mxu1 %v231_v5  ;;  %v49_v4 = vld [vmem:[%s5616_s0 + $0xf8] sm:$0xff]  ;;  %v306_v5 = vld [vmem:[%s5616_s0 + $0x900] sm:$0xff] }
  0x4e   :  { %859 = vmatpush.msrb.mxu2 %v168_v6  ;;  %878 = vmatpush.msrb.mxu3 %v233_v7  ;;  %v371_v6 = vld [vmem:[%s5616_s0 + $0xb08] sm:$0xff]  ;;  %v308_v7 = vld [vmem:[%s5616_s0 + $0x910] sm:$0xff] }
  0x4f   :  { %820 = vmatpush.msrb.mxu0 %v102_v8  ;;  %839 = vmatpush.msrb.mxu1 %v167_v9  ;;  %v373_v8 = vld [vmem:[%s5616_s0 + $0xb18] sm:$0xff]  ;;  %v242_v9 = vld [vmem:[%s5616_s0 + $0x700] sm:$0xff] }
  0x50   :  { %860 = vmatpush.msrb.mxu2 %v104_v10  ;;  %879 = vmatpush.msrb.mxu3 %v169_v11  ;;  %v307_v10 = vld [vmem:[%s5616_s0 + $0x908] sm:$0xff]  ;;  %v244_v11 = vld [vmem:[%s5616_s0 + $0x710] sm:$0xff] }
  0x51   :  { %821 = vmatpush.msrb.mxu0 %v38_v12  ;;  %840 = vmatpush.msrb.mxu1 %v103_v13  ;;  %v309_v12 = vld [vmem:[%s5616_s0 + $0x918] sm:$0xff]  ;;  %v178_v13 = vld [vmem:[%s5616_s0 + $0x500] sm:$0xff] }
  0x52   :  { %861 = vmatpush.msrb.mxu2 %v40_v14  ;;  %880 = vmatpush.msrb.mxu3 %v105_v15  ;;  %v243_v14 = vld [vmem:[%s5616_s0 + $0x708] sm:$0xff]  ;;  %v180_v15 = vld [vmem:[%s5616_s0 + $0x510] sm:$0xff] }
  0x53   :  { %2571 = vmatmul.msk.f32.vlgmr.msrb.gmra.mxu0 %vm402_vm0, %v2776_v42  ;;  %2573 = vmatmul.msk.f32.vlgmr.msrb.gmra.mxu2 %vm402_vm0, %v2776_v42 }
  0x54   :  { %896 = vmatpush.msra.mxu0 %v362_v16  ;;  %936 = vmatpush.msra.mxu2 %v364_v17  ;;  %v245_v16 = vld [vmem:[%s5616_s0 + $0x718] sm:$0xff]  ;;  %v114_v17 = vld [vmem:[%s5616_s0 + $0x300] sm:$0xff] }
  0x55   :  { %841 = vmatpush.msrb.mxu1 %v39_v18  ;;  %881 = vmatpush.msrb.mxu3 %v41_v19  ;;  %v179_v18 = vld [vmem:[%s5616_s0 + $0x508] sm:$0xff]  ;;  %v116_v19 = vld [vmem:[%s5616_s0 + $0x310] sm:$0xff] }
  0x56   :  { %2572 = vmatmul.msk.f32.vlgmr.msrb.gmra.mxu1 %vm402_vm0, %v2776_v42  ;;  %2574 = vmatmul.msk.f32.vlgmr.msrb.gmra.mxu3 %vm402_vm0, %v2776_v42 }
  0x57   :  { %897 = vmatpush.msra.mxu0 %v298_v20  ;;  %916 = vmatpush.msra.mxu1 %v363_v21  ;;  %v181_v20 = vld [vmem:[%s5616_s0 + $0x518] sm:$0xff]  ;;  %v50_v21 = vld [vmem:[%s5616_s0 + $0x100] sm:$0xff] }
  0x58   :  { %937 = vmatpush.msra.mxu2 %v300_v22  ;;  %956 = vmatpush.msra.mxu3 %v365_v23  ;;  %v115_v22 = vld [vmem:[%s5616_s0 + $0x308] sm:$0xff]  ;;  %v52_v23 = vld [vmem:[%s5616_s0 + $0x110] sm:$0xff] }
  0x59   :  { %898 = vmatpush.msra.mxu0 %v234_v24  ;;  %917 = vmatpush.msra.mxu1 %v299_v25  ;;  %v117_v24 = vld [vmem:[%s5616_s0 + $0x318] sm:$0xff]  ;;  %v374_v25 = vld [vmem:[%s5616_s0 + $0xb20] sm:$0xff] }
  0x5a   :  { %938 = vmatpush.msra.mxu2 %v236_v26  ;;  %957 = vmatpush.msra.mxu3 %v301_v27  ;;  %v376_v26 = vld [vmem:[%s5616_s0 + $0xb30] sm:$0xff]  ;;  %v51_v27 = vld [vmem:[%s5616_s0 + $0x108] sm:$0xff] }
  0x5b   :  { %899 = vmatpush.msra.mxu0 %v170_v28  ;;  %918 = vmatpush.msra.mxu1 %v235_v29  ;;  %v53_v28 = vld [vmem:[%s5616_s0 + $0x118] sm:$0xff]  ;;  %v310_v29 = vld [vmem:[%s5616_s0 + $0x920] sm:$0xff] }
  0x5c   :  { %939 = vmatpush.msra.mxu2 %v172_v30  ;;  %958 = vmatpush.msra.mxu3 %v237_v31  ;;  %v375_v30 = vld [vmem:[%s5616_s0 + $0xb28] sm:$0xff]  ;;  %v312_v31 = vld [vmem:[%s5616_s0 + $0x930] sm:$0xff] }
  0x5d   :  { %900 = vmatpush.msra.mxu0 %v106_v32  ;;  %919 = vmatpush.msra.mxu1 %v171_v33  ;;  %v377_v32 = vld [vmem:[%s5616_s0 + $0xb38] sm:$0xff]  ;;  %v246_v33 = vld [vmem:[%s5616_s0 + $0x720] sm:$0xff] }
  0x5e   :  { %940 = vmatpush.msra.mxu2 %v108_v34  ;;  %959 = vmatpush.msra.mxu3 %v173_v35  ;;  %v311_v34 = vld [vmem:[%s5616_s0 + $0x928] sm:$0xff]  ;;  %v248_v35 = vld [vmem:[%s5616_s0 + $0x730] sm:$0xff] }
  0x5f   :  { %901 = vmatpush.msra.mxu0 %v42_v36  ;;  %920 = vmatpush.msra.mxu1 %v107_v37  ;;  %v313_v36 = vld [vmem:[%s5616_s0 + $0x938] sm:$0xff]  ;;  %v182_v37 = vld [vmem:[%s5616_s0 + $0x520] sm:$0xff] }
  0x60   :  { %941 = vmatpush.msra.mxu2 %v44_v38  ;;  %960 = vmatpush.msra.mxu3 %v109_v39  ;;  %v247_v38 = vld [vmem:[%s5616_s0 + $0x728] sm:$0xff]  ;;  %v184_v39 = vld [vmem:[%s5616_s0 + $0x530] sm:$0xff] }
  0x61   :  { %2575 = vmatmul.msk.f32.vlgmr.msra.gmra.mxu0 %vm402_vm0, %v2776_v42  ;;  %2577 = vmatmul.msk.f32.vlgmr.msra.gmra.mxu2 %vm402_vm0, %v2776_v42 }
  0x62   :  { %976 = vmatpush.msrb.mxu0 %v366_v40  ;;  %1016 = vmatpush.msrb.mxu2 %v368_v41  ;;  %v249_v40 = vld [vmem:[%s5616_s0 + $0x738] sm:$0xff]  ;;  %v118_v41 = vld [vmem:[%s5616_s0 + $0x320] sm:$0xff] }
  0x63   :  { %921 = vmatpush.msra.mxu1 %v43_v43  ;;  %961 = vmatpush.msra.mxu3 %v45_v44  ;;  %v183_v43 = vld [vmem:[%s5616_s0 + $0x528] sm:$0xff]  ;;  %v120_v44 = vld [vmem:[%s5616_s0 + $0x330] sm:$0xff] }
  0x64   :  { %2576 = vmatmul.msk.f32.vlgmr.msra.gmra.mxu1 %vm402_vm0, %v2776_v42  ;;  %2578 = vmatmul.msk.f32.vlgmr.msra.gmra.mxu3 %vm402_vm0, %v2776_v42 }
  0x65   :  { %977 = vmatpush.msrb.mxu0 %v302_v45  ;;  %996 = vmatpush.msrb.mxu1 %v367_v46  ;;  %v185_v45 = vld [vmem:[%s5616_s0 + $0x538] sm:$0xff]  ;;  %v54_v46 = vld [vmem:[%s5616_s0 + $0x120] sm:$0xff] }
  0x66   :  { %1017 = vmatpush.msrb.mxu2 %v304_v47  ;;  %1036 = vmatpush.msrb.mxu3 %v369_v48  ;;  %v119_v47 = vld [vmem:[%s5616_s0 + $0x328] sm:$0xff]  ;;  %v56_v48 = vld [vmem:[%s5616_s0 + $0x130] sm:$0xff] }
  0x67   :  { %978 = vmatpush.msrb.mxu0 %v238_v49  ;;  %997 = vmatpush.msrb.mxu1 %v303_v50  ;;  %v121_v49 = vld [vmem:[%s5616_s0 + $0x338] sm:$0xff]  ;;  %v378_v50 = vld [vmem:[%s5616_s0 + $0xb40] sm:$0xff] }
  0x68   :  { %1018 = vmatpush.msrb.mxu2 %v240_v51  ;;  %1037 = vmatpush.msrb.mxu3 %v305_v52  ;;  %v380_v51 = vld [vmem:[%s5616_s0 + $0xb50] sm:$0xff]  ;;  %v55_v52 = vld [vmem:[%s5616_s0 + $0x128] sm:$0xff] }
  0x69   :  { %979 = vmatpush.msrb.mxu0 %v174_v53  ;;  %998 = vmatpush.msrb.mxu1 %v239_v54  ;;  %v57_v53 = vld [vmem:[%s5616_s0 + $0x138] sm:$0xff]  ;;  %v314_v54 = vld [vmem:[%s5616_s0 + $0x940] sm:$0xff] }
  0x6a   :  { %1019 = vmatpush.msrb.mxu2 %v176_v55  ;;  %1038 = vmatpush.msrb.mxu3 %v241_v56  ;;  %v379_v55 = vld [vmem:[%s5616_s0 + $0xb48] sm:$0xff]  ;;  %v316_v56 = vld [vmem:[%s5616_s0 + $0x950] sm:$0xff] }
  0x6b   :  { %980 = vmatpush.msrb.mxu0 %v110_v57  ;;  %999 = vmatpush.msrb.mxu1 %v175_v58  ;;  %v381_v57 = vld [vmem:[%s5616_s0 + $0xb58] sm:$0xff]  ;;  %v250_v58 = vld [vmem:[%s5616_s0 + $0x740] sm:$0xff] }
  0x6c   :  { %1020 = vmatpush.msrb.mxu2 %v112_v59  ;;  %1039 = vmatpush.msrb.mxu3 %v177_v60  ;;  %v315_v59 = vld [vmem:[%s5616_s0 + $0x948] sm:$0xff]  ;;  %v252_v60 = vld [vmem:[%s5616_s0 + $0x750] sm:$0xff] }
  0x6d   :  { %981 = vmatpush.msrb.mxu0 %v46_v61  ;;  %1000 = vmatpush.msrb.mxu1 %v111_v62  ;;  %v317_v61 = vld [vmem:[%s5616_s0 + $0x958] sm:$0xff]  ;;  %v186_v62 = vld [vmem:[%s5616_s0 + $0x540] sm:$0xff] }
  0x6e   :  { %1021 = vmatpush.msrb.mxu2 %v48_v63  ;;  %1040 = vmatpush.msrb.mxu3 %v113_v0  ;;  %v251_v63 = vld [vmem:[%s5616_s0 + $0x748] sm:$0xff]  ;;  %v188_v0 = vld [vmem:[%s5616_s0 + $0x550] sm:$0xff] }
  0x6f   :  { %2579 = vmatmul.msk.f32.vlgmr.msrb.gmra.mxu0 %vm402_vm0, %v2776_v42  ;;  %2581 = vmatmul.msk.f32.vlgmr.msrb.gmra.mxu2 %vm402_vm0, %v2776_v42 }
  0x70   :  { %1056 = vmatpush.msra.mxu0 %v370_v1  ;;  %1096 = vmatpush.msra.mxu2 %v372_v2  ;;  %v253_v1 = vld [vmem:[%s5616_s0 + $0x758] sm:$0xff]  ;;  %v122_v2 = vld [vmem:[%s5616_s0 + $0x340] sm:$0xff] }
  0x71   :  { %1001 = vmatpush.msrb.mxu1 %v47_v3  ;;  %1041 = vmatpush.msrb.mxu3 %v49_v4  ;;  %v187_v3 = vld [vmem:[%s5616_s0 + $0x548] sm:$0xff]  ;;  %v124_v4 = vld [vmem:[%s5616_s0 + $0x350] sm:$0xff] }
  0x72   :  { %2580 = vmatmul.msk.f32.vlgmr.msrb.gmra.mxu1 %vm402_vm0, %v2776_v42  ;;  %2582 = vmatmul.msk.f32.vlgmr.msrb.gmra.mxu3 %vm402_vm0, %v2776_v42 }
  0x73   :  { %1057 = vmatpush.msra.mxu0 %v306_v5  ;;  %1076 = vmatpush.msra.mxu1 %v371_v6  ;;  %v189_v5 = vld [vmem:[%s5616_s0 + $0x558] sm:$0xff]  ;;  %v58_v6 = vld [vmem:[%s5616_s0 + $0x140] sm:$0xff] }
  0x74   :  { %1097 = vmatpush.msra.mxu2 %v308_v7  ;;  %1116 = vmatpush.msra.mxu3 %v373_v8  ;;  %v123_v7 = vld [vmem:[%s5616_s0 + $0x348] sm:$0xff]  ;;  %v60_v8 = vld [vmem:[%s5616_s0 + $0x150] sm:$0xff] }
  0x75   :  { %1058 = vmatpush.msra.mxu0 %v242_v9  ;;  %1077 = vmatpush.msra.mxu1 %v307_v10  ;;  %v125_v9 = vld [vmem:[%s5616_s0 + $0x358] sm:$0xff]  ;;  %v382_v10 = vld [vmem:[%s5616_s0 + $0xb60] sm:$0xff] }
  0x76   :  { %1098 = vmatpush.msra.mxu2 %v244_v11  ;;  %1117 = vmatpush.msra.mxu3 %v309_v12  ;;  %v384_v11 = vld [vmem:[%s5616_s0 + $0xb70] sm:$0xff]  ;;  %v59_v12 = vld [vmem:[%s5616_s0 + $0x148] sm:$0xff] }
  0x77   :  { %1059 = vmatpush.msra.mxu0 %v178_v13  ;;  %1078 = vmatpush.msra.mxu1 %v243_v14  ;;  %v61_v13 = vld [vmem:[%s5616_s0 + $0x158] sm:$0xff]  ;;  %v318_v14 = vld [vmem:[%s5616_s0 + $0x960] sm:$0xff] }
  0x78   :  { %1099 = vmatpush.msra.mxu2 %v180_v15  ;;  %1118 = vmatpush.msra.mxu3 %v245_v16  ;;  %v383_v15 = vld [vmem:[%s5616_s0 + $0xb68] sm:$0xff] }
  0x79   :  { %1060 = vmatpush.msra.mxu0 %v114_v17  ;;  %1079 = vmatpush.msra.mxu1 %v179_v18  ;;  %v320_v17 = vld [vmem:[%s5616_s0 + $0x970] sm:$0xff]  ;;  %v385_v18 = vld [vmem:[%s5616_s0 + $0xb78] sm:$0xff] }
  0x7a   :  { %1100 = vmatpush.msra.mxu2 %v116_v19  ;;  %1119 = vmatpush.msra.mxu3 %v181_v20  ;;  %v254_v20 = vld [vmem:[%s5616_s0 + $0x760] sm:$0xff] }
  0x7b   :  { %1061 = vmatpush.msra.mxu0 %v50_v21  ;;  %1080 = vmatpush.msra.mxu1 %v115_v22  ;;  %v319_v21 = vld [vmem:[%s5616_s0 + $0x968] sm:$0xff] }
  0x7c   :  { %1101 = vmatpush.msra.mxu2 %v52_v23  ;;  %1120 = vmatpush.msra.mxu3 %v117_v24  ;;  %v256_v23 = vld [vmem:[%s5616_s0 + $0x770] sm:$0xff] }
  0x7d   :  { %2583 = vmatmul.msk.f32.vlgmr.msra.gmra.mxu0 %vm402_vm0, %v2776_v42  ;;  %2585 = vmatmul.msk.f32.vlgmr.msra.gmra.mxu2 %vm402_vm0, %v2776_v42 }
  0x7e   :  { %1136 = vmatpush.msrb.mxu0 %v374_v25  ;;  %1176 = vmatpush.msrb.mxu2 %v376_v26  ;;  %v190_v25 = vld [vmem:[%s5616_s0 + $0x560] sm:$0xff]  ;;  %v255_v26 = vld [vmem:[%s5616_s0 + $0x768] sm:$0xff] }
  0x7f   :  { %1081 = vmatpush.msra.mxu1 %v51_v27  ;;  %1121 = vmatpush.msra.mxu3 %v53_v28 }
  0x80   :  { %2584 = vmatmul.msk.f32.vlgmr.msra.gmra.mxu1 %vm402_vm0, %v2776_v42  ;;  %2586 = vmatmul.msk.f32.vlgmr.msra.gmra.mxu3 %vm402_vm0, %v2776_v42 }
  0x81   :  { %1137 = vmatpush.msrb.mxu0 %v310_v29  ;;  %1156 = vmatpush.msrb.mxu1 %v375_v30  ;;  %v192_v29 = vld [vmem:[%s5616_s0 + $0x570] sm:$0xff]  ;;  %v257_v30 = vld [vmem:[%s5616_s0 + $0x778] sm:$0xff] }
  0x82   :  { %1177 = vmatpush.msrb.mxu2 %v312_v31  ;;  %1196 = vmatpush.msrb.mxu3 %v377_v32  ;;  %v126_v32 = vld [vmem:[%s5616_s0 + $0x360] sm:$0xff] }
  0x83   :  { %1138 = vmatpush.msrb.mxu0 %v246_v33  ;;  %1157 = vmatpush.msrb.mxu1 %v311_v34  ;;  %v191_v33 = vld [vmem:[%s5616_s0 + $0x568] sm:$0xff] }
  0x84   :  { %1178 = vmatpush.msrb.mxu2 %v248_v35  ;;  %1197 = vmatpush.msrb.mxu3 %v313_v36  ;;  %v128_v36 = vld [vmem:[%s5616_s0 + $0x370] sm:$0xff] }
  0x85   :  { %1139 = vmatpush.msrb.mxu0 %v182_v37  ;;  %1158 = vmatpush.msrb.mxu1 %v247_v38  ;;  %v193_v37 = vld [vmem:[%s5616_s0 + $0x578] sm:$0xff] }
  0x86   :  { %1179 = vmatpush.msrb.mxu2 %v184_v39  ;;  %1198 = vmatpush.msrb.mxu3 %v249_v40  ;;  %v62_v39 = vld [vmem:[%s5616_s0 + $0x160] sm:$0xff]  ;;  %v127_v40 = vld [vmem:[%s5616_s0 + $0x368] sm:$0xff] }
  0x87   :  { %1140 = vmatpush.msrb.mxu0 %v118_v41  ;;  %1159 = vmatpush.msrb.mxu1 %v183_v43  ;;  %v64_v43 = vld [vmem:[%s5616_s0 + $0x170] sm:$0xff] }
  0x88   :  { %1180 = vmatpush.msrb.mxu2 %v120_v44  ;;  %1199 = vmatpush.msrb.mxu3 %v185_v45  ;;  %v129_v44 = vld [vmem:[%s5616_s0 + $0x378] sm:$0xff] }
  0x89   :  { %1141 = vmatpush.msrb.mxu0 %v54_v46  ;;  %1160 = vmatpush.msrb.mxu1 %v119_v47  ;;  %v386_v46 = vld [vmem:[%s5616_s0 + $0xb80] sm:$0xff]  ;;  %v388_v47 = vld [vmem:[%s5616_s0 + $0xb90] sm:$0xff] }
  0x8a   :  { %1181 = vmatpush.msrb.mxu2 %v56_v48  ;;  %1200 = vmatpush.msrb.mxu3 %v121_v49  ;;  %v63_v49 = vld [vmem:[%s5616_s0 + $0x168] sm:$0xff] }
  0x8b   :  { %2587 = vmatmul.msk.f32.vlgmr.msrb.gmra.mxu0 %vm402_vm0, %v2776_v42  ;;  %2589 = vmatmul.msk.f32.vlgmr.msrb.gmra.mxu2 %vm402_vm0, %v2776_v42 }
  0x8c   :  { %1216 = vmatpush.msra.mxu0 %v378_v50  ;;  %1256 = vmatpush.msra.mxu2 %v380_v51  ;;  %v65_v50 = vld [vmem:[%s5616_s0 + $0x178] sm:$0xff] }
  0x8d   :  { %1161 = vmatpush.msrb.mxu1 %v55_v52  ;;  %1201 = vmatpush.msrb.mxu3 %v57_v53  ;;  %v3633_v52 = vld [vmem:[%s5617_s1] sm:$0xf] }
  0x8e   :  { %2588 = vmatmul.msk.f32.vlgmr.msrb.gmra.mxu1 %vm402_vm0, %v2776_v42  ;;  %2590 = vmatmul.msk.f32.vlgmr.msrb.gmra.mxu3 %vm402_vm0, %v2776_v42  ;;  %v322_v53 = vld [vmem:[%s5616_s0 + $0x980] sm:$0xff] }
  0x8f   :  { %1217 = vmatpush.msra.mxu0 %v314_v54  ;;  %1236 = vmatpush.msra.mxu1 %v379_v55  ;;  %v387_v54 = vld [vmem:[%s5616_s0 + $0xb88] sm:$0xff] }
  0x90   :  { %1257 = vmatpush.msra.mxu2 %v316_v56  ;;  %1276 = vmatpush.msra.mxu3 %v381_v57  ;;  %v324_v56 = vld [vmem:[%s5616_s0 + $0x990] sm:$0xff]  ;;  %v389_v57 = vld [vmem:[%s5616_s0 + $0xb98] sm:$0xff] }
  0x91   :  { %1218 = vmatpush.msra.mxu0 %v250_v58  ;;  %1237 = vmatpush.msra.mxu1 %v315_v59  ;;  %v258_v59 = vld [vmem:[%s5616_s0 + $0x780] sm:$0xff] }
  0x92   :  { %1258 = vmatpush.msra.mxu2 %v252_v60  ;;  %1277 = vmatpush.msra.mxu3 %v317_v61  ;;  %v323_v60 = vld [vmem:[%s5616_s0 + $0x988] sm:$0xff] }
  0x93   :  { %1219 = vmatpush.msra.mxu0 %v186_v62  ;;  %1238 = vmatpush.msra.mxu1 %v251_v63  ;;  %v260_v63 = vld [vmem:[%s5616_s0 + $0x790] sm:$0xff] }
  0x94   :  { %1259 = vmatpush.msra.mxu2 %v188_v0  ;;  %1278 = vmatpush.msra.mxu3 %v253_v1  ;;  %v325_v0 = vld [vmem:[%s5616_s0 + $0x998] sm:$0xff] }
  0x95   :  { %1220 = vmatpush.msra.mxu0 %v122_v2  ;;  %1239 = vmatpush.msra.mxu1 %v187_v3  ;;  %v194_v2 = vld [vmem:[%s5616_s0 + $0x580] sm:$0xff]  ;;  %v259_v3 = vld [vmem:[%s5616_s0 + $0x788] sm:$0xff] }
  0x96   :  { %1260 = vmatpush.msra.mxu2 %v124_v4  ;;  %1279 = vmatpush.msra.mxu3 %v189_v5  ;;  %v3540_v16 = vpop.f32.mrf.mxu0 }
  0x97   :  { %1221 = vmatpush.msra.mxu0 %v58_v6  ;;  %1240 = vmatpush.msra.mxu1 %v123_v7  ;;  %v1687_v19 = vsel %vm1686_vm1, %v3540_v16, 0.0  ;;  %v196_v6 = vld [vmem:[%s5616_s0 + $0x590] sm:$0xff]  ;;  %v261_v7 = vld [vmem:[%s5616_s0 + $0x798] sm:$0xff] }
  0x98   :  { %1261 = vmatpush.msra.mxu2 %v60_v8  ;;  %1280 = vmatpush.msra.mxu3 %v125_v9  ;;  %v130_v9 = vld [vmem:[%s5616_s0 + $0x380] sm:$0xff] }
  0x99   :  { %2591 = vmatmul.msk.f32.vlgmr.msra.gmra.mxu0 %vm402_vm0, %v2776_v42  ;;  %2593 = vmatmul.msk.f32.vlgmr.msra.gmra.mxu2 %vm402_vm0, %v2776_v42  ;;  %v3560_v22 = vpop.f32.mrf.mxu1 }
  0x9a   :  { %1296 = vmatpush.msrb.mxu0 %v382_v10  ;;  %1336 = vmatpush.msrb.mxu2 %v384_v11  ;;  %v1688_v24 = vsel %vm1686_vm1, %v3560_v22, 0.0  ;;  %v3576_v28 = vpop.f32.mrf.mxu2  ;;  %v195_v10 = vld [vmem:[%s5616_s0 + $0x588] sm:$0xff] }
  0x9b   :  { %1241 = vmatpush.msra.mxu1 %v59_v12  ;;  %1281 = vmatpush.msra.mxu3 %v61_v13  ;;  %v1689_v27 = vadd.f32 %v1688_v24, %v1687_v19  ;;  %v1690_v31 = vsel %vm1686_vm1, %v3576_v28, 0.0  ;;  %v132_v13 = vld [vmem:[%s5616_s0 + $0x390] sm:$0xff] }
  0x9c   :  { %2592 = vmatmul.msk.f32.vlgmr.msra.gmra.mxu1 %vm402_vm0, %v2776_v42  ;;  %2594 = vmatmul.msk.f32.vlgmr.msra.gmra.mxu3 %vm402_vm0, %v2776_v42  ;;  %v321_v42 = vld [vmem:[%s5616_s0 + $0x978] sm:$0xff] }
  0x9d   :  { %1297 = vmatpush.msrb.mxu0 %v318_v14  ;;  %1316 = vmatpush.msrb.mxu1 %v383_v15  ;;  %v1691_v34 = vadd.f32 %v1690_v31, %v1689_v27  ;;  %v3592_v35 = vpop.f32.mrf.mxu3  ;;  %v197_v14 = vld [vmem:[%s5616_s0 + $0x598] sm:$0xff] }
  0x9e   :  { %1337 = vmatpush.msrb.mxu2 %v320_v17  ;;  %1356 = vmatpush.msrb.mxu3 %v385_v18  ;;  %v1692_v38 = vsel %vm1686_vm1, %v3592_v35, 0.0  ;;  %v66_v17 = vld [vmem:[%s5616_s0 + $0x180] sm:$0xff]  ;;  %v131_v18 = vld [vmem:[%s5616_s0 + $0x388] sm:$0xff] }
  0x9f   :  { %1298 = vmatpush.msrb.mxu0 %v254_v20  ;;  %1317 = vmatpush.msrb.mxu1 %v319_v21  ;;  %v1693_v41 = vadd.f32 %v1692_v38, %v1691_v34  ;;  %v68_v21 = vld [vmem:[%s5616_s0 + $0x190] sm:$0xff]  ;;  %v391_v34 = vld [vmem:[%s5616_s0 + $0xba8] sm:$0xff]  ;;  %v393_v38 = vld [vmem:[%s5616_s0 + $0xbb8] sm:$0xff] }
  0xa0   :  { %1338 = vmatpush.msrb.mxu2 %v256_v23  ;;  %1357 = vmatpush.msrb.mxu3 %v321_v42  ;;  %v3614_v45 = vpop.f32.mrf.mxu0  ;;  %v133_v23 = vld [vmem:[%s5616_s0 + $0x398] sm:$0xff] }
  0xa1   :  { %1299 = vmatpush.msrb.mxu0 %v190_v25  ;;  %1318 = vmatpush.msrb.mxu1 %v255_v26  ;;  %v1694_v48 = vsel %vm1686_vm1, %v3614_v45, 0.0  ;;  %v390_v25 = vld [vmem:[%s5616_s0 + $0xba0] sm:$0xff]  ;;  %v392_v26 = vld [vmem:[%s5616_s0 + $0xbb0] sm:$0xff] }
  0xa2   :  { %1339 = vmatpush.msrb.mxu2 %v192_v29  ;;  %1358 = vmatpush.msrb.mxu3 %v257_v30  ;;  %v1695_v51 = vadd.f32 %v1694_v48, %v1693_v41  ;;  %v67_v29 = vld [vmem:[%s5616_s0 + $0x188] sm:$0xff]  ;;  %v69_v30 = vld [vmem:[%s5616_s0 + $0x198] sm:$0xff] }
  0xa3   :  { %1300 = vmatpush.msrb.mxu0 %v126_v32  ;;  %1319 = vmatpush.msrb.mxu1 %v191_v33  ;;  %v3645_v55 = vpop.f32.mrf.mxu1  ;;  %v326_v33 = vld [vmem:[%s5616_s0 + $0x9a0] sm:$0xff]  ;;  %v327_v41 = vld [vmem:[%s5616_s0 + $0x9a8] sm:$0xff] }
  0xa4   :  { %1340 = vmatpush.msrb.mxu2 %v128_v36  ;;  %1359 = vmatpush.msrb.mxu3 %v193_v37  ;;  %v1696_v58 = vsel %vm1686_vm1, %v3645_v55, 0.0  ;;  %v3665_v62 = vpop.f32.mrf.mxu2  ;;  %v328_v37 = vld [vmem:[%s5616_s0 + $0x9b0] sm:$0xff] }
  0xa5   :  { %1301 = vmatpush.msrb.mxu0 %v62_v39  ;;  %1320 = vmatpush.msrb.mxu1 %v127_v40  ;;  %v1697_v61 = vadd.f32 %v1696_v58, %v1695_v51  ;;  %v1698_v1 = vsel %vm1686_vm1, %v3665_v62, 0.0  ;;  %v262_v40 = vld [vmem:[%s5616_s0 + $0x7a0] sm:$0xff] }
  0xa6   :  { %1341 = vmatpush.msrb.mxu2 %v64_v43  ;;  %1360 = vmatpush.msrb.mxu3 %v129_v44  ;;  %v134_v58 = vld [vmem:[%s5616_s0 + $0x3a0] sm:$0xff] }
  0xa7   :  { %2595 = vmatmul.msk.f32.vlgmr.msrb.gmra.mxu0 %vm402_vm0, %v3633_v52  ;;  %2597 = vmatmul.msk.f32.vlgmr.msrb.gmra.mxu2 %vm402_vm0, %v3633_v52  ;;  %v1699_v4 = vadd.f32 %v1698_v1, %v1697_v61  ;;  %v3681_v5 = vpop.f32.mrf.mxu3 }
  0xa8   :  { %1376 = vmatpush.msra.mxu0 %v386_v46  ;;  %1416 = vmatpush.msra.mxu2 %v388_v47  ;;  %v1700_v8 = vsel %vm1686_vm1, %v3681_v5, 0.0  ;;  %v264_v46 = vld [vmem:[%s5616_s0 + $0x7b0] sm:$0xff]  ;;  %v329_v47 = vld [vmem:[%s5616_s0 + $0x9b8] sm:$0xff] }
  0xa9   :  { %1321 = vmatpush.msrb.mxu1 %v63_v49  ;;  %1361 = vmatpush.msrb.mxu3 %v65_v50  ;;  %v1701_v11 = vadd.f32 %v1700_v8, %v1699_v4  ;;  %v198_v49 = vld [vmem:[%s5616_s0 + $0x5a0] sm:$0xff]  ;;  %v263_v50 = vld [vmem:[%s5616_s0 + $0x7a8] sm:$0xff] }
  0xaa   :  { %2596 = vmatmul.msk.f32.vlgmr.msrb.gmra.mxu1 %vm402_vm0, %v3633_v52  ;;  %2598 = vmatmul.msk.f32.vlgmr.msrb.gmra.mxu3 %vm402_vm0, %v3633_v52 }
  0xab   :  { %1377 = vmatpush.msra.mxu0 %v322_v53  ;;  %1396 = vmatpush.msra.mxu1 %v387_v54  ;;  %v200_v54 = vld [vmem:[%s5616_s0 + $0x5b0] sm:$0xff] }
  0xac   :  { %1417 = vmatpush.msra.mxu2 %v324_v56  ;;  %1436 = vmatpush.msra.mxu3 %v389_v57  ;;  %v3697_v12 = vpop.f32.mrf.mxu0  ;;  %v265_v56 = vld [vmem:[%s5616_s0 + $0x7b8] sm:$0xff] }
  0xad   :  { %1378 = vmatpush.msra.mxu0 %v258_v59  ;;  %1397 = vmatpush.msra.mxu1 %v323_v60  ;;  %v1702_v15 = vsel %vm1686_vm1, %v3697_v12, 0.0  ;;  %v199_v59 = vld [vmem:[%s5616_s0 + $0x5a8] sm:$0xff] }
  0xae   :  { %1418 = vmatpush.msra.mxu2 %v260_v63  ;;  %1437 = vmatpush.msra.mxu3 %v325_v0  ;;  %v1703_v19 = vadd.f32 %v1702_v15, %v1701_v11  ;;  %v136_v63 = vld [vmem:[%s5616_s0 + $0x3b0] sm:$0xff]  ;;  %v201_v0 = vld [vmem:[%s5616_s0 + $0x5b8] sm:$0xff] }
  0xaf   :  { %1379 = vmatpush.msra.mxu0 %v194_v2  ;;  %1398 = vmatpush.msra.mxu1 %v259_v3  ;;  %v3713_v20 = vpop.f32.mrf.mxu1  ;;  %v70_v2 = vld [vmem:[%s5616_s0 + $0x1a0] sm:$0xff]  ;;  %v135_v3 = vld [vmem:[%s5616_s0 + $0x3a8] sm:$0xff]  ;;  %v396_v11 = vld [vmem:[%s5616_s0 + $0xbd0] sm:$0xff] }
  0xb0   :  { %1419 = vmatpush.msra.mxu2 %v196_v6  ;;  %1438 = vmatpush.msra.mxu3 %v261_v7  ;;  %v1704_v42 = vsel %vm1686_vm1, %v3713_v20, 0.0  ;;  %v3729_v27 = vpop.f32.mrf.mxu2  ;;  %v72_v6 = vld [vmem:[%s5616_s0 + $0x1b0] sm:$0xff]  ;;  %v137_v7 = vld [vmem:[%s5616_s0 + $0x3b8] sm:$0xff] }
  0xb1   :  { %1380 = vmatpush.msra.mxu0 %v130_v9  ;;  %1399 = vmatpush.msra.mxu1 %v195_v10  ;;  %v1705_v24 = vadd.f32 %v1704_v42, %v1703_v19  ;;  %v1706_v31 = vsel %vm1686_vm1, %v3729_v27, 0.0  ;;  %v394_v10 = vld [vmem:[%s5616_s0 + $0xbc0] sm:$0xff]  ;;  %v73_v15 = vld [vmem:[%s5616_s0 + $0x1b8] sm:$0xff]  ;;  %v332_v42 = vld [vmem:[%s5616_s0 + $0x9d0] sm:$0xff] }
  0xb2   :  { %1420 = vmatpush.msra.mxu2 %v132_v13  ;;  %1439 = vmatpush.msra.mxu3 %v197_v14  ;;  %v71_v14 = vld [vmem:[%s5616_s0 + $0x1a8] sm:$0xff]  ;;  %v330_v19 = vld [vmem:[%s5616_s0 + $0x9c0] sm:$0xff] }
  0xb3   :  { %1381 = vmatpush.msra.mxu0 %v66_v17  ;;  %1400 = vmatpush.msra.mxu1 %v131_v18  ;;  %v1707_v32 = vadd.f32 %v1706_v31, %v1705_v24  ;;  %v3749_v36 = vpop.f32.mrf.mxu3  ;;  %v397_v24 = vld [vmem:[%s5616_s0 + $0xbd8] sm:$0xff]  ;;  %v268_v31 = vld [vmem:[%s5616_s0 + $0x7d0] sm:$0xff] }
  0xb4   :  { %1421 = vmatpush.msra.mxu2 %v68_v21  ;;  %1440 = vmatpush.msra.mxu3 %v133_v23  ;;  %v1708_v39 = vsel %vm1686_vm1, %v3749_v36, 0.0  ;;  %v395_v21 = vld [vmem:[%s5616_s0 + $0xbc8] sm:$0xff] }
  0xb5   :  { %2599 = vmatmul.msk.f32.vlgmr.msra.gmra.mxu0 %vm402_vm0, %v3633_v52  ;;  %2601 = vmatmul.msk.f32.vlgmr.msra.gmra.mxu2 %vm402_vm0, %v3633_v52  ;;  %v1709_v43 = vadd.f32 %v1708_v39, %v1707_v32  ;;  %v333_v32 = vld [vmem:[%s5616_s0 + $0x9d8] sm:$0xff]  ;;  %v204_v39 = vld [vmem:[%s5616_s0 + $0x5d0] sm:$0xff] }
  0xb6   :  { %1456 = vmatpush.msrb.mxu0 %v390_v25  ;;  %1496 = vmatpush.msrb.mxu2 %v392_v26  ;;  %v3769_v44 = vpop.f32.mrf.mxu0  ;;  %v266_v26 = vld [vmem:[%s5616_s0 + $0x7c0] sm:$0xff] }
  0xb7   :  { %1401 = vmatpush.msra.mxu1 %v67_v29  ;;  %1441 = vmatpush.msra.mxu3 %v69_v30  ;;  %v1710_v48 = vsel %vm1686_vm1, %v3769_v44, 0.0  ;;  %v331_v29 = vld [vmem:[%s5616_s0 + $0x9c8] sm:$0xff] }
  0xb8   :  { %2600 = vmatmul.msk.f32.vlgmr.msra.gmra.mxu1 %vm402_vm0, %v3633_v52  ;;  %2602 = vmatmul.msk.f32.vlgmr.msra.gmra.mxu3 %vm402_vm0, %v3633_v52  ;;  %v1711_v51 = vadd.f32 %v1710_v48, %v1709_v43  ;;  %v138_v43 = vld [vmem:[%s5616_s0 + $0x3c0] sm:$0xff]  ;;  %v140_v48 = vld [vmem:[%s5616_s0 + $0x3d0] sm:$0xff] }
  0xb9   :  { %1457 = vmatpush.msrb.mxu0 %v326_v33  ;;  %1476 = vmatpush.msrb.mxu1 %v391_v34  ;;  %v3785_v53 = vpop.f32.mrf.mxu1  ;;  %v202_v33 = vld [vmem:[%s5616_s0 + $0x5c0] sm:$0xff]  ;;  %v267_v34 = vld [vmem:[%s5616_s0 + $0x7c8] sm:$0xff] }
  0xba   :  { %1497 = vmatpush.msrb.mxu2 %v328_v37  ;;  %1516 = vmatpush.msrb.mxu3 %v393_v38  ;;  %v1712_v57 = vsel %vm1686_vm1, %v3785_v53, 0.0  ;;  %v3801_v61 = vpop.f32.mrf.mxu2 }
  0xbb   :  { %1458 = vmatpush.msrb.mxu0 %v262_v40  ;;  %1477 = vmatpush.msrb.mxu1 %v327_v41  ;;  %v1713_v60 = vadd.f32 %v1712_v57, %v1711_v51  ;;  %v1714_v1 = vsel %vm1686_vm1, %v3801_v61, 0.0  ;;  %v269_v40 = vld [vmem:[%s5616_s0 + $0x7d8] sm:$0xff]  ;;  %v74_v51 = vld [vmem:[%s5616_s0 + $0x1c0] sm:$0xff]  ;;  %v76_v57 = vld [vmem:[%s5616_s0 + $0x1d0] sm:$0xff] }
  0xbc   :  { %1498 = vmatpush.msrb.mxu2 %v264_v46  ;;  %1517 = vmatpush.msrb.mxu3 %v329_v47  ;;  %v203_v46 = vld [vmem:[%s5616_s0 + $0x5c8] sm:$0xff] }
  0xbd   :  { %1459 = vmatpush.msrb.mxu0 %v198_v49  ;;  %1478 = vmatpush.msrb.mxu1 %v263_v50  ;;  %v1715_v4 = vadd.f32 %v1714_v1, %v1713_v60  ;;  %v3823_v8 = vpop.f32.mrf.mxu3  ;;  %v205_v49 = vld [vmem:[%s5616_s0 + $0x5d8] sm:$0xff]  ;;  %v398_v60 = vld [vmem:[%s5616_s0 + $0xbe0] sm:$0xff] }
  0xbe   :  { %1499 = vmatpush.msrb.mxu2 %v200_v54  ;;  %1518 = vmatpush.msrb.mxu3 %v265_v56  ;;  %v1716_v9 = vsel %vm1686_vm1, %v3823_v8, 0.0  ;;  %v139_v54 = vld [vmem:[%s5616_s0 + $0x3c8] sm:$0xff]  ;;  %v77_v1 = vld [vmem:[%s5616_s0 + $0x1d8] sm:$0xff] }
  0xbf   :  { %1460 = vmatpush.msrb.mxu0 %v134_v58  ;;  %1479 = vmatpush.msrb.mxu1 %v199_v59  ;;  %v1717_v13 = vadd.f32 %v1716_v9, %v1715_v4  ;;  %v141_v58 = vld [vmem:[%s5616_s0 + $0x3d8] sm:$0xff]  ;;  %v334_v4 = vld [vmem:[%s5616_s0 + $0x9e0] sm:$0xff]  ;;  %v336_v9 = vld [vmem:[%s5616_s0 + $0x9f0] sm:$0xff] }
  0xc0   :  { %1500 = vmatpush.msrb.mxu2 %v136_v63  ;;  %1519 = vmatpush.msrb.mxu3 %v201_v0  ;;  %v400_v63 = vld [vmem:[%s5616_s0 + $0xbf0] sm:$0xff]  ;;  %v75_v0 = vld [vmem:[%s5616_s0 + $0x1c8] sm:$0xff] }
  0xc1   :  { %1461 = vmatpush.msrb.mxu0 %v70_v2  ;;  %1480 = vmatpush.msrb.mxu1 %v135_v3 }
  0xc2   :  { %1501 = vmatpush.msrb.mxu2 %v72_v6  ;;  %1520 = vmatpush.msrb.mxu3 %v137_v7  ;;  %v3839_v17 = vpop.f32.mrf.mxu0  ;;  %v399_v6 = vld [vmem:[%s5616_s0 + $0xbe8] sm:$0xff] }
  0xc3   :  { %2603 = vmatmul.msk.f32.vlgmr.msrb.gmra.mxu0 %vm402_vm0, %v3633_v52  ;;  %2605 = vmatmul.msk.f32.vlgmr.msrb.gmra.mxu2 %vm402_vm0, %v3633_v52  ;;  %v1718_v18 = vsel %vm1686_vm1, %v3839_v17, 0.0 }
  0xc4   :  { %1536 = vmatpush.msra.mxu0 %v394_v10  ;;  %1576 = vmatpush.msra.mxu2 %v396_v11  ;;  %v1719_v23 = vadd.f32 %v1718_v18, %v1717_v13  ;;  %v401_v10 = vld [vmem:[%s5616_s0 + $0xbf8] sm:$0xff]  ;;  %v270_v13 = vld [vmem:[%s5616_s0 + $0x7e0] sm:$0xff]  ;;  %v272_v18 = vld [vmem:[%s5616_s0 + $0x7f0] sm:$0xff] }
  0xc5   :  { %1481 = vmatpush.msrb.mxu1 %v71_v14  ;;  %1521 = vmatpush.msrb.mxu3 %v73_v15  ;;  %v3859_v25 = vpop.f32.mrf.mxu1  ;;  %v335_v14 = vld [vmem:[%s5616_s0 + $0x9e8] sm:$0xff] }
  0xc6   :  { %2604 = vmatmul.msk.f32.vlgmr.msrb.gmra.mxu1 %vm402_vm0, %v3633_v52  ;;  %2606 = vmatmul.msk.f32.vlgmr.msrb.gmra.mxu3 %vm402_vm0, %v3633_v52  ;;  %v1720_v30 = vsel %vm1686_vm1, %v3859_v25, 0.0 }
  0xc7   :  { %1537 = vmatpush.msra.mxu0 %v330_v19  ;;  %1556 = vmatpush.msra.mxu1 %v395_v21  ;;  %v1721_v37 = vadd.f32 %v1720_v30, %v1719_v23  ;;  %v337_v19 = vld [vmem:[%s5616_s0 + $0x9f8] sm:$0xff]  ;;  %v206_v21 = vld [vmem:[%s5616_s0 + $0x5e0] sm:$0xff]  ;;  %v271_v23 = vld [vmem:[%s5616_s0 + $0x7e8] sm:$0xff] }
  0xc8   :  { %1577 = vmatpush.msra.mxu2 %v332_v42  ;;  %1596 = vmatpush.msra.mxu3 %v397_v24  ;;  %v3885_v38 = vpop.f32.mrf.mxu2 }
  0xc9   :  { %1538 = vmatpush.msra.mxu0 %v266_v26  ;;  %1557 = vmatpush.msra.mxu1 %v331_v29  ;;  %v1722_v41 = vsel %vm1686_vm1, %v3885_v38, 0.0  ;;  %v208_v26 = vld [vmem:[%s5616_s0 + $0x5f0] sm:$0xff]  ;;  %v273_v29 = vld [vmem:[%s5616_s0 + $0x7f8] sm:$0xff] }
  0xca   :  { %1578 = vmatpush.msra.mxu2 %v268_v31  ;;  %1597 = vmatpush.msra.mxu3 %v333_v32  ;;  %v1723_v47 = vadd.f32 %v1722_v41, %v1721_v37  ;;  %v142_v31 = vld [vmem:[%s5616_s0 + $0x3e0] sm:$0xff]  ;;  %v207_v32 = vld [vmem:[%s5616_s0 + $0x5e8] sm:$0xff]  ;;  %v209_v37 = vld [vmem:[%s5616_s0 + $0x5f8] sm:$0xff] }
  0xcb   :  { %1539 = vmatpush.msra.mxu0 %v202_v33  ;;  %1558 = vmatpush.msra.mxu1 %v267_v34  ;;  %v3907_v50 = vpop.f32.mrf.mxu3  ;;  %v144_v34 = vld [vmem:[%s5616_s0 + $0x3f0] sm:$0xff]  ;;  %v143_v41 = vld [vmem:[%s5616_s0 + $0x3e8] sm:$0xff] }
  0xcc   :  { %1579 = vmatpush.msra.mxu2 %v204_v39  ;;  %1598 = vmatpush.msra.mxu3 %v269_v40  ;;  %v1724_v56 = vsel %vm1686_vm1, %v3907_v50, 0.0  ;;  %v78_v40 = vld [vmem:[%s5616_s0 + $0x1e0] sm:$0xff] }
  0xcd   :  { %1540 = vmatpush.msra.mxu0 %v138_v43  ;;  %1559 = vmatpush.msra.mxu1 %v203_v46  ;;  %v1725_v59 = vadd.f32 %v1724_v56, %v1723_v47  ;;  %v80_v46 = vld [vmem:[%s5616_s0 + $0x1f0] sm:$0xff]  ;;  %v145_v47 = vld [vmem:[%s5616_s0 + $0x3f8] sm:$0xff] }
  0xce   :  { %1580 = vmatpush.msra.mxu2 %v140_v48  ;;  %1599 = vmatpush.msra.mxu3 %v205_v49  ;;  %v79_v49 = vld [vmem:[%s5616_s0 + $0x1e8] sm:$0xff] }
  0xcf   :  { %1541 = vmatpush.msra.mxu0 %v74_v51  ;;  %1560 = vmatpush.msra.mxu1 %v139_v54  ;;  %v81_v51 = vld [vmem:[%s5616_s0 + $0x1f8] sm:$0xff] }
  0xd0   :  { %1581 = vmatpush.msra.mxu2 %v76_v57  ;;  %1600 = vmatpush.msra.mxu3 %v141_v58  ;;  %v3935_v2 = vpop.f32.mrf.mxu0 }
  0xd1   :  { %2607 = vmatmul.msk.f32.vlgmr.msra.gmra.mxu0 %vm402_vm0, %v3633_v52  ;;  %2609 = vmatmul.msk.f32.vlgmr.msra.gmra.mxu2 %vm402_vm0, %v3633_v52  ;;  %v1726_v3 = vsel %vm1686_vm1, %v3935_v2, 0.0 }
  0xd2   :  { %1616 = vmatpush.msrb.mxu0 %v398_v60  ;;  %1656 = vmatpush.msrb.mxu2 %v400_v63  ;;  %v1727_v7 = vadd.f32 %v1726_v3, %v1725_v59 }
  0xd3   :  { %1561 = vmatpush.msra.mxu1 %v75_v0  ;;  %1601 = vmatpush.msra.mxu3 %v77_v1  ;;  %v3955_v11 = vpop.f32.mrf.mxu1 }
  0xd4   :  { %2608 = vmatmul.msk.f32.vlgmr.msra.gmra.mxu1 %vm402_vm0, %v3633_v52  ;;  %2610 = vmatmul.msk.f32.vlgmr.msra.gmra.mxu3 %vm402_vm0, %v3633_v52  ;;  %v1728_v15 = vsel %vm1686_vm1, %v3955_v11, 0.0 }
  0xd5   :  { %1617 = vmatpush.msrb.mxu0 %v334_v4  ;;  %1636 = vmatpush.msrb.mxu1 %v399_v6  ;;  %v1729_v42 = vadd.f32 %v1728_v15, %v1727_v7 }
  0xd6   :  { %1657 = vmatpush.msrb.mxu2 %v336_v9  ;;  %1676 = vmatpush.msrb.mxu3 %v401_v10  ;;  %v3981_v24 = vpop.f32.mrf.mxu2 }
  0xd7   :  { %1618 = vmatpush.msrb.mxu0 %v270_v13  ;;  %1637 = vmatpush.msrb.mxu1 %v335_v14  ;;  %v1730_v30 = vsel %vm1686_vm1, %v3981_v24, 0.0 }
  0xd8   :  { %1658 = vmatpush.msrb.mxu2 %v272_v18  ;;  %1677 = vmatpush.msrb.mxu3 %v337_v19  ;;  %v1731_v33 = vadd.f32 %v1730_v30, %v1729_v42 }
  0xd9   :  { %1619 = vmatpush.msrb.mxu0 %v206_v21  ;;  %1638 = vmatpush.msrb.mxu1 %v271_v23  ;;  %v4003_v39 = vpop.f32.mrf.mxu3 }
  0xda   :  { %1659 = vmatpush.msrb.mxu2 %v208_v26  ;;  %1678 = vmatpush.msrb.mxu3 %v273_v29  ;;  %v1732_v43 = vsel %vm1686_vm1, %v4003_v39, 0.0 }
  0xdb   :  { %1620 = vmatpush.msrb.mxu0 %v142_v31  ;;  %1639 = vmatpush.msrb.mxu1 %v207_v32  ;;  %v1733_v48 = vadd.f32 %v1732_v43, %v1731_v33 }
  0xdc   :  { %1660 = vmatpush.msrb.mxu2 %v144_v34  ;;  %1679 = vmatpush.msrb.mxu3 %v209_v37 }
  0xdd   :  { %1621 = vmatpush.msrb.mxu0 %v78_v40  ;;  %1640 = vmatpush.msrb.mxu1 %v143_v41 }
  0xde   :  { %1661 = vmatpush.msrb.mxu2 %v80_v46  ;;  %1680 = vmatpush.msrb.mxu3 %v145_v47  ;;  %v4025_v54 = vpop.f32.mrf.mxu0 }
  0xdf   :  { %2611 = vmatmul.msk.f32.vlgmr.msrb.gmra.mxu0 %vm402_vm0, %v3633_v52  ;;  %2613 = vmatmul.msk.f32.vlgmr.msrb.gmra.mxu2 %vm402_vm0, %v3633_v52  ;;  %v1734_v56 = vsel %vm1686_vm1, %v4025_v54, 0.0 }
  0xe0   :  { %1641 = vmatpush.msrb.mxu1 %v79_v49  ;;  %1681 = vmatpush.msrb.mxu3 %v81_v51  ;;  %v1735_v57 = vadd.f32 %v1734_v56, %v1733_v48 }
  0xe1   :  { %2612 = vmatmul.msk.f32.vlgmr.msrb.gmra.mxu1 %vm402_vm0, %v3633_v52  ;;  %2614 = vmatmul.msk.f32.vlgmr.msrb.gmra.mxu3 %vm402_vm0, %v3633_v52  ;;  %v4037_v58 = vpop.f32.mrf.mxu1 }
  0xe2   :  { %v1736_v59 = vsel %vm1686_vm1, %v4037_v58, 0.0 }
  0xe3   :  { %v1737_v60 = vadd.f32 %v1736_v59, %v1735_v57 }
  0xe4   :  { %v4041_v63 = vpop.f32.mrf.mxu2 }
  0xe5   :  { %v1738_v0 = vsel %vm1686_vm1, %v4041_v63, 0.0 }
  0xe6   :  { %v1739_v1 = vadd.f32 %v1738_v0, %v1737_v60 }
  0xe7   :  { %v4045_v3 = vpop.f32.mrf.mxu3 }
  0xe8   :  { %v1740_v4 = vsel %vm1686_vm1, %v4045_v3, 0.0 }
  0xe9   :  { %v1741_v6 = vadd.f32 %v1740_v4, %v1739_v1 }
  0xec   :  { %v4049_v7 = vpop.f32.mrf.mxu0 }
  0xed   :  { %v1742_v52 = vsel %vm1686_vm1, %v4049_v7, 0.0 }
  0xee   :  { %v1743_v9 = vadd.f32 %v1742_v52, %v1741_v6 }
  0xef   :  { %v4053_v10 = vpop.f32.mrf.mxu1 }
  0xf0   :  { %v1744_v13 = vsel %vm1686_vm1, %v4053_v10, 0.0 }
  0xf1   :  { %v1745_v14 = vadd.f32 %v1744_v13, %v1743_v9 }
  0xf2   :  { %v4057_v15 = vpop.f32.mrf.mxu2 }
  0xf3   :  { %v1746_v18 = vsel %vm1686_vm1, %v4057_v15, 0.0 }
  0xf4   :  { %v1747_v19 = vadd.f32 %v1746_v18, %v1745_v14 }
  0xf5   :  { %v4061_v21 = vpop.f32.mrf.mxu3 }
  0xf6   :  { %v1748_v23 = vsel %vm1686_vm1, %v4061_v21, 0.0 }
  0xf7   :  { %v1749_v42 = vadd.f32 %v1748_v23, %v1747_v19 }
  0xfa   :  { %v4065_v26 = vpop.f32.mrf.mxu0 }
  0xfb   :  { %v1750_v29 = vsel %vm1686_vm1, %v4065_v26, 0.0 }
  0xfc   :  { %v1751_v30 = vadd.f32 %v1750_v29, %v1749_v42 }
  0xfd   :  { %v4069_v31 = vpop.f32.mrf.mxu1 }
  0xfe   :  { %v1752_v32 = vsel %vm1686_vm1, %v4069_v31, 0.0 }
  0xff   :  { %v1753_v33 = vadd.f32 %v1752_v32, %v1751_v30 }
 0x100   :  { %v4073_v34 = vpop.f32.mrf.mxu2 }
 0x101   :  { %v1754_v37 = vsel %vm1686_vm1, %v4073_v34, 0.0 }
 0x102   :  { %v1755_v40 = vadd.f32 %v1754_v37, %v1753_v33 }
 0x103   :  { %v4077_v41 = vpop.f32.mrf.mxu3 }
 0x104   :  { %v1756_v43 = vsel %vm1686_vm1, %v4077_v41, 0.0 }
 0x105   :  { %v1757_v46 = vadd.f32 %v1756_v43, %v1755_v40 }
 0x108   :  { %v4081_v47 = vpop.f32.mrf.mxu0 }
 0x109   :  { %v1758_v48 = vsel %vm1686_vm1, %v4081_v47, 0.0 }
 0x10a   :  { %v1759_v49 = vadd.f32 %v1758_v48, %v1757_v46 }
 0x10b   :  { %v4085_v51 = vpop.f32.mrf.mxu1 }
 0x10c   :  { %v1760_v56 = vsel %vm1686_vm1, %v4085_v51, 0.0 }
 0x10d   :  { %v1761_v57 = vadd.f32 %v1760_v56, %v1759_v49 }
 0x10e   :  { %v4089_v59 = vpop.f32.mrf.mxu2 }
 0x10f   :  { %v1762_v60 = vsel %vm1686_vm1, %v4089_v59, 0.0 }
 0x110   :  { %v1763_v0 = vadd.f32 %v1762_v60, %v1761_v57 }
 0x111   :  { %v4093_v1 = vpop.f32.mrf.mxu3 }
 0x112   :  { %v1764_v4 = vsel %vm1686_vm1, %v4093_v1, 0.0 }
 0x113   :  { %v1765_v6 = vadd.f32 %v1764_v4, %v1763_v0 }
 0x116   :  { %v4097_v52 = vpop.f32.mrf.mxu0 }
 0x117   :  { %v1766_v9 = vsel %vm1686_vm1, %v4097_v52, 0.0 }
 0x118   :  { %v1767_v13 = vadd.f32 %v1766_v9, %v1765_v6 }
 0x119   :  { %v4101_v14 = vpop.f32.mrf.mxu1 }
 0x11a   :  { %v1768_v18 = vsel %vm1686_vm1, %v4101_v14, 0.0 }
 0x11b   :  { %v1769_v19 = vadd.f32 %v1768_v18, %v1767_v13 }
 0x11c   :  { %v4105_v23 = vpop.f32.mrf.mxu2 }
 0x11d   :  { %v1770_v42 = vsel %vm1686_vm1, %v4105_v23, 0.0 }
 0x11e   :  { %v1771_v29 = vadd.f32 %v1770_v42, %v1769_v19 }
 0x11f   :  { %v4109_v30 = vpop.f32.mrf.mxu3 }
 0x120   :  { %v1772_v32 = vsel %vm1686_vm1, %v4109_v30, 0.0 }
 0x121   :  { %v1773_v33 = vadd.f32 %v1772_v32, %v1771_v29 }
 0x124   :  { %v4113_v37 = vpop.f32.mrf.mxu0 }
 0x125   :  { %v1774_v40 = vsel %vm1686_vm1, %v4113_v37, 0.0 }
 0x126   :  { %v1775_v43 = vadd.f32 %v1774_v40, %v1773_v33 }
 0x127   :  { %v4117_v46 = vpop.f32.mrf.mxu1 }
 0x128   :  { %v1776_v48 = vsel %vm1686_vm1, %v4117_v46, 0.0 }
 0x129   :  { %v1777_v49 = vadd.f32 %v1776_v48, %v1775_v43 }
 0x12a   :  { %v4121_v56 = vpop.f32.mrf.mxu2 }
 0x12b   :  { %v1778_v57 = vsel %vm1686_vm1, %v4121_v56, 0.0 }
 0x12c   :  { %v1779_v60 = vadd.f32 %v1778_v57, %v1777_v49 }
 0x12d   :  { %v4125_v0 = vpop.f32.mrf.mxu3 }
 0x12e   :  { %v1780_v4 = vsel %vm1686_vm1, %v4125_v0, 0.0 }
 0x12f   :  { %v1781_v6 = vadd.f32 %v1780_v4, %v1779_v60 }
 0x132   :  { %v4129_v9 = vpop.f32.mrf.mxu0 }
 0x133   :  { %v1782_v13 = vsel %vm1686_vm1, %v4129_v9, 0.0 }
 0x134   :  { %v1783_v18 = vadd.f32 %v1782_v13, %v1781_v6 }
 0x135   :  { %v4133_v19 = vpop.f32.mrf.mxu1 }
 0x136   :  { %v1784_v42 = vsel %vm1686_vm1, %v4133_v19, 0.0 }
 0x137   :  { %v1785_v29 = vadd.f32 %v1784_v42, %v1783_v18 }
 0x138   :  { %v4137_v32 = vpop.f32.mrf.mxu2 }
 0x139   :  { %v1786_v33 = vsel %vm1686_vm1, %v4137_v32, 0.0 }
 0x13a   :  { %v1787_v40 = vadd.f32 %v1786_v33, %v1785_v29 }
 0x13b   :  { %v4141_v43 = vpop.f32.mrf.mxu3 }
 0x13c   :  { %5688 = vst [vmem:[#allocation2_spill] sm:$0xff] %v4141_v43  ;;  %v1788_v48 = vsel %vm1686_vm1, %v4141_v43, 0.0 }
 0x13d   :  { %v1789_v49 = vadd.f32 %v1788_v48, %v1787_v40 }
 0x140   :  { %v4145_v57 = vpop.f32.mrf.mxu0 }
 0x141   :  { %5689 = vst [vmem:[#allocation3_spill] sm:$0xff] %v4145_v57  ;;  %v1790_v60 = vsel %vm1686_vm1, %v4145_v57, 0.0 }
 0x142   :  { %v1791_v4 = vadd.f32 %v1790_v60, %v1789_v49 }
 0x143   :  { %v4149_v6 = vpop.f32.mrf.mxu1 }
 0x144   :  { %5690 = vst [vmem:[#allocation4_spill] sm:$0xff] %v4149_v6  ;;  %v1792_v13 = vsel %vm1686_vm1, %v4149_v6, 0.0 }
 0x145   :  { %v1793_v18 = vadd.f32 %v1792_v13, %v1791_v4 }
 0x146   :  { %v4153_v42 = vpop.f32.mrf.mxu2 }
 0x147   :  { %5691 = vst [vmem:[#allocation5_spill] sm:$0xff] %v4153_v42  ;;  %v1794_v29 = vsel %vm1686_vm1, %v4153_v42, 0.0 }
 0x148   :  { %v1795_v33 = vadd.f32 %v1794_v29, %v1793_v18 }
 0x149   :  { %v4157_v43 = vpop.f32.mrf.mxu3 }
 0x14a   :  { %5692 = vst [vmem:[#allocation6_spill] sm:$0xff] %v4157_v43  ;;  %v1796_v40 = vsel %vm1686_vm1, %v4157_v43, 0.0 }
 0x14b   :  { %v1797_v48 = vadd.f32 %v1796_v40, %v1795_v33 }
 0x14e   :  { %v4161_v57 = vpop.f32.mrf.mxu0 }
 0x14f   :  { %5693 = vst [vmem:[#allocation7_spill] sm:$0xff] %v4161_v57  ;;  %v1798_v49 = vsel %vm1686_vm1, %v4161_v57, 0.0 }
 0x150   :  { %v1799_v60 = vadd.f32 %v1798_v49, %v1797_v48 }
 0x151   :  { %v4165_v6 = vpop.f32.mrf.mxu1 }
 0x152   :  { %5694 = vst [vmem:[#allocation8_spill] sm:$0xff] %v4165_v6  ;;  %v1800_v4 = vsel %vm1686_vm1, %v4165_v6, 0.0 }
 0x153   :  { %v1801_v13 = vadd.f32 %v1800_v4, %v1799_v60 }
 0x154   :  { %v4169_v42 = vpop.f32.mrf.mxu2 }
 0x155   :  { %5695 = vst [vmem:[#allocation9_spill] sm:$0xff] %v4169_v42  ;;  %v1802_v18 = vsel %vm1686_vm1, %v4169_v42, 0.0 }
 0x156   :  { %v1803_v29 = vadd.f32 %v1802_v18, %v1801_v13 }
 0x157   :  { %v4173_v43 = vpop.f32.mrf.mxu3 }
 0x158   :  { %5696 = vst [vmem:[#allocation10_spill] sm:$0xff] %v4173_v43  ;;  %v1804_v33 = vsel %vm1686_vm1, %v4173_v43, 0.0 }
 0x159   :  { %v1805_v40 = vadd.f32 %v1804_v33, %v1803_v29 }
 0x15c   :  { %v4177_v57 = vpop.f32.mrf.mxu0 }
 0x15d   :  { %v1806_v48 = vsel %vm1686_vm1, %v4177_v57, 0.0 }
 0x15e   :  { %v1807_v49 = vadd.f32 %v1806_v48, %v1805_v40  ;;  %v4181_v6 = vpop.f32.mrf.mxu1 }
 0x15f   :  { %5697 = vst [vmem:[#allocation11_spill] sm:$0xff] %v4181_v6  ;;  %v1808_v60 = vsel %vm1686_vm1, %v4181_v6, 0.0 }
 0x160   :  { %v1809_v4 = vadd.f32 %v1808_v60, %v1807_v49 }
 0x162   :  { %v4185_v42 = vpop.f32.mrf.mxu2 }
 0x163   :  { %v1810_v13 = vsel %vm1686_vm1, %v4185_v42, 0.0 }
 0x164   :  { %v1811_v18 = vadd.f32 %v1810_v13, %v1809_v4  ;;  %v4189_v43 = vpop.f32.mrf.mxu3 }
 0x165   :  { %v1812_v29 = vsel %vm1686_vm1, %v4189_v43, 0.0 }
 0x166   :  { %v1813_v33 = vadd.f32 %v1812_v29, %v1811_v18 }
 0x168   :  { %1814 = vadd.xlane.f32.xlu0 %v1813_v33 }
 0x1db   :  { %v1815_v40 = vpop.xlane.xlu0 %1814 }
 0x1dc   :  { %v4193_v48 = vmul.f32 0.00012207031, %v1815_v40 }
 0x1de   :  { %v4197_v6 = vsub.f32 %v3540_v16, %v4193_v48  ;;  %v4201_v49 = vsub.f32 %v3560_v22, %v4193_v48  ;;  %v4205_v60 = vsub.f32 %v3576_v28, %v4193_v48  ;;  %v4209_v4 = vsub.f32 %v3592_v35, %v4193_v48 }
 0x1df   :  { %v4217_v16 = vsub.f32 %v3614_v45, %v4193_v48  ;;  %v4223_v28 = vsub.f32 %v3645_v55, %v4193_v48  ;;  %v4238_v55 = vsub.f32 %v3681_v5, %v4193_v48  ;;  %v4252_v5 = vsub.f32 %v3713_v20, %v4193_v48 }
 0x1e0   :  { %5698 = vst [vmem:[#allocation12_spill] sm:$0xff] %v4197_v6  ;;  %v1881_v13 = vmul.f32 %v4197_v6, %v4197_v6  ;;  %v1882_v18 = vmul.f32 %v4201_v49, %v4201_v49  ;;  %v1883_v22 = vmul.f32 %v4205_v60, %v4205_v60  ;;  %v1884_v35 = vmul.f32 %v4209_v4, %v4209_v4 }
 0x1e1   :  { %5699 = vst [vmem:[#allocation13_spill] sm:$0xff] %v4201_v49  ;;  %v4231_v49 = vsub.f32 %v3665_v62, %v4193_v48  ;;  %v1885_v45 = vmul.f32 %v4217_v16, %v4217_v16  ;;  %v4245_v62 = vsub.f32 %v3697_v12, %v4193_v48  ;;  %v4259_v12 = vsub.f32 %v3729_v27, %v4193_v48 }
 0x1e2   :  { %5700 = vst [vmem:[#allocation14_spill] sm:$0xff] %v4205_v60  ;;  %v1945_v29 = vsel %vm1686_vm1, %v1881_v13, 0.0  ;;  %v1946_v33 = vsel %vm1686_vm1, %v1882_v18, 0.0  ;;  %v1948_v60 = vsel %vm1686_vm1, %v1883_v22, 0.0  ;;  %v1886_v13 = vmul.f32 %v4223_v28, %v4223_v28 }
 0x1e3   :  { %v1947_v40 = vadd.f32 %v1946_v33, %v1945_v29  ;;  %v1950_v18 = vsel %vm1686_vm1, %v1884_v35, 0.0  ;;  %v1887_v33 = vmul.f32 %v4231_v49, %v4231_v49  ;;  %v1952_v22 = vsel %vm1686_vm1, %v1885_v45, 0.0 }
 0x1e4   :  { %v1954_v35 = vsel %vm1686_vm1, %v1886_v13, 0.0  ;;  %v4266_v20 = vsub.f32 %v3749_v36, %v4193_v48  ;;  %v4273_v27 = vsub.f32 %v3769_v44, %v4193_v48  ;;  %v4280_v36 = vsub.f32 %v3785_v53, %v4193_v48 }
 0x1e5   :  { %v1949_v6 = vadd.f32 %v1948_v60, %v1947_v40  ;;  %v1888_v40 = vmul.f32 %v4238_v55, %v4238_v55  ;;  %v1956_v45 = vsel %vm1686_vm1, %v1887_v33, 0.0  ;;  %v4287_v44 = vsub.f32 %v3801_v61, %v4193_v48 }
 0x1e6   :  { %v4294_v53 = vsub.f32 %v3823_v8, %v4193_v48  ;;  %v4301_v61 = vsub.f32 %v3839_v17, %v4193_v48  ;;  %v4308_v8 = vsub.f32 %v3859_v25, %v4193_v48  ;;  %v4315_v17 = vsub.f32 %v3885_v38, %v4193_v48 }
 0x1e7   :  { %v1951_v29 = vadd.f32 %v1950_v18, %v1949_v6  ;;  %v1889_v18 = vmul.f32 %v4245_v62, %v4245_v62  ;;  %v1958_v13 = vsel %vm1686_vm1, %v1888_v40, 0.0  ;;  %v4322_v25 = vsub.f32 %v3907_v50, %v4193_v48 }
 0x1e8   :  { %v4329_v38 = vsub.f32 %v3935_v2, %v4193_v48  ;;  %v4336_v50 = vsub.f32 %v3955_v11, %v4193_v48  ;;  %v4343_v2 = vsub.f32 %v3981_v24, %v4193_v48  ;;  %v4350_v11 = vsub.f32 %v4003_v39, %v4193_v48 }
 0x1e9   :  { %v1953_v60 = vadd.f32 %v1952_v22, %v1951_v29  ;;  %v1890_v22 = vmul.f32 %v4252_v5, %v4252_v5  ;;  %v1960_v33 = vsel %vm1686_vm1, %v1889_v18, 0.0  ;;  %v4357_v24 = vsub.f32 %v4025_v54, %v4193_v48 }
 0x1ea   :  { %v4364_v39 = vsub.f32 %v4037_v58, %v4193_v48  ;;  %v4371_v54 = vsub.f32 %v4041_v63, %v4193_v48  ;;  %v4378_v58 = vsub.f32 %v4045_v3, %v4193_v48  ;;  %v4385_v63 = vsub.f32 %v4049_v7, %v4193_v48 }
 0x1eb   :  { %v1955_v6 = vadd.f32 %v1954_v35, %v1953_v60  ;;  %v1891_v35 = vmul.f32 %v4259_v12, %v4259_v12  ;;  %v1962_v40 = vsel %vm1686_vm1, %v1890_v22, 0.0  ;;  %v4392_v3 = vsub.f32 %v4053_v10, %v4193_v48 }
 0x1ec   :  { %v4399_v7 = vsub.f32 %v4057_v15, %v4193_v48  ;;  %v4406_v10 = vsub.f32 %v4061_v21, %v4193_v48  ;;  %v4413_v15 = vsub.f32 %v4065_v26, %v4193_v48  ;;  %v4420_v21 = vsub.f32 %v4069_v31, %v4193_v48 }
 0x1ed   :  { %v1957_v29 = vadd.f32 %v1956_v45, %v1955_v6  ;;  %v1892_v45 = vmul.f32 %v4266_v20, %v4266_v20  ;;  %v1964_v18 = vsel %vm1686_vm1, %v1891_v35, 0.0  ;;  %v4427_v26 = vsub.f32 %v4073_v34, %v4193_v48 }
 0x1ee   :  { %v4434_v31 = vsub.f32 %v4077_v41, %v4193_v48  ;;  %v4441_v34 = vsub.f32 %v4081_v47, %v4193_v48  ;;  %v4448_v41 = vsub.f32 %v4085_v51, %v4193_v48  ;;  %v4455_v47 = vsub.f32 %v4089_v59, %v4193_v48 }
 0x1ef   :  { %v1959_v60 = vadd.f32 %v1958_v13, %v1957_v29  ;;  %v1893_v13 = vmul.f32 %v4273_v27, %v4273_v27  ;;  %v1966_v22 = vsel %vm1686_vm1, %v1892_v45, 0.0  ;;  %v4462_v51 = vsub.f32 %v4093_v1, %v4193_v48 }
 0x1f0   :  { %v4469_v59 = vsub.f32 %v4097_v52, %v4193_v48  ;;  %v4476_v1 = vsub.f32 %v4101_v14, %v4193_v48  ;;  %v4483_v52 = vsub.f32 %v4105_v23, %v4193_v48  ;;  %v4490_v14 = vsub.f32 %v4109_v30, %v4193_v48 }
 0x1f1   :  { %v1961_v6 = vadd.f32 %v1960_v33, %v1959_v60  ;;  %v1894_v33 = vmul.f32 %v4280_v36, %v4280_v36  ;;  %v1968_v35 = vsel %vm1686_vm1, %v1893_v13, 0.0  ;;  %v4497_v23 = vsub.f32 %v4113_v37, %v4193_v48 }
 0x1f2   :  { %v4504_v30 = vsub.f32 %v4117_v46, %v4193_v48  ;;  %v4511_v37 = vsub.f32 %v4121_v56, %v4193_v48  ;;  %v4518_v46 = vsub.f32 %v4125_v0, %v4193_v48  ;;  %v4525_v56 = vsub.f32 %v4129_v9, %v4193_v48 }
 0x1f3   :  { %v1963_v29 = vadd.f32 %v1962_v40, %v1961_v6  ;;  %v1895_v40 = vmul.f32 %v4287_v44, %v4287_v44  ;;  %v1970_v45 = vsel %vm1686_vm1, %v1894_v33, 0.0  ;;  %v4532_v0 = vsub.f32 %v4133_v19, %v4193_v48 }
 0x1f4   :  { %5701 = vst [vmem:[#allocation15_spill] sm:$0xff] %v4518_v46  ;;  %v4539_v9 = vsub.f32 %v4137_v32, %v4193_v48 }
 0x1f5   :  { %v1965_v60 = vadd.f32 %v1964_v18, %v1963_v29  ;;  %v1896_v18 = vmul.f32 %v4294_v53, %v4294_v53  ;;  %v1972_v13 = vsel %vm1686_vm1, %v1895_v40, 0.0  ;;  %5702 = vst [vmem:[#allocation16_spill] sm:$0xff] %v4525_v56 }
 0x1f6   :  { %5703 = vst [vmem:[#allocation17_spill] sm:$0xff] %v4532_v0 }
 0x1f7   :  { %v1967_v6 = vadd.f32 %v1966_v22, %v1965_v60  ;;  %v1897_v22 = vmul.f32 %v4301_v61, %v4301_v61  ;;  %v1974_v33 = vsel %vm1686_vm1, %v1896_v18, 0.0  ;;  %5704 = vst [vmem:[#allocation18_spill] sm:$0xff] %v4539_v9 }
 0x1f9   :  { %v1969_v29 = vadd.f32 %v1968_v35, %v1967_v6  ;;  %v1898_v35 = vmul.f32 %v4308_v8, %v4308_v8  ;;  %v1976_v40 = vsel %vm1686_vm1, %v1897_v22, 0.0 }
 0x1fb   :  { %v1971_v60 = vadd.f32 %v1970_v45, %v1969_v29  ;;  %v1899_v45 = vmul.f32 %v4315_v17, %v4315_v17  ;;  %v1978_v18 = vsel %vm1686_vm1, %v1898_v35, 0.0 }
 0x1fd   :  { %v1973_v6 = vadd.f32 %v1972_v13, %v1971_v60  ;;  %v1900_v13 = vmul.f32 %v4322_v25, %v4322_v25  ;;  %v1980_v22 = vsel %vm1686_vm1, %v1899_v45, 0.0 }
 0x1ff   :  { %v1975_v29 = vadd.f32 %v1974_v33, %v1973_v6  ;;  %v1901_v33 = vmul.f32 %v4329_v38, %v4329_v38  ;;  %v1982_v35 = vsel %vm1686_vm1, %v1900_v13, 0.0 }
 0x201   :  { %v1977_v60 = vadd.f32 %v1976_v40, %v1975_v29  ;;  %v1902_v40 = vmul.f32 %v4336_v50, %v4336_v50  ;;  %v1984_v45 = vsel %vm1686_vm1, %v1901_v33, 0.0 }
 0x203   :  { %v1979_v6 = vadd.f32 %v1978_v18, %v1977_v60  ;;  %v1903_v18 = vmul.f32 %v4343_v2, %v4343_v2  ;;  %v1986_v13 = vsel %vm1686_vm1, %v1902_v40, 0.0 }
 0x205   :  { %v1981_v29 = vadd.f32 %v1980_v22, %v1979_v6  ;;  %v1904_v22 = vmul.f32 %v4350_v11, %v4350_v11  ;;  %v1988_v33 = vsel %vm1686_vm1, %v1903_v18, 0.0 }
 0x207   :  { %v1983_v60 = vadd.f32 %v1982_v35, %v1981_v29  ;;  %v1905_v35 = vmul.f32 %v4357_v24, %v4357_v24  ;;  %v1990_v40 = vsel %vm1686_vm1, %v1904_v22, 0.0 }
 0x209   :  { %v1985_v6 = vadd.f32 %v1984_v45, %v1983_v60  ;;  %v1906_v45 = vmul.f32 %v4364_v39, %v4364_v39  ;;  %v1992_v18 = vsel %vm1686_vm1, %v1905_v35, 0.0 }
 0x20b   :  { %v1987_v29 = vadd.f32 %v1986_v13, %v1985_v6  ;;  %v1907_v13 = vmul.f32 %v4371_v54, %v4371_v54  ;;  %v1994_v22 = vsel %vm1686_vm1, %v1906_v45, 0.0 }
 0x20d   :  { %v1989_v60 = vadd.f32 %v1988_v33, %v1987_v29  ;;  %v1908_v33 = vmul.f32 %v4378_v58, %v4378_v58  ;;  %v1996_v35 = vsel %vm1686_vm1, %v1907_v13, 0.0 }
 0x20f   :  { %v1991_v6 = vadd.f32 %v1990_v40, %v1989_v60  ;;  %v1909_v40 = vmul.f32 %v4385_v63, %v4385_v63  ;;  %v1998_v45 = vsel %vm1686_vm1, %v1908_v33, 0.0 }
 0x211   :  { %v1993_v29 = vadd.f32 %v1992_v18, %v1991_v6  ;;  %v1910_v18 = vmul.f32 %v4392_v3, %v4392_v3  ;;  %v2000_v13 = vsel %vm1686_vm1, %v1909_v40, 0.0 }
 0x213   :  { %v1995_v60 = vadd.f32 %v1994_v22, %v1993_v29  ;;  %v1911_v22 = vmul.f32 %v4399_v7, %v4399_v7  ;;  %v2002_v33 = vsel %vm1686_vm1, %v1910_v18, 0.0 }
 0x215   :  { %v1997_v6 = vadd.f32 %v1996_v35, %v1995_v60  ;;  %v1912_v35 = vmul.f32 %v4406_v10, %v4406_v10  ;;  %v2004_v40 = vsel %vm1686_vm1, %v1911_v22, 0.0 }
 0x217   :  { %v1999_v29 = vadd.f32 %v1998_v45, %v1997_v6  ;;  %v1913_v45 = vmul.f32 %v4413_v15, %v4413_v15  ;;  %v2006_v18 = vsel %vm1686_vm1, %v1912_v35, 0.0 }
 0x219   :  { %v2001_v60 = vadd.f32 %v2000_v13, %v1999_v29  ;;  %v1914_v13 = vmul.f32 %v4420_v21, %v4420_v21  ;;  %v2008_v22 = vsel %vm1686_vm1, %v1913_v45, 0.0 }
 0x21b   :  { %v2003_v6 = vadd.f32 %v2002_v33, %v2001_v60  ;;  %v1915_v33 = vmul.f32 %v4427_v26, %v4427_v26  ;;  %v2010_v35 = vsel %vm1686_vm1, %v1914_v13, 0.0 }
 0x21d   :  { %v2005_v29 = vadd.f32 %v2004_v40, %v2003_v6  ;;  %v1916_v40 = vmul.f32 %v4434_v31, %v4434_v31  ;;  %v2012_v45 = vsel %vm1686_vm1, %v1915_v33, 0.0 }
 0x21f   :  { %v2007_v60 = vadd.f32 %v2006_v18, %v2005_v29  ;;  %v1917_v18 = vmul.f32 %v4441_v34, %v4441_v34  ;;  %v2014_v13 = vsel %vm1686_vm1, %v1916_v40, 0.0 }
 0x221   :  { %v2009_v6 = vadd.f32 %v2008_v22, %v2007_v60  ;;  %v1918_v22 = vmul.f32 %v4448_v41, %v4448_v41  ;;  %v2016_v33 = vsel %vm1686_vm1, %v1917_v18, 0.0 }
 0x223   :  { %v2011_v29 = vadd.f32 %v2010_v35, %v2009_v6  ;;  %v1919_v35 = vmul.f32 %v4455_v47, %v4455_v47  ;;  %v2018_v40 = vsel %vm1686_vm1, %v1918_v22, 0.0 }
 0x225   :  { %v2013_v60 = vadd.f32 %v2012_v45, %v2011_v29  ;;  %v1920_v45 = vmul.f32 %v4462_v51, %v4462_v51  ;;  %v2020_v18 = vsel %vm1686_vm1, %v1919_v35, 0.0 }
 0x227   :  { %v2015_v6 = vadd.f32 %v2014_v13, %v2013_v60  ;;  %v1921_v13 = vmul.f32 %v4469_v59, %v4469_v59  ;;  %v2022_v22 = vsel %vm1686_vm1, %v1920_v45, 0.0 }
 0x229   :  { %v2017_v29 = vadd.f32 %v2016_v33, %v2015_v6  ;;  %v1922_v33 = vmul.f32 %v4476_v1, %v4476_v1  ;;  %v2024_v35 = vsel %vm1686_vm1, %v1921_v13, 0.0 }
 0x22b   :  { %v2019_v60 = vadd.f32 %v2018_v40, %v2017_v29  ;;  %v1923_v40 = vmul.f32 %v4483_v52, %v4483_v52  ;;  %v2026_v45 = vsel %vm1686_vm1, %v1922_v33, 0.0 }
 0x22d   :  { %v2021_v6 = vadd.f32 %v2020_v18, %v2019_v60  ;;  %v1924_v18 = vmul.f32 %v4490_v14, %v4490_v14  ;;  %v2028_v13 = vsel %vm1686_vm1, %v1923_v40, 0.0 }
 0x22f   :  { %v2023_v29 = vadd.f32 %v2022_v22, %v2021_v6  ;;  %v1925_v22 = vmul.f32 %v4497_v23, %v4497_v23  ;;  %v2030_v33 = vsel %vm1686_vm1, %v1924_v18, 0.0 }
 0x231   :  { %v2025_v60 = vadd.f32 %v2024_v35, %v2023_v29  ;;  %v1926_v35 = vmul.f32 %v4504_v30, %v4504_v30  ;;  %v2032_v40 = vsel %vm1686_vm1, %v1925_v22, 0.0 }
 0x233   :  { %v2027_v6 = vadd.f32 %v2026_v45, %v2025_v60  ;;  %v1927_v45 = vmul.f32 %v4511_v37, %v4511_v37  ;;  %v2034_v18 = vsel %vm1686_vm1, %v1926_v35, 0.0 }
 0x235   :  { %v2029_v29 = vadd.f32 %v2028_v13, %v2027_v6  ;;  %v1928_v13 = vmul.f32 %v4518_v46, %v4518_v46  ;;  %v2036_v22 = vsel %vm1686_vm1, %v1927_v45, 0.0  ;;  %v1930_v46 = vmul.f32 %v4532_v0, %v4532_v0 }
 0x237   :  { %v2031_v60 = vadd.f32 %v2030_v33, %v2029_v29  ;;  %v1929_v33 = vmul.f32 %v4525_v56, %v4525_v56  ;;  %v2038_v35 = vsel %vm1686_vm1, %v1928_v13, 0.0  ;;  %v1931_v56 = vmul.f32 %v4539_v9, %v4539_v9 }
 0x238   :  { %v2042_v13 = vsel %vm1686_vm1, %v1930_v46, 0.0 }
 0x239   :  { %v2033_v6 = vadd.f32 %v2032_v40, %v2031_v60  ;;  %v5705_v40 = vld [vmem:[#allocation2_spill] sm:$0xff]  ;;  %v2040_v45 = vsel %vm1686_vm1, %v1929_v33, 0.0  ;;  %v2044_v33 = vsel %vm1686_vm1, %v1931_v56, 0.0 }
 0x23a   :  { %v4546_v19 = vsub.f32 %v5705_v40, %v4193_v48 }
 0x23b   :  { %v2035_v29 = vadd.f32 %v2034_v18, %v2033_v6  ;;  %v5707_v18 = vld [vmem:[#allocation3_spill] sm:$0xff] }
 0x23c   :  { %5706 = vst [vmem:[#allocation2_spill] sm:$0xff] %v4546_v19  ;;  %v4553_v32 = vsub.f32 %v5707_v18, %v4193_v48  ;;  %v1932_v0 = vmul.f32 %v4546_v19, %v4546_v19 }
 0x23d   :  { %v2037_v60 = vadd.f32 %v2036_v22, %v2035_v29  ;;  %v5709_v22 = vld [vmem:[#allocation4_spill] sm:$0xff] }
 0x23e   :  { %5708 = vst [vmem:[#allocation3_spill] sm:$0xff] %v4553_v32  ;;  %v4560_v40 = vsub.f32 %v5709_v22, %v4193_v48  ;;  %v1933_v9 = vmul.f32 %v4553_v32, %v4553_v32  ;;  %v2046_v46 = vsel %vm1686_vm1, %v1932_v0, 0.0 }
 0x23f   :  { %v2039_v6 = vadd.f32 %v2038_v35, %v2037_v60  ;;  %v5711_v35 = vld [vmem:[#allocation5_spill] sm:$0xff] }
 0x240   :  { %5710 = vst [vmem:[#allocation4_spill] sm:$0xff] %v4560_v40  ;;  %v4567_v18 = vsub.f32 %v5711_v35, %v4193_v48  ;;  %v1934_v19 = vmul.f32 %v4560_v40, %v4560_v40  ;;  %v2048_v56 = vsel %vm1686_vm1, %v1933_v9, 0.0 }
 0x241   :  { %v2041_v29 = vadd.f32 %v2040_v45, %v2039_v6  ;;  %v5713_v45 = vld [vmem:[#allocation6_spill] sm:$0xff] }
 0x242   :  { %5712 = vst [vmem:[#allocation5_spill] sm:$0xff] %v4567_v18  ;;  %v4574_v22 = vsub.f32 %v5713_v45, %v4193_v48  ;;  %v1935_v32 = vmul.f32 %v4567_v18, %v4567_v18  ;;  %v2050_v0 = vsel %vm1686_vm1, %v1934_v19, 0.0 }
 0x243   :  { %v2043_v60 = vadd.f32 %v2042_v13, %v2041_v29  ;;  %v5715_v13 = vld [vmem:[#allocation7_spill] sm:$0xff] }
 0x244   :  { %5714 = vst [vmem:[#allocation6_spill] sm:$0xff] %v4574_v22  ;;  %v4581_v35 = vsub.f32 %v5715_v13, %v4193_v48  ;;  %v1936_v40 = vmul.f32 %v4574_v22, %v4574_v22  ;;  %v2052_v9 = vsel %vm1686_vm1, %v1935_v32, 0.0 }
 0x245   :  { %v2045_v6 = vadd.f32 %v2044_v33, %v2043_v60  ;;  %v5716_v33 = vld [vmem:[#allocation8_spill] sm:$0xff] }
 0x246   :  { %v4588_v45 = vsub.f32 %v5716_v33, %v4193_v48  ;;  %v1937_v18 = vmul.f32 %v4581_v35, %v4581_v35  ;;  %v2054_v19 = vsel %vm1686_vm1, %v1936_v40, 0.0 }
 0x247   :  { %v2047_v29 = vadd.f32 %v2046_v46, %v2045_v6  ;;  %v5718_v46 = vld [vmem:[#allocation9_spill] sm:$0xff] }
 0x248   :  { %5717 = vst [vmem:[#allocation7_spill] sm:$0xff] %v4588_v45  ;;  %v4595_v13 = vsub.f32 %v5718_v46, %v4193_v48  ;;  %v1938_v22 = vmul.f32 %v4588_v45, %v4588_v45  ;;  %v2056_v32 = vsel %vm1686_vm1, %v1937_v18, 0.0 }
 0x249   :  { %v2049_v60 = vadd.f32 %v2048_v56, %v2047_v29  ;;  %v5719_v56 = vld [vmem:[#allocation10_spill] sm:$0xff] }
 0x24a   :  { %v4602_v33 = vsub.f32 %v5719_v56, %v4193_v48  ;;  %v1939_v46 = vmul.f32 %v4595_v13, %v4595_v13  ;;  %v2058_v40 = vsel %vm1686_vm1, %v1938_v22, 0.0 }
 0x24b   :  { %v2051_v6 = vadd.f32 %v2050_v0, %v2049_v60  ;;  %v4609_v0 = vsub.f32 %v4177_v57, %v4193_v48  ;;  %v4623_v57 = vsub.f32 %v4185_v42, %v4193_v48 }
 0x24c   :  { %5720 = vst [vmem:[#allocation8_spill] sm:$0xff] %v4602_v33  ;;  %v1940_v45 = vmul.f32 %v4602_v33, %v4602_v33  ;;  %v2060_v18 = vsel %vm1686_vm1, %v1939_v46, 0.0 }
 0x24d   :  { %v2053_v29 = vadd.f32 %v2052_v9, %v2051_v6  ;;  %5721 = vst [vmem:[#allocation9_spill] sm:$0xff] %v4609_v0  ;;  %v5722_v9 = vld [vmem:[#allocation11_spill] sm:$0xff]  ;;  %v1943_v42 = vmul.f32 %v4623_v57, %v4623_v57 }
 0x24e   :  { %v4616_v56 = vsub.f32 %v5722_v9, %v4193_v48  ;;  %5724 = vst [vmem:[#allocation11_spill] sm:$0xff] %v4623_v57  ;;  %v2062_v22 = vsel %vm1686_vm1, %v1940_v45, 0.0  ;;  %v2621_v45 = vmov 0  }
 0x24f   :  { %v2055_v60 = vadd.f32 %v2054_v19, %v2053_v29  ;;  %v1941_v19 = vmul.f32 %v4609_v0, %v4609_v0  ;;  %2616 = vset.pattern.permute.xlu1 %v2621_v45  ;;  %2617 = vset.pattern.permute.xlu0 %v2621_v45 }
 0x250   :  { %5723 = vst [vmem:[#allocation10_spill] sm:$0xff] %v4616_v56  ;;  %v1942_v9 = vmul.f32 %v4616_v56, %v4616_v56 }
 0x251   :  { %v2057_v6 = vadd.f32 %v2056_v32, %v2055_v60  ;;  %v4630_v32 = vsub.f32 %v4189_v43, %v4193_v48  ;;  %v2068_v43 = vsel %vm1686_vm1, %v1943_v42, 0.0 }
 0x253   :  { %v2059_v29 = vadd.f32 %v2058_v40, %v2057_v6  ;;  %5725 = vst [vmem:[#allocation19_spill] sm:$0xff] %v4630_v32  ;;  %v2064_v40 = vsel %vm1686_vm1, %v1941_v19, 0.0  ;;  %v1944_v46 = vmul.f32 %v4630_v32, %v4630_v32 }
 0x255   :  { %v2061_v60 = vadd.f32 %v2060_v18, %v2059_v29  ;;  %v2066_v29 = vsel %vm1686_vm1, %v1942_v9, 0.0  ;;  %v2070_v56 = vsel %vm1686_vm1, %v1944_v46, 0.0  ;;  %v2157_v46 = vld [vmem:[%s5619_s3] sm:$0xf] }
 0x257   :  { %v2063_v6 = vadd.f32 %v2062_v22, %v2061_v60 }
 0x259   :  { %v2065_v33 = vadd.f32 %v2064_v40, %v2063_v6 }
 0x25b   :  { %v2067_v18 = vadd.f32 %v2066_v29, %v2065_v33  ;;  %v2075_v33 = vld [vmem:[%s5618_s2] sm:$0xf] }
 0x25d   :  { %v2069_v48 = vadd.f32 %v2068_v43, %v2067_v18  ;;  %v5727_v18 = vld [vmem:[#allocation13_spill] sm:$0xff] }
 0x25f   :  { %v2071_v0 = vadd.f32 %v2070_v56, %v2069_v48  ;;  %v5728_v48 = vld [vmem:[#allocation14_spill] sm:$0xff] }
 0x261   :  { %2072 = vadd.xlane.f32.xlu0 %v2071_v0 }
 0x2d4   :  { %v2073_v60 = vpop.xlane.xlu0 %2072 }
 0x2d5   :  { %v2074_v22 = vmul.f32 0.00012207031, %v2073_v60 }
 0x2d7   :  { %v2076_v19 = vadd.f32 1e-05, %v2074_v22 }
 0x2d9   :  { %2618 = vrsqrt.f32 %v2076_v19  ;;  %vm2083_vm3 = vweird.f32 %v2076_v19 }
 0x2df   :  { %v2619_v6 = vpop.eup %2618 }
 0x2e0   :  { %v2078_v40 = vmul.f32 %v2619_v6, %v2076_v19  ;;  %vm2084_vm2 = vweird.f32 %v2619_v6 }
 0x2e1   :  { %vm2085_vm4 = vmor %vm2083_vm3, %vm2084_vm2 }
 0x2e2   :  { %v2079_v32 = vmul.f32 %v2619_v6, %v2078_v40 }
 0x2e4   :  { %v2080_v57 = vmul.f32 0.5, %v2079_v32  ;;  %v5726_v32 = vld [vmem:[#allocation12_spill] sm:$0xff] }
 0x2e6   :  { %v2081_v9 = vsub.f32 1.5, %v2080_v57 }
 0x2e8   :  { %v2082_v56 = vmul.f32 %v2619_v6, %v2081_v9  ;;  %v5729_v9 = vld [vmem:[#allocation15_spill] sm:$0xff] }
 0x2ea   :  { %v2086_v0 = vsel %vm2085_vm4, %v2619_v6, %v2082_v56  ;;  %v5731_v56 = vld [vmem:[#allocation17_spill] sm:$0xff] }
 0x2eb   :  { %v2087_v42 = vmul.f32 %v2086_v0, %v2075_v33  ;;  %v5730_v33 = vld [vmem:[#allocation16_spill] sm:$0xff]  ;;  %v5732_v0 = vld [vmem:[#allocation18_spill] sm:$0xff] }
 0x2ed   :  { %2090 = vperm.xlu1 %2616, %v2087_v42   ;;  %v5734_v42 = vld [vmem:[#allocation2_spill] sm:$0xff] }
 0x2f5   :  { %2160 = vperm.xlu1 %2616, %v2157_v46   ;;  %v5735_v46 = vld [vmem:[#allocation3_spill] sm:$0xff] }
 0x35f   :  { %v4649_v29 = vpop.permute.xlu1 %2090 }
 0x360   :  { %v4653_v57 = vmul.f32 %v4649_v29, %v5726_v32  ;;  %v4657_v43 = vmul.f32 %v4649_v29, %v5727_v18  ;;  %v4661_v45 = vmul.f32 %v4649_v29, %v5728_v48  ;;  %v4665_v60 = vmul.f32 %v4649_v29, %v4209_v4  ;;  %v5737_v18 = vld [vmem:[#allocation4_spill] sm:$0xff] }
 0x361   :  { %v4669_v22 = vmul.f32 %v4649_v29, %v4217_v16  ;;  %v4673_v19 = vmul.f32 %v4649_v29, %v4223_v28  ;;  %v4677_v6 = vmul.f32 %v4649_v29, %v4231_v49  ;;  %v4681_v40 = vmul.f32 %v4649_v29, %v4238_v55 }
 0x362   :  { %v4685_v4 = vmul.f32 %v4649_v29, %v4245_v62  ;;  %v4689_v16 = vmul.f32 %v4649_v29, %v4252_v5  ;;  %v4693_v28 = vmul.f32 %v4649_v29, %v4259_v12  ;;  %v4697_v49 = vmul.f32 %v4649_v29, %v4266_v20 }
 0x363   :  { %v4701_v55 = vmul.f32 %v4649_v29, %v4273_v27  ;;  %v4705_v62 = vmul.f32 %v4649_v29, %v4280_v36  ;;  %v4709_v5 = vmul.f32 %v4649_v29, %v4287_v44  ;;  %v4713_v12 = vmul.f32 %v4649_v29, %v4294_v53 }
 0x364   :  { %v4717_v20 = vmul.f32 %v4649_v29, %v4301_v61  ;;  %v4721_v27 = vmul.f32 %v4649_v29, %v4308_v8  ;;  %v4725_v36 = vmul.f32 %v4649_v29, %v4315_v17  ;;  %v4729_v44 = vmul.f32 %v4649_v29, %v4322_v25 }
 0x365   :  { %v4733_v53 = vmul.f32 %v4649_v29, %v4329_v38  ;;  %v4737_v61 = vmul.f32 %v4649_v29, %v4336_v50  ;;  %v4741_v8 = vmul.f32 %v4649_v29, %v4343_v2  ;;  %v4745_v17 = vmul.f32 %v4649_v29, %v4350_v11 }
 0x366   :  { %v4749_v25 = vmul.f32 %v4649_v29, %v4357_v24  ;;  %v4753_v38 = vmul.f32 %v4649_v29, %v4364_v39  ;;  %v4757_v50 = vmul.f32 %v4649_v29, %v4371_v54  ;;  %v4761_v2 = vmul.f32 %v4649_v29, %v4378_v58 }
 0x367   :  { %v4765_v11 = vmul.f32 %v4649_v29, %v4385_v63  ;;  %v4769_v24 = vmul.f32 %v4649_v29, %v4392_v3  ;;  %v4773_v39 = vmul.f32 %v4649_v29, %v4399_v7  ;;  %v4777_v54 = vmul.f32 %v4649_v29, %v4406_v10 }
 0x368   :  { %v4781_v58 = vmul.f32 %v4649_v29, %v4413_v15  ;;  %v4785_v63 = vmul.f32 %v4649_v29, %v4420_v21  ;;  %v4789_v3 = vmul.f32 %v4649_v29, %v4427_v26  ;;  %v4793_v7 = vmul.f32 %v4649_v29, %v4434_v31 }
 0x369   :  { %v4797_v10 = vmul.f32 %v4649_v29, %v4441_v34  ;;  %v4801_v15 = vmul.f32 %v4649_v29, %v4448_v41  ;;  %v4805_v21 = vmul.f32 %v4649_v29, %v4455_v47  ;;  %v4809_v26 = vmul.f32 %v4649_v29, %v4462_v51 }
 0x36a   :  { %v4813_v31 = vmul.f32 %v4649_v29, %v4469_v59  ;;  %v4817_v34 = vmul.f32 %v4649_v29, %v4476_v1  ;;  %v4821_v41 = vmul.f32 %v4649_v29, %v4483_v52  ;;  %v4825_v47 = vmul.f32 %v4649_v29, %v4490_v14 }
 0x36b   :  { %v4829_v51 = vmul.f32 %v4649_v29, %v4497_v23  ;;  %v4833_v59 = vmul.f32 %v4649_v29, %v4504_v30  ;;  %v4837_v1 = vmul.f32 %v4649_v29, %v4511_v37  ;;  %v4841_v52 = vmul.f32 %v4649_v29, %v5729_v9  ;;  %v5739_v9 = vld [vmem:[#allocation5_spill] sm:$0xff] }
 0x36c   :  { %v4845_v14 = vmul.f32 %v4649_v29, %v5730_v33  ;;  %v4849_v23 = vmul.f32 %v4649_v29, %v5731_v56  ;;  %v4853_v30 = vmul.f32 %v4649_v29, %v5732_v0  ;;  %v4857_v37 = vmul.f32 %v4649_v29, %v5734_v42  ;;  %v5741_v56 = vld [vmem:[#allocation6_spill] sm:$0xff] }
 0x36d   :  { %v4861_v32 = vmul.f32 %v4649_v29, %v5735_v46  ;;  %v4865_v48 = vmul.f32 %v4649_v29, %v5737_v18  ;;  %v4869_v33 = vmul.f32 %v4649_v29, %v5739_v9  ;;  %v4873_v0 = vmul.f32 %v4649_v29, %v5741_v56  ;;  %v5744_v46 = vld [vmem:[#allocation7_spill] sm:$0xff]  ;;  %v5746_v9 = vld [vmem:[#allocation8_spill] sm:$0xff]  ;;  %v5747_v56 = vld [vmem:[#allocation9_spill] sm:$0xff] }
 0x36e   :  { %5733 = vst [vmem:[#allocation12_spill] sm:$0xff] %v4853_v30  ;;  %v4875_v30 = vpop.permute.xlu1 %2160  ;;  %v4879_v42 = vmul.f32 %v4649_v29, %v4581_v35  ;;  %v4887_v18 = vmul.f32 %v4649_v29, %v4595_v13 }
 0x36f   :  { %5736 = vst [vmem:[#allocation13_spill] sm:$0xff] %v4861_v32  ;;  %v4883_v32 = vmul.f32 %v4649_v29, %v5744_v46 }
 0x370   :  { %5738 = vst [vmem:[#allocation14_spill] sm:$0xff] %v4865_v48  ;;  %v5748_v48 = vld [vmem:[#allocation10_spill] sm:$0xff] }
 0x371   :  { %5740 = vst [vmem:[#allocation15_spill] sm:$0xff] %v4869_v33  ;;  %v4891_v33 = vmul.f32 %v4649_v29, %v5746_v9  ;;  %v4899_v35 = vmul.f32 %v4649_v29, %v5748_v48  ;;  %v4911_v9 = vadd.f32 %v4875_v30, %v4653_v57  ;;  %v4919_v48 = vadd.f32 %v4875_v30, %v4661_v45 }
 0x372   :  { %5742 = vst [vmem:[#allocation16_spill] sm:$0xff] %v4873_v0  ;;  %v4895_v0 = vmul.f32 %v4649_v29, %v5747_v56  ;;  %v4915_v56 = vadd.f32 %v4875_v30, %v4657_v43  ;;  %v4931_v57 = vadd.f32 %v4875_v30, %v4673_v19  ;;  %v4935_v43 = vadd.f32 %v4875_v30, %v4677_v6 }
 0x373   :  { %5743 = vst [vmem:[#allocation17_spill] sm:$0xff] %v4879_v42  ;;  %v5749_v42 = vld [vmem:[#allocation11_spill] sm:$0xff]  ;;  %v4939_v45 = vadd.f32 %v4875_v30, %v4681_v40  ;;  %v4951_v19 = vadd.f32 %v4875_v30, %v4693_v28  ;;  %v4955_v6 = vadd.f32 %v4875_v30, %v4697_v49  ;;  %v4959_v40 = vadd.f32 %v4875_v30, %v4701_v55 }
 0x374   :  { %5745 = vst [vmem:[#allocation18_spill] sm:$0xff] %v4883_v32  ;;  %v4903_v46 = vmul.f32 %v4649_v29, %v5749_v42  ;;  %v5750_v32 = vld [vmem:[#allocation19_spill] sm:$0xff]  ;;  %v4923_v42 = vadd.f32 %v4875_v30, %v4665_v60  ;;  %v4943_v60 = vadd.f32 %v4875_v30, %v4685_v4  ;;  %v4963_v4 = vadd.f32 %v4875_v30, %v4705_v62 }
 0x375   :  { %v4907_v13 = vmul.f32 %v4649_v29, %v5750_v32  ;;  %5751 = vst [vmem:[#allocation2_spill] sm:$0xff] %v4911_v9  ;;  %v4927_v29 = vadd.f32 %v4875_v30, %v4669_v22  ;;  %v4947_v22 = vadd.f32 %v4875_v30, %v4689_v16  ;;  %v4967_v16 = vadd.f32 %v4875_v30, %v4709_v5  ;;  %v5774_v32 = vld [vmem:[#allocation12_spill] sm:$0xff] }
 0x376   :  { %5752 = vst [vmem:[#allocation3_spill] sm:$0xff] %v4963_v4  ;;  %v4971_v28 = vadd.f32 %v4875_v30, %v4713_v12  ;;  %v4975_v49 = vadd.f32 %v4875_v30, %v4717_v20  ;;  %v4979_v55 = vadd.f32 %v4875_v30, %v4721_v27  ;;  %v4983_v62 = vadd.f32 %v4875_v30, %v4725_v36 }
 0x377   :  { %v4987_v5 = vadd.f32 %v4875_v30, %v4729_v44  ;;  %v4991_v12 = vadd.f32 %v4875_v30, %v4733_v53  ;;  %v4995_v20 = vadd.f32 %v4875_v30, %v4737_v61  ;;  %v4999_v27 = vadd.f32 %v4875_v30, %v4741_v8 }
 0x378   :  { %5753 = vst [vmem:[#allocation4_spill] sm:$0xff] %v4971_v28  ;;  %v5003_v36 = vadd.f32 %v4875_v30, %v4745_v17  ;;  %v5007_v44 = vadd.f32 %v4875_v30, %v4749_v25  ;;  %v5011_v53 = vadd.f32 %v4875_v30, %v4753_v38  ;;  %v5015_v61 = vadd.f32 %v4875_v30, %v4757_v50 }
 0x379   :  { %5754 = vst [vmem:[#allocation5_spill] sm:$0xff] %v4975_v49  ;;  %v5019_v8 = vadd.f32 %v4875_v30, %v4761_v2  ;;  %v5023_v17 = vadd.f32 %v4875_v30, %v4765_v11  ;;  %v5027_v25 = vadd.f32 %v4875_v30, %v4769_v24  ;;  %v5031_v38 = vadd.f32 %v4875_v30, %v4773_v39 }
 0x37a   :  { %5755 = vst [vmem:[#allocation6_spill] sm:$0xff] %v4983_v62  ;;  %v5035_v50 = vadd.f32 %v4875_v30, %v4777_v54  ;;  %v5039_v2 = vadd.f32 %v4875_v30, %v4781_v58  ;;  %v5043_v11 = vadd.f32 %v4875_v30, %v4785_v63  ;;  %v5047_v24 = vadd.f32 %v4875_v30, %v4789_v3 }
 0x37b   :  { %5756 = vst [vmem:[#allocation7_spill] sm:$0xff] %v4991_v12  ;;  %v5051_v39 = vadd.f32 %v4875_v30, %v4793_v7  ;;  %v5055_v54 = vadd.f32 %v4875_v30, %v4797_v10  ;;  %v5059_v58 = vadd.f32 %v4875_v30, %v4801_v15  ;;  %v5063_v63 = vadd.f32 %v4875_v30, %v4805_v21 }
 0x37c   :  { %5757 = vst [vmem:[#allocation8_spill] sm:$0xff] %v4999_v27  ;;  %v5067_v3 = vadd.f32 %v4875_v30, %v4809_v26  ;;  %v5071_v7 = vadd.f32 %v4875_v30, %v4813_v31  ;;  %v5075_v10 = vadd.f32 %v4875_v30, %v4817_v34  ;;  %v5079_v15 = vadd.f32 %v4875_v30, %v4821_v41 }
 0x37d   :  { %5758 = vst [vmem:[#allocation9_spill] sm:$0xff] %v5007_v44  ;;  %v5083_v21 = vadd.f32 %v4875_v30, %v4825_v47  ;;  %v5087_v26 = vadd.f32 %v4875_v30, %v4829_v51  ;;  %v5091_v31 = vadd.f32 %v4875_v30, %v4833_v59  ;;  %v5095_v34 = vadd.f32 %v4875_v30, %v4837_v1 }
 0x37e   :  { %5759 = vst [vmem:[#allocation10_spill] sm:$0xff] %v5015_v61  ;;  %v5099_v41 = vadd.f32 %v4875_v30, %v4841_v52  ;;  %v5103_v47 = vadd.f32 %v4875_v30, %v4845_v14  ;;  %v5107_v51 = vadd.f32 %v4875_v30, %v4849_v23  ;;  %v5111_v59 = vadd.f32 %v4875_v30, %v5774_v32 }
 0x37f   :  { %5760 = vst [vmem:[#allocation11_spill] sm:$0xff] %v5023_v17  ;;  %v5115_v1 = vadd.f32 %v4875_v30, %v4857_v37 }
 0x380   :  { %5761 = vst [vmem:[#allocation19_spill] sm:$0xff] %v5031_v38 }
 0x381   :  { %5762 = vst [vmem:[#allocation20_spill] sm:$0xff] %v5039_v2 }
 0x382   :  { %5763 = vst [vmem:[#allocation21_spill] sm:$0xff] %v5047_v24 }
 0x383   :  { %5764 = vst [vmem:[#allocation22_spill] sm:$0xff] %v5055_v54 }
 0x384   :  { %5765 = vst [vmem:[#allocation23_spill] sm:$0xff] %v5063_v63 }
 0x385   :  { %5766 = vst [vmem:[#allocation24_spill] sm:$0xff] %v5071_v7 }
 0x386   :  { %5767 = vst [vmem:[#allocation25_spill] sm:$0xff] %v5079_v15 }
 0x387   :  { %5768 = vst [vmem:[#allocation26_spill] sm:$0xff] %v5087_v26 }
 0x388   :  { %5769 = vst [vmem:[#allocation27_spill] sm:$0xff] %v5091_v31 }
 0x389   :  { %5770 = vst [vmem:[#allocation28_spill] sm:$0xff] %v5095_v34  ;;  %v5777_v34 = vld [vmem:[#allocation13_spill] sm:$0xff] }
 0x38a   :  { %5771 = vst [vmem:[#allocation29_spill] sm:$0xff] %v5099_v41  ;;  %v5119_v52 = vadd.f32 %v4875_v30, %v5777_v34  ;;  %v5779_v41 = vld [vmem:[#allocation14_spill] sm:$0xff] }
 0x38b   :  { %5772 = vst [vmem:[#allocation30_spill] sm:$0xff] %v5103_v47  ;;  %v5123_v14 = vadd.f32 %v4875_v30, %v5779_v41  ;;  %v5781_v47 = vld [vmem:[#allocation15_spill] sm:$0xff]  ;;  %v5143_v41 = vadd.f32 %v4875_v30, %v4887_v18  ;;  %v5165_v18 = vadd.f32 %v4875_v30, %v4903_v46  ;;  %v5187_v46 = vmul.f32 0.2, %v4939_v45 }
 0x38c   :  { %5773 = vst [vmem:[#allocation31_spill] sm:$0xff] %v5107_v51  ;;  %v5127_v23 = vadd.f32 %v4875_v30, %v5781_v47  ;;  %v5783_v51 = vld [vmem:[#allocation16_spill] sm:$0xff]  ;;  %v5150_v47 = vadd.f32 %v4875_v30, %v4891_v33  ;;  %v5171_v33 = vmul.f32 0.2, %v4923_v42 }
 0x38d   :  { %5775 = vst [vmem:[#allocation12_spill] sm:$0xff] %v5111_v59  ;;  %v5131_v32 = vadd.f32 %v4875_v30, %v5783_v51  ;;  %v5785_v59 = vld [vmem:[#allocation17_spill] sm:$0xff]  ;;  %v5154_v51 = vadd.f32 %v4875_v30, %v4895_v0  ;;  %v5174_v0 = vmul.f32 0.2, %v4927_v29 }
 0x38e   :  { %5776 = vst [vmem:[#allocation32_spill] sm:$0xff] %v5115_v1  ;;  %v5135_v37 = vadd.f32 %v4875_v30, %v5785_v59  ;;  %v5787_v1 = vld [vmem:[#allocation18_spill] sm:$0xff]  ;;  %v5158_v59 = vadd.f32 %v4875_v30, %v4899_v35  ;;  %v5178_v35 = vadd.f32 %v4875_v30, %v4907_v13  ;;  %v5201_v13 = vmul.f32 0.2, %v4955_v6 }
 0x38f   :  { %5778 = vst [vmem:[#allocation13_spill] sm:$0xff] %v5119_v52  ;;  %v5139_v34 = vadd.f32 %v4875_v30, %v5787_v1  ;;  %v5161_v1 = vmul.f32 0.2, %v4915_v56  ;;  %v5215_v52 = vmul.f32 0.2, %v4971_v28 }
 0x390   :  { %5780 = vst [vmem:[#allocation14_spill] sm:$0xff] %v5123_v14  ;;  %v5146_v14 = vmul.f32 0.2, %v4911_v9  ;;  %v5218_v30 = vmul.f32 0.2, %v4975_v49 }
 0x391   :  { %5782 = vst [vmem:[#allocation15_spill] sm:$0xff] %v5127_v23  ;;  %v5212_v23 = vmul.f32 0.2, %v4967_v16  ;;  %v5223_v9 = vmul.f32 0.2, %v4979_v55 }
 0x392   :  { %5784 = vst [vmem:[#allocation16_spill] sm:$0xff] %v5131_v32  ;;  %v2292_v32 = vmax.f32 %v4915_v56, %v5161_v1  ;;  %v5229_v56 = vmul.f32 0.2, %v4987_v5  ;;  %v2294_v1 = vmax.f32 %v4923_v42, %v5171_v33  ;;  %v5234_v28 = vmul.f32 0.2, %v4991_v12 }
 0x393   :  { %5786 = vst [vmem:[#allocation17_spill] sm:$0xff] %v5135_v37  ;;  %v5207_v37 = vmul.f32 0.2, %v4963_v4  ;;  %v5226_v4 = vmul.f32 0.2, %v4983_v62 }
 0x394   :  { %5788 = vst [vmem:[#allocation18_spill] sm:$0xff] %v5139_v34  ;;  %v5196_v34 = vmul.f32 0.2, %v4951_v19  ;;  %v5237_v49 = vmul.f32 0.2, %v4995_v20 }
 0x395   :  { %5789 = vst [vmem:[#allocation33_spill] sm:$0xff] %v5143_v41  ;;  %v5168_v41 = vmul.f32 0.2, %v4919_v48  ;;  %v5245_v62 = vmul.f32 0.2, %v5003_v36 }
 0x396   :  { %5790 = vst [vmem:[#allocation34_spill] sm:$0xff] %v5146_v14  ;;  %v5240_v14 = vmul.f32 0.2, %v4999_v27  ;;  %v5251_v42 = vmul.f32 0.2, %v5011_v53 }
 0x397   :  { %5791 = vst [vmem:[#allocation35_spill] sm:$0xff] %v5150_v47  ;;  %v5193_v47 = vmul.f32 0.2, %v4947_v22  ;;  %v5256_v12 = vmul.f32 0.2, %v5015_v61 }
 0x398   :  { %5792 = vst [vmem:[#allocation36_spill] sm:$0xff] %v5154_v51  ;;  %v5181_v51 = vmul.f32 0.2, %v4931_v57  ;;  %v5259_v27 = vmul.f32 0.2, %v5019_v8 }
 0x399   :  { %5793 = vst [vmem:[#allocation37_spill] sm:$0xff] %v5158_v59  ;;  %v5184_v59 = vmul.f32 0.2, %v4935_v43  ;;  %v5278_v61 = vmul.f32 0.2, %v5039_v2 }
 0x39a   :  { %5794 = vst [vmem:[#allocation38_spill] sm:$0xff] %v5165_v18  ;;  %v5190_v18 = vmul.f32 0.2, %v4943_v60  ;;  %v2296_v33 = vmax.f32 %v4931_v57, %v5181_v51  ;;  %v5273_v57 = vmul.f32 0.2, %v5035_v50  ;;  %v2298_v51 = vmax.f32 %v4939_v45, %v5187_v46 }
 0x39b   :  { %5795 = vst [vmem:[#allocation39_spill] sm:$0xff] %v5168_v41  ;;  %v5262_v41 = vmul.f32 0.2, %v5023_v17  ;;  %v5281_v17 = vmul.f32 0.2, %v5043_v11  ;;  %v2300_v46 = vmax.f32 %v4947_v22, %v5193_v47  ;;  %v2302_v47 = vmax.f32 %v4955_v6, %v5201_v13  ;;  %v5817_v13 = vld [vmem:[#allocation3_spill] sm:$0xff] }
 0x39c   :  { %5796 = vst [vmem:[#allocation40_spill] sm:$0xff] %v5178_v35  ;;  %v5204_v35 = vmul.f32 0.2, %v4959_v40  ;;  %v5295_v45 = vmul.f32 0.2, %v5059_v58 }
 0x39d   :  { %5797 = vst [vmem:[#allocation41_spill] sm:$0xff] %v5226_v4  ;;  %v5248_v4 = vmul.f32 0.2, %v5007_v44  ;;  %v5267_v44 = vmul.f32 0.2, %v5027_v25 }
 0x39e   :  { %5798 = vst [vmem:[#allocation42_spill] sm:$0xff] %v5240_v14  ;;  %v2297_v14 = vmax.f32 %v4935_v43, %v5184_v59  ;;  %v5284_v43 = vmul.f32 0.2, %v5047_v24  ;;  %v2299_v59 = vmax.f32 %v4943_v60, %v5190_v18  ;;  %v5300_v2 = vmul.f32 0.2, %v5063_v63 }
 0x39f   :  { %5799 = vst [vmem:[#allocation43_spill] sm:$0xff] %v5248_v4  ;;  %v5270_v4 = vmul.f32 0.2, %v5031_v38  ;;  %v5289_v38 = vmul.f32 0.2, %v5051_v39  ;;  %v2301_v18 = vmax.f32 %v4951_v19, %v5196_v34  ;;  %v2303_v34 = vmax.f32 %v4959_v40, %v5204_v35 }
 0x3a0   :  { %5801 = vst [vmem:[#allocation45_spill] sm:$0xff] %v5278_v61  ;;  %v5303_v24 = vmul.f32 0.2, %v5067_v3  ;;  %v5306_v60 = vmul.f32 0.2, %v5071_v7  ;;  %v5815_v61 = vld [vmem:[#allocation31_spill] sm:$0xff]  ;;  %v2305_v35 = vmax.f32 %v4967_v16, %v5212_v23 }
 0x3a1   :  { %5800 = vst [vmem:[#allocation44_spill] sm:$0xff] %v5270_v4  ;;  %v5292_v4 = vmul.f32 0.2, %v5055_v54  ;;  %v5311_v54 = vmul.f32 0.2, %v5075_v10  ;;  %v5831_v16 = vld [vmem:[#allocation5_spill] sm:$0xff] }
 0x3a2   :  { %5802 = vst [vmem:[#allocation46_spill] sm:$0xff] %v5284_v43  ;;  %v5317_v22 = vmul.f32 0.2, %v5083_v21  ;;  %v5322_v63 = vmul.f32 0.2, %v5087_v26  ;;  %v2304_v26 = vmax.f32 %v5817_v13, %v5207_v37  ;;  %v2420_v37 = vrot.slane %v2294_v1, 4 }
 0x3a3   :  { %5803 = vst [vmem:[#allocation47_spill] sm:$0xff] %v5292_v4  ;;  %v5314_v4 = vmul.f32 0.2, %v5079_v15  ;;  %v5325_v7 = vmul.f32 0.2, %v5091_v31  ;;  %v5811_v15 = vld [vmem:[#allocation29_spill] sm:$0xff]  ;;  %v2307_v23 = vmax.f32 %v5831_v16, %v5218_v30 }
 0x3a4   :  { %5804 = vst [vmem:[#allocation48_spill] sm:$0xff] %v5300_v2  ;;  %v5813_v2 = vld [vmem:[#allocation30_spill] sm:$0xff]  ;;  %v5339_v6 = vmul.f32 0.2, %v5815_v61  ;;  %v5825_v61 = vld [vmem:[#allocation4_spill] sm:$0xff]  ;;  %v5826_v13 = vld [vmem:[#allocation15_spill] sm:$0xff] }
 0x3a5   :  { %5805 = vst [vmem:[#allocation49_spill] sm:$0xff] %v5306_v60  ;;  %v5809_v60 = vld [vmem:[#allocation28_spill] sm:$0xff]  ;;  %v5336_v43 = vmul.f32 0.2, %v5813_v2  ;;  %v5824_v2 = vld [vmem:[#allocation14_spill] sm:$0xff]  ;;  %v5833_v1 = vld [vmem:[#allocation33_spill] sm:$0xff] }
 0x3a6   :  { %5806 = vst [vmem:[#allocation50_spill] sm:$0xff] %v5314_v4  ;;  %v5328_v19 = vmul.f32 0.2, %v5809_v60  ;;  %v5333_v4 = vmul.f32 0.2, %v5811_v15  ;;  %v5820_v60 = vld [vmem:[#allocation32_spill] sm:$0xff] }
 0x3a7   :  { %5807 = vst [vmem:[#allocation51_spill] sm:$0xff] %v5322_v63  ;;  %v5818_v63 = vld [vmem:[#allocation12_spill] sm:$0xff]  ;;  %v2419_v15 = vrot.slane %v2292_v32, 4  ;;  %v5836_v30 = vld [vmem:[#allocation34_spill] sm:$0xff] }
 0x3a8   :  { %5808 = vst [vmem:[#allocation52_spill] sm:$0xff] %v5325_v7  ;;  %v5344_v31 = vmul.f32 0.2, %v5818_v63  ;;  %v5822_v7 = vld [vmem:[#allocation13_spill] sm:$0xff]  ;;  %v5360_v63 = vmul.f32 0.2, %v5826_v13 }
 0x3a9   :  { %5810 = vst [vmem:[#allocation53_spill] sm:$0xff] %v5328_v19  ;;  %v5347_v19 = vmul.f32 0.2, %v5820_v60  ;;  %v5350_v40 = vmul.f32 0.2, %v5822_v7  ;;  %v2422_v7 = vrot.slane %v2298_v51, 4 }
 0x3aa   :  { %5812 = vst [vmem:[#allocation54_spill] sm:$0xff] %v5333_v4  ;;  %v5376_v13 = vmul.f32 0.2, %v5833_v1  ;;  %v2424_v51 = vrot.slane %v2302_v47, 4  ;;  %v2314_v1 = vmax.f32 %v5003_v36, %v5245_v62 }
 0x3ab   :  { %5814 = vst [vmem:[#allocation55_spill] sm:$0xff] %v5336_v43  ;;  %v5355_v43 = vmul.f32 0.2, %v5824_v2  ;;  %v2308_v2 = vmax.f32 %v4979_v55, %v5223_v9  ;;  %v5838_v55 = vld [vmem:[#allocation39_spill] sm:$0xff] }
 0x3ac   :  { %5816 = vst [vmem:[#allocation56_spill] sm:$0xff] %v5339_v6  ;;  %v2306_v6 = vmax.f32 %v5825_v61, %v5215_v52  ;;  %v2423_v61 = vrot.slane %v2300_v46, 4  ;;  %v5832_v52 = vld [vmem:[#allocation18_spill] sm:$0xff]  ;;  %v5839_v46 = vmax.f32 %v4919_v48, %v5838_v55  ;;  %v2316_v48 = vmax.f32 %v5011_v53, %v5251_v42  ;;  %v5843_v53 = vld [vmem:[#allocation41_spill] sm:$0xff] }
 0x3ad   :  { %5819 = vst [vmem:[#allocation3_spill] sm:$0xff] %v5344_v31  ;;  %v5828_v31 = vld [vmem:[#allocation16_spill] sm:$0xff]  ;;  %v5373_v32 = vmul.f32 0.2, %v5832_v52  ;;  %v2320_v42 = vmax.f32 %v5027_v25, %v5267_v44  ;;  %v5846_v44 = vld [vmem:[#allocation7_spill] sm:$0xff]  ;;  %v2324_v25 = vmax.f32 %v5043_v11, %v5281_v17  ;;  %v5850_v17 = vld [vmem:[#allocation9_spill] sm:$0xff] }
 0x3ae   :  { %5821 = vst [vmem:[#allocation57_spill] sm:$0xff] %v5347_v19  ;;  %v5363_v60 = vmul.f32 0.2, %v5828_v31  ;;  %v2421_v19 = vrot.slane %v2296_v33, 4  ;;  %v2310_v33 = vmax.f32 %v4987_v5, %v5229_v56  ;;  %v2452_v52 = vsel %vm1686_vm1, %v5839_v46, %v2420_v37 }
 0x3af   :  { %5823 = vst [vmem:[#allocation58_spill] sm:$0xff] %v5350_v40  ;;  %v5829_v40 = vld [vmem:[#allocation17_spill] sm:$0xff]  ;;  %v5840_v5 = vmax.f32 %v4927_v29, %v5174_v0  ;;  %v2455_v62 = vsel %vm1686_vm1, %v2299_v59, %v2423_v61  ;;  %v2456_v0 = vsel %vm1686_vm1, %v2301_v18, %v2424_v51  ;;  %v2322_v18 = vmax.f32 %v5035_v50, %v5273_v57  ;;  %v5847_v50 = vld [vmem:[#allocation42_spill] sm:$0xff]  ;;  %v5848_v57 = vld [vmem:[#allocation8_spill] sm:$0xff] }
 0x3b0   :  { %5827 = vst [vmem:[#allocation4_spill] sm:$0xff] %v5360_v63  ;;  %v5366_v4 = vmul.f32 0.2, %v5829_v40  ;;  %v2312_v40 = vmax.f32 %v4995_v20, %v5237_v49  ;;  %v5835_v63 = vld [vmem:[#allocation2_spill] sm:$0xff]  ;;  %v2454_v20 = vsel %vm1686_vm1, %v2297_v14, %v2422_v7  ;;  %v5842_v29 = vld [vmem:[#allocation37_spill] sm:$0xff]  ;;  %v2318_v7 = vmax.f32 %v5019_v8, %v5259_v27  ;;  %v5845_v27 = vld [vmem:[#allocation40_spill] sm:$0xff] }
 0x3b1   :  { %5834 = vst [vmem:[#allocation5_spill] sm:$0xff] %v5376_v13  ;;  %v5837_v16 = vmax.f32 %v5835_v63, %v5836_v30  ;;  %v2426_v13 = vrot.slane %v2306_v6, 4  ;;  %v2453_v49 = vsel %vm1686_vm1, %v5840_v5, %v2421_v19  ;;  %v5841_v63 = vld [vmem:[#allocation35_spill] sm:$0xff]  ;;  %v5410_v36 = vmul.f32 0.2, %v5842_v29 }
 0x3b2   :  { %5830 = vst [vmem:[#allocation16_spill] sm:$0xff] %v5366_v4  ;;  %v2425_v4 = vrot.slane %v2304_v26, 4  ;;  %v2427_v26 = vrot.slane %v2308_v2, 4  ;;  %v2428_v14 = vrot.slane %v2310_v33, 4  ;;  %v5844_v2 = vld [vmem:[#allocation6_spill] sm:$0xff]  ;;  %v2429_v59 = vrot.slane %v2312_v40, 4 }
 0x3b3   :  { %v2451_v9 = vsel %vm1686_vm1, %v5837_v16, %v2419_v15  ;;  %v5401_v15 = vmul.f32 0.2, %v5841_v63  ;;  %2516 = vst [vmem:[%s5620_s4 + $0x8] sm:$0xff] %v2452_v52  ;;  %v2309_v56 = vmax.f32 %v5844_v2, %v5843_v53  ;;  %v5427_v8 = vmul.f32 0.2, %v5845_v27  ;;  %v5862_v53 = vld [vmem:[#allocation29_spill] sm:$0xff] }
 0x3b4   :  { %2515 = vst [vmem:[%s5620_s4] sm:$0xff] %v2451_v9  ;;  %v2457_v47 = vsel %vm1686_vm1, %v2303_v34, %v2425_v4  ;;  %v2430_v19 = vrot.slane %v2314_v1, 4  ;;  %v2458_v6 = vsel %vm1686_vm1, %v2305_v35, %v2426_v13  ;;  %v2311_v4 = vmax.f32 %v5846_v44, %v5234_v28  ;;  %v5849_v28 = vld [vmem:[#allocation43_spill] sm:$0xff] }
 0x3b5   :  { %2517 = vst [vmem:[%s5620_s4 + $0x10] sm:$0xff] %v2453_v49  ;;  %v2431_v34 = vrot.slane %v2316_v48, 4  ;;  %v2459_v40 = vsel %vm1686_vm1, %v2307_v23, %v2427_v26  ;;  %v2313_v35 = vmax.f32 %v5848_v57, %v5847_v50  ;;  %v2326_v37 = vmax.f32 %v5051_v39, %v5289_v38  ;;  %v5851_v38 = vld [vmem:[#allocation10_spill] sm:$0xff]  ;;  %v5858_v48 = vld [vmem:[#allocation27_spill] sm:$0xff]  ;;  %v5869_v57 = vld [vmem:[#allocation57_spill] sm:$0xff] }
 0x3b6   :  { %2518 = vst [vmem:[%s5620_s4 + $0x18] sm:$0xff] %v2454_v20  ;;  %v2432_v13 = vrot.slane %v2318_v7, 4  ;;  %v2460_v61 = vsel %vm1686_vm1, %v2309_v56, %v2428_v14  ;;  %v2315_v11 = vmax.f32 %v5850_v17, %v5849_v28  ;;  %v2328_v23 = vmax.f32 %v5059_v58, %v5295_v45  ;;  %v5852_v58 = vld [vmem:[#allocation11_spill] sm:$0xff]  ;;  %v5857_v20 = vld [vmem:[#allocation52_spill] sm:$0xff]  ;;  %v5871_v28 = vld [vmem:[#allocation49_spill] sm:$0xff] }
 0x3b7   :  { %2519 = vst [vmem:[%s5620_s4 + $0x20] sm:$0xff] %v2455_v62  ;;  %v2433_v52 = vrot.slane %v2320_v42, 4  ;;  %v2461_v1 = vsel %vm1686_vm1, %v2311_v4, %v2429_v59  ;;  %v2317_v39 = vmax.f32 %v5851_v38, %v5256_v12  ;;  %v2330_v33 = vmax.f32 %v5067_v3, %v5303_v24  ;;  %v5853_v12 = vld [vmem:[#allocation44_spill] sm:$0xff]  ;;  %v5854_v24 = vld [vmem:[#allocation19_spill] sm:$0xff] }
 0x3b8   :  { %2520 = vst [vmem:[%s5620_s4 + $0x28] sm:$0xff] %v2456_v0  ;;  %v2434_v51 = vrot.slane %v2322_v18, 4  ;;  %v2462_v30 = vsel %vm1686_vm1, %v2313_v35, %v2430_v19  ;;  %v2319_v45 = vmax.f32 %v5852_v58, %v5262_v41  ;;  %v2332_v16 = vmax.f32 %v5075_v10, %v5311_v54  ;;  %v5855_v54 = vld [vmem:[#allocation45_spill] sm:$0xff]  ;;  %v5856_v10 = vld [vmem:[#allocation20_spill] sm:$0xff]  ;;  %v5861_v0 = vld [vmem:[#allocation54_spill] sm:$0xff] }
 0x3b9   :  { %2521 = vst [vmem:[%s5620_s4 + $0x30] sm:$0xff] %v2457_v47  ;;  %v2435_v9 = vrot.slane %v2324_v25, 4  ;;  %v2463_v55 = vsel %vm1686_vm1, %v2315_v11, %v2431_v34  ;;  %v2321_v3 = vmax.f32 %v5854_v24, %v5853_v12  ;;  %v2334_v46 = vmax.f32 %v5083_v21, %v5317_v22  ;;  %v5859_v21 = vld [vmem:[#allocation46_spill] sm:$0xff]  ;;  %v5860_v22 = vld [vmem:[#allocation21_spill] sm:$0xff]  ;;  %v5863_v59 = vld [vmem:[#allocation47_spill] sm:$0xff] }
 0x3ba   :  { %2522 = vst [vmem:[%s5620_s4 + $0x38] sm:$0xff] %v2458_v6  ;;  %v2436_v5 = vrot.slane %v2326_v37, 4  ;;  %v2464_v49 = vsel %vm1686_vm1, %v2317_v39, %v2432_v13  ;;  %v2323_v41 = vmax.f32 %v5856_v10, %v5855_v54  ;;  %v2336_v26 = vmax.f32 %v5858_v48, %v5857_v20  ;;  %v5864_v47 = vld [vmem:[#allocation22_spill] sm:$0xff]  ;;  %v5865_v19 = vld [vmem:[#allocation56_spill] sm:$0xff]  ;;  %v5866_v6 = vld [vmem:[#allocation31_spill] sm:$0xff] }
 0x3bb   :  { %2523 = vst [vmem:[%s5620_s4 + $0x40] sm:$0xff] %v2459_v40  ;;  %v2437_v62 = vrot.slane %v2328_v23, 4  ;;  %v2465_v7 = vsel %vm1686_vm1, %v2319_v45, %v2433_v52  ;;  %v2325_v14 = vmax.f32 %v5860_v22, %v5859_v21  ;;  %v2338_v2 = vmax.f32 %v5862_v53, %v5861_v0  ;;  %v5867_v34 = vld [vmem:[#allocation48_spill] sm:$0xff]  ;;  %v5868_v40 = vld [vmem:[#allocation23_spill] sm:$0xff]  ;;  %v5873_v23 = vld [vmem:[#allocation14_spill] sm:$0xff] }
 0x3bc   :  { %2524 = vst [vmem:[%s5620_s4 + $0x48] sm:$0xff] %v2460_v61  ;;  %v2438_v56 = vrot.slane %v2330_v33, 4  ;;  %v2466_v42 = vsel %vm1686_vm1, %v2321_v3, %v2434_v51  ;;  %v2327_v18 = vmax.f32 %v5864_v47, %v5863_v59  ;;  %v2340_v44 = vmax.f32 %v5866_v6, %v5865_v19  ;;  %v5870_v35 = vld [vmem:[#allocation32_spill] sm:$0xff]  ;;  %v5874_v39 = vld [vmem:[#allocation50_spill] sm:$0xff]  ;;  %v5875_v33 = vld [vmem:[#allocation25_spill] sm:$0xff] }
 0x3bd   :  { %2525 = vst [vmem:[%s5620_s4 + $0x50] sm:$0xff] %v2461_v1  ;;  %v2439_v4 = vrot.slane %v2332_v16, 4  ;;  %v2467_v25 = vsel %vm1686_vm1, %v2323_v41, %v2435_v9  ;;  %v2329_v50 = vmax.f32 %v5868_v40, %v5867_v34  ;;  %v2342_v37 = vmax.f32 %v5870_v35, %v5869_v57  ;;  %v5872_v17 = vld [vmem:[#allocation24_spill] sm:$0xff]  ;;  %v5877_v16 = vld [vmem:[#allocation26_spill] sm:$0xff]  ;;  %v5887_v0 = vld [vmem:[#allocation13_spill] sm:$0xff] }
 0x3be   :  { %2526 = vst [vmem:[%s5620_s4 + $0x58] sm:$0xff] %v2462_v30  ;;  %v2440_v13 = vrot.slane %v2334_v46, 4  ;;  %v2468_v61 = vsel %vm1686_vm1, %v2325_v14, %v2436_v5  ;;  %v2331_v11 = vmax.f32 %v5872_v17, %v5871_v28  ;;  %v2344_v52 = vmax.f32 %v5873_v23, %v5355_v43  ;;  %v5876_v43 = vld [vmem:[#allocation51_spill] sm:$0xff]  ;;  %v5882_v10 = vld [vmem:[#allocation30_spill] sm:$0xff]  ;;  %v5891_v6 = vld [vmem:[#allocation16_spill] sm:$0xff] }
 0x3bf   :  { %2527 = vst [vmem:[%s5620_s4 + $0x60] sm:$0xff] %v2463_v55  ;;  %v2441_v1 = vrot.slane %v2336_v26, 4  ;;  %v2469_v38 = vsel %vm1686_vm1, %v2327_v18, %v2437_v62  ;;  %v2333_v51 = vmax.f32 %v5875_v33, %v5874_v39  ;;  %v2346_v30 = vmax.f32 %v5828_v31, %v5363_v60  ;;  %v5878_v55 = vld [vmem:[#allocation18_spill] sm:$0xff]  ;;  %v5879_v31 = vld [vmem:[#allocation53_spill] sm:$0xff]  ;;  %v5880_v60 = vld [vmem:[#allocation28_spill] sm:$0xff] }
 0x3c0   :  { %2528 = vst [vmem:[%s5620_s4 + $0x68] sm:$0xff] %v2464_v49  ;;  %v2442_v58 = vrot.slane %v2338_v2, 4  ;;  %v2470_v45 = vsel %vm1686_vm1, %v2329_v50, %v2438_v56  ;;  %v2335_v9 = vmax.f32 %v5877_v16, %v5876_v43  ;;  %v2348_v12 = vmax.f32 %v5878_v55, %v5373_v32  ;;  %v5881_v32 = vld [vmem:[#allocation55_spill] sm:$0xff]  ;;  %v5886_v14 = vld [vmem:[#allocation58_spill] sm:$0xff]  ;;  %v5893_v40 = vld [vmem:[#allocation5_spill] sm:$0xff] }
 0x3c1   :  { %2529 = vst [vmem:[%s5620_s4 + $0x70] sm:$0xff] %v2465_v7  ;;  %v2443_v24 = vrot.slane %v2340_v44, 4  ;;  %v2471_v3 = vsel %vm1686_vm1, %v2331_v11, %v2439_v4  ;;  %v2337_v46 = vmax.f32 %v5880_v60, %v5879_v31  ;;  %v2350_v5 = vmax.f32 %v5841_v63, %v5401_v15  ;;  %v5883_v63 = vld [vmem:[#allocation3_spill] sm:$0xff]  ;;  %v5884_v15 = vld [vmem:[#allocation12_spill] sm:$0xff]  ;;  %v5892_v44 = vld [vmem:[#allocation17_spill] sm:$0xff] }
 0x3c2   :  { %2530 = vst [vmem:[%s5620_s4 + $0x78] sm:$0xff] %v2466_v42  ;;  %v2444_v49 = vrot.slane %v2342_v37, 4  ;;  %v2472_v54 = vsel %vm1686_vm1, %v2333_v51, %v2440_v13  ;;  %v2339_v41 = vmax.f32 %v5882_v10, %v5881_v32  ;;  %v2352_v20 = vmax.f32 %v5842_v29, %v5410_v36  ;;  %v5885_v29 = vld [vmem:[#allocation36_spill] sm:$0xff]  ;;  %v5890_v59 = vld [vmem:[#allocation15_spill] sm:$0xff]  ;;  %v5894_v50 = vld [vmem:[#allocation33_spill] sm:$0xff] }
 0x3c3   :  { %2531 = vst [vmem:[%s5620_s4 + $0x80] sm:$0xff] %v2467_v25  ;;  %v2445_v48 = vrot.slane %v2344_v52, 4  ;;  %v2473_v26 = vsel %vm1686_vm1, %v2335_v9, %v2441_v1  ;;  %v2341_v62 = vmax.f32 %v5884_v15, %v5883_v63  ;;  %v2354_v7 = vmax.f32 %v5845_v27, %v5427_v8  ;;  %v5888_v27 = vld [vmem:[#allocation38_spill] sm:$0xff]  ;;  %v5889_v42 = vld [vmem:[#allocation4_spill] sm:$0xff] }
 0x3c4   :  { %2532 = vst [vmem:[%s5620_s4 + $0x88] sm:$0xff] %v2468_v61  ;;  %v2446_v21 = vrot.slane %v2346_v30, 4  ;;  %v2474_v22 = vsel %vm1686_vm1, %v2337_v46, %v2442_v58  ;;  %v2287_v36 = vmul.f32 0.2, %v5885_v29  ;;  %v2343_v53 = vmax.f32 %v5887_v0, %v5886_v14 }
 0x3c5   :  { %2533 = vst [vmem:[%s5620_s4 + $0x90] sm:$0xff] %v2469_v38  ;;  %v2447_v2 = vrot.slane %v2348_v12, 4  ;;  %v2475_v56 = vsel %vm1686_vm1, %v2339_v41, %v2443_v24  ;;  %v2289_v8 = vmul.f32 0.2, %v5888_v27  ;;  %v2345_v47 = vmax.f32 %v5890_v59, %v5889_v42 }
 0x3c6   :  { %2534 = vst [vmem:[%s5620_s4 + $0x98] sm:$0xff] %v2470_v45  ;;  %v2448_v18 = vrot.slane %v2350_v5, 4  ;;  %v2476_v19 = vsel %vm1686_vm1, %v2341_v62, %v2444_v49  ;;  %v2347_v4 = vmax.f32 %v5892_v44, %v5891_v6  ;;  %v2449_v25 = vrot.slane %v2352_v20, 4 }
 0x3c7   :  { %2535 = vst [vmem:[%s5620_s4 + $0xa0] sm:$0xff] %v2471_v3  ;;  %v2477_v34 = vsel %vm1686_vm1, %v2343_v53, %v2445_v48  ;;  %v2349_v57 = vmax.f32 %v5894_v50, %v5893_v40  ;;  %v2450_v35 = vrot.slane %v2354_v7, 4  ;;  %v2478_v37 = vsel %vm1686_vm1, %v2345_v47, %v2446_v21 }
 0x3c8   :  { %2536 = vst [vmem:[%s5620_s4 + $0xa8] sm:$0xff] %v2472_v54  ;;  %v2351_v13 = vmax.f32 %v5885_v29, %v2287_v36  ;;  %v2479_v61 = vsel %vm1686_vm1, %v2347_v4, %v2447_v2  ;;  %v2353_v28 = vmax.f32 %v5888_v27, %v2289_v8 }
 0x3c9   :  { %2537 = vst [vmem:[%s5620_s4 + $0xb0] sm:$0xff] %v2473_v26  ;;  %v2480_v17 = vsel %vm1686_vm1, %v2349_v57, %v2448_v18 }
 0x3ca   :  { %2538 = vst [vmem:[%s5620_s4 + $0xb8] sm:$0xff] %v2474_v22  ;;  %v2481_v11 = vsel %vm1686_vm1, %v2351_v13, %v2449_v25  ;;  %v2482_v23 = vsel %vm1686_vm1, %v2353_v28, %v2450_v35 }
 0x3cb   :  { %2539 = vst [vmem:[%s5620_s4 + $0xc0] sm:$0xff] %v2475_v56 }
 0x3cc   :  { %2540 = vst [vmem:[%s5620_s4 + $0xc8] sm:$0xff] %v2476_v19 }
 0x3cd   :  { %2541 = vst [vmem:[%s5620_s4 + $0xd0] sm:$0xff] %v2477_v34 }
 0x3ce   :  { %2542 = vst [vmem:[%s5620_s4 + $0xd8] sm:$0xff] %v2478_v37 }
 0x3cf   :  { %2543 = vst [vmem:[%s5620_s4 + $0xe0] sm:$0xff] %v2479_v61 }
 0x3d0   :  { %2544 = vst [vmem:[%s5620_s4 + $0xe8] sm:$0xff] %v2480_v17 }
 0x3d1   :  { %2545 = vst [vmem:[%s5620_s4 + $0xf0] sm:$0xff] %v2481_v11 }
 0x3d2   :  { %2546 = vst [vmem:[%s5620_s4 + $0xf8] sm:$0xff] %v2482_v23 }

// kernel: encoder_forward.7
= control target key start
LH: loop header
LB: loop body
LE: loop exit
PB: predicated region body
PF: predicated region fallthrough
CT: control target
= control target key end

     0   :  { %vm146_vm0 = vcmask 523264   ;;  %s1243_s0 = inlined_call_operand.vmem [shape: f32[64,2048], index: 0, kind: input, shape index: {}]   ;;  %s1244_s1 = inlined_call_operand.vmem [shape: f32[8,64], index: 1, kind: input, shape index: {}]   ;;  %s1245_s2 = inlined_call_operand.vmem [shape: f32[8,1], index: 2, kind: input, shape index: {}]   ;;  %s1246_s3 = inlined_call_operand.vmem [shape: f32[8,1], index: 3, kind: input, shape index: {}]   ;;  %s1247_s4 = inlined_call_operand.vmem [shape: f32[8,2048], index: 4, kind: output, shape index: {}]  }
   0x1   :  { %v130_v0 = vld [vmem:[%s1243_s0 + $0x380] sm:$0xff]  ;;  %v132_v1 = vld [vmem:[%s1243_s0 + $0x390] sm:$0xff]  ;;  %v131_v3 = vld [vmem:[%s1243_s0 + $0x388] sm:$0xff] }
   0x2   :  { %v114_v2 = vld [vmem:[%s1243_s0 + $0x300] sm:$0xff]  ;;  %158 = vmatpush.msra.mxu0 %v130_v0  ;;  %198 = vmatpush.msra.mxu2 %v132_v1  ;;  %v116_v4 = vld [vmem:[%s1243_s0 + $0x310] sm:$0xff]  ;;  %v133_v5 = vld [vmem:[%s1243_s0 + $0x398] sm:$0xff] }
   0x3   :  { %178 = vmatpush.msra.mxu1 %v131_v3  ;;  %218 = vmatpush.msra.mxu3 %v133_v5  ;;  %v98_v6 = vld [vmem:[%s1243_s0 + $0x280] sm:$0xff]  ;;  %v115_v7 = vld [vmem:[%s1243_s0 + $0x308] sm:$0xff]  ;;  %v100_v8 = vld [vmem:[%s1243_s0 + $0x290] sm:$0xff] }
   0x4   :  { %159 = vmatpush.msra.mxu0 %v114_v2  ;;  %199 = vmatpush.msra.mxu2 %v116_v4  ;;  %v117_v9 = vld [vmem:[%s1243_s0 + $0x318] sm:$0xff]  ;;  %v99_v10 = vld [vmem:[%s1243_s0 + $0x288] sm:$0xff]  ;;  %v82_v11 = vld [vmem:[%s1243_s0 + $0x200] sm:$0xff] }
   0x5   :  { %179 = vmatpush.msra.mxu1 %v115_v7  ;;  %219 = vmatpush.msra.mxu3 %v117_v9  ;;  %v84_v12 = vld [vmem:[%s1243_s0 + $0x210] sm:$0xff]  ;;  %v101_v13 = vld [vmem:[%s1243_s0 + $0x298] sm:$0xff]  ;;  %v83_v14 = vld [vmem:[%s1243_s0 + $0x208] sm:$0xff] }
   0x6   :  { %160 = vmatpush.msra.mxu0 %v98_v6  ;;  %200 = vmatpush.msra.mxu2 %v100_v8  ;;  %v85_v15 = vld [vmem:[%s1243_s0 + $0x218] sm:$0xff]  ;;  %v66_v16 = vld [vmem:[%s1243_s0 + $0x180] sm:$0xff]  ;;  %v68_v17 = vld [vmem:[%s1243_s0 + $0x190] sm:$0xff] }
   0x7   :  { %180 = vmatpush.msra.mxu1 %v99_v10  ;;  %220 = vmatpush.msra.mxu3 %v101_v13  ;;  %v67_v18 = vld [vmem:[%s1243_s0 + $0x188] sm:$0xff]  ;;  %v69_v19 = vld [vmem:[%s1243_s0 + $0x198] sm:$0xff]  ;;  %v50_v20 = vld [vmem:[%s1243_s0 + $0x100] sm:$0xff] }
   0x8   :  { %161 = vmatpush.msra.mxu0 %v82_v11  ;;  %201 = vmatpush.msra.mxu2 %v84_v12  ;;  %v52_v21 = vld [vmem:[%s1243_s0 + $0x110] sm:$0xff]  ;;  %v51_v22 = vld [vmem:[%s1243_s0 + $0x108] sm:$0xff]  ;;  %v53_v23 = vld [vmem:[%s1243_s0 + $0x118] sm:$0xff] }
   0x9   :  { %181 = vmatpush.msra.mxu1 %v83_v14  ;;  %221 = vmatpush.msra.mxu3 %v85_v15  ;;  %v34_v24 = vld [vmem:[%s1243_s0 + $0x80] sm:$0xff]  ;;  %v36_v25 = vld [vmem:[%s1243_s0 + $0x90] sm:$0xff]  ;;  %v35_v26 = vld [vmem:[%s1243_s0 + $0x88] sm:$0xff] }
   0xa   :  { %162 = vmatpush.msra.mxu0 %v66_v16  ;;  %202 = vmatpush.msra.mxu2 %v68_v17  ;;  %v37_v27 = vld [vmem:[%s1243_s0 + $0x98] sm:$0xff]  ;;  %v18_v28 = vld [vmem:[%s1243_s0] sm:$0xff]  ;;  %v20_v29 = vld [vmem:[%s1243_s0 + $0x10] sm:$0xff] }
   0xb   :  { %182 = vmatpush.msra.mxu1 %v67_v18  ;;  %222 = vmatpush.msra.mxu3 %v69_v19  ;;  %v134_v30 = vld [vmem:[%s1243_s0 + $0x3a0] sm:$0xff]  ;;  %v136_v31 = vld [vmem:[%s1243_s0 + $0x3b0] sm:$0xff]  ;;  %v19_v32 = vld [vmem:[%s1243_s0 + $0x8] sm:$0xff] }
   0xc   :  { %163 = vmatpush.msra.mxu0 %v50_v20  ;;  %203 = vmatpush.msra.mxu2 %v52_v21  ;;  %v21_v33 = vld [vmem:[%s1243_s0 + $0x18] sm:$0xff]  ;;  %v118_v34 = vld [vmem:[%s1243_s0 + $0x320] sm:$0xff]  ;;  %v135_v35 = vld [vmem:[%s1243_s0 + $0x3a8] sm:$0xff] }
   0xd   :  { %183 = vmatpush.msra.mxu1 %v51_v22  ;;  %223 = vmatpush.msra.mxu3 %v53_v23  ;;  %v120_v36 = vld [vmem:[%s1243_s0 + $0x330] sm:$0xff]  ;;  %v137_v37 = vld [vmem:[%s1243_s0 + $0x3b8] sm:$0xff]  ;;  %v102_v38 = vld [vmem:[%s1243_s0 + $0x2a0] sm:$0xff] }
   0xe   :  { %164 = vmatpush.msra.mxu0 %v34_v24  ;;  %204 = vmatpush.msra.mxu2 %v36_v25  ;;  %v119_v39 = vld [vmem:[%s1243_s0 + $0x328] sm:$0xff]  ;;  %v104_v40 = vld [vmem:[%s1243_s0 + $0x2b0] sm:$0xff]  ;;  %v121_v41 = vld [vmem:[%s1243_s0 + $0x338] sm:$0xff] }
   0xf   :  { %184 = vmatpush.msra.mxu1 %v35_v26  ;;  %224 = vmatpush.msra.mxu3 %v37_v27  ;;  %v86_v42 = vld [vmem:[%s1243_s0 + $0x220] sm:$0xff]  ;;  %v103_v43 = vld [vmem:[%s1243_s0 + $0x2a8] sm:$0xff]  ;;  %v88_v44 = vld [vmem:[%s1243_s0 + $0x230] sm:$0xff] }
  0x10   :  { %165 = vmatpush.msra.mxu0 %v18_v28  ;;  %205 = vmatpush.msra.mxu2 %v20_v29  ;;  %v105_v45 = vld [vmem:[%s1243_s0 + $0x2b8] sm:$0xff]  ;;  %v70_v46 = vld [vmem:[%s1243_s0 + $0x1a0] sm:$0xff]  ;;  %v87_v47 = vld [vmem:[%s1243_s0 + $0x228] sm:$0xff] }
  0x11   :  { %185 = vmatpush.msra.mxu1 %v19_v32  ;;  %225 = vmatpush.msra.mxu3 %v21_v33  ;;  %v72_v48 = vld [vmem:[%s1243_s0 + $0x1b0] sm:$0xff]  ;;  %v89_v49 = vld [vmem:[%s1243_s0 + $0x238] sm:$0xff]  ;;  %v54_v50 = vld [vmem:[%s1243_s0 + $0x120] sm:$0xff] }
  0x12   :  { %238 = vmatpush.msrb.mxu0 %v134_v30  ;;  %278 = vmatpush.msrb.mxu2 %v136_v31  ;;  %v71_v51 = vld [vmem:[%s1243_s0 + $0x1a8] sm:$0xff]  ;;  %v56_v52 = vld [vmem:[%s1243_s0 + $0x130] sm:$0xff]  ;;  %v73_v53 = vld [vmem:[%s1243_s0 + $0x1b8] sm:$0xff] }
  0x13   :  { %258 = vmatpush.msrb.mxu1 %v135_v35  ;;  %298 = vmatpush.msrb.mxu3 %v137_v37  ;;  %v38_v54 = vld [vmem:[%s1243_s0 + $0xa0] sm:$0xff]  ;;  %v55_v55 = vld [vmem:[%s1243_s0 + $0x128] sm:$0xff]  ;;  %v40_v56 = vld [vmem:[%s1243_s0 + $0xb0] sm:$0xff] }
  0x14   :  { %239 = vmatpush.msrb.mxu0 %v118_v34  ;;  %279 = vmatpush.msrb.mxu2 %v120_v36  ;;  %v57_v57 = vld [vmem:[%s1243_s0 + $0x138] sm:$0xff]  ;;  %v870_v58 = vld [vmem:[%s1244_s1] sm:$0xff]  ;;  %v39_v60 = vld [vmem:[%s1243_s0 + $0xa8] sm:$0xff] }
  0x15   :  { %259 = vmatpush.msrb.mxu1 %v119_v39  ;;  %299 = vmatpush.msrb.mxu3 %v121_v41  ;;  %v22_v59 = vld [vmem:[%s1243_s0 + $0x20] sm:$0xff]  ;;  %v24_v61 = vld [vmem:[%s1243_s0 + $0x30] sm:$0xff]  ;;  %v41_v62 = vld [vmem:[%s1243_s0 + $0xb8] sm:$0xff] }
  0x16   :  { %240 = vmatpush.msrb.mxu0 %v102_v38  ;;  %280 = vmatpush.msrb.mxu2 %v104_v40  ;;  %v138_v63 = vld [vmem:[%s1243_s0 + $0x3c0] sm:$0xff]  ;;  %v140_v0 = vld [vmem:[%s1243_s0 + $0x3d0] sm:$0xff]  ;;  %v23_v1 = vld [vmem:[%s1243_s0 + $0x28] sm:$0xff] }
  0x17   :  { %260 = vmatpush.msrb.mxu1 %v103_v43  ;;  %300 = vmatpush.msrb.mxu3 %v105_v45  ;;  %v25_v2 = vld [vmem:[%s1243_s0 + $0x38] sm:$0xff]  ;;  %v122_v3 = vld [vmem:[%s1243_s0 + $0x340] sm:$0xff]  ;;  %v139_v4 = vld [vmem:[%s1243_s0 + $0x3c8] sm:$0xff] }
  0x18   :  { %241 = vmatpush.msrb.mxu0 %v86_v42  ;;  %281 = vmatpush.msrb.mxu2 %v88_v44  ;;  %v124_v5 = vld [vmem:[%s1243_s0 + $0x350] sm:$0xff]  ;;  %v141_v6 = vld [vmem:[%s1243_s0 + $0x3d8] sm:$0xff]  ;;  %v106_v7 = vld [vmem:[%s1243_s0 + $0x2c0] sm:$0xff] }
  0x19   :  { %261 = vmatpush.msrb.mxu1 %v87_v47  ;;  %301 = vmatpush.msrb.mxu3 %v89_v49  ;;  %v123_v8 = vld [vmem:[%s1243_s0 + $0x348] sm:$0xff]  ;;  %v108_v9 = vld [vmem:[%s1243_s0 + $0x2d0] sm:$0xff]  ;;  %v125_v10 = vld [vmem:[%s1243_s0 + $0x358] sm:$0xff] }
  0x1a   :  { %242 = vmatpush.msrb.mxu0 %v70_v46  ;;  %282 = vmatpush.msrb.mxu2 %v72_v48  ;;  %v90_v11 = vld [vmem:[%s1243_s0 + $0x240] sm:$0xff]  ;;  %v107_v12 = vld [vmem:[%s1243_s0 + $0x2c8] sm:$0xff]  ;;  %v92_v13 = vld [vmem:[%s1243_s0 + $0x250] sm:$0xff] }
  0x1b   :  { %262 = vmatpush.msrb.mxu1 %v71_v51  ;;  %302 = vmatpush.msrb.mxu3 %v73_v53  ;;  %v109_v14 = vld [vmem:[%s1243_s0 + $0x2d8] sm:$0xff]  ;;  %v74_v15 = vld [vmem:[%s1243_s0 + $0x1c0] sm:$0xff]  ;;  %v91_v16 = vld [vmem:[%s1243_s0 + $0x248] sm:$0xff] }
  0x1c   :  { %243 = vmatpush.msrb.mxu0 %v54_v50  ;;  %283 = vmatpush.msrb.mxu2 %v56_v52  ;;  %v76_v17 = vld [vmem:[%s1243_s0 + $0x1d0] sm:$0xff]  ;;  %v93_v18 = vld [vmem:[%s1243_s0 + $0x258] sm:$0xff]  ;;  %v58_v19 = vld [vmem:[%s1243_s0 + $0x140] sm:$0xff] }
  0x1d   :  { %263 = vmatpush.msrb.mxu1 %v55_v55  ;;  %303 = vmatpush.msrb.mxu3 %v57_v57  ;;  %v75_v20 = vld [vmem:[%s1243_s0 + $0x1c8] sm:$0xff]  ;;  %v60_v21 = vld [vmem:[%s1243_s0 + $0x150] sm:$0xff]  ;;  %v77_v22 = vld [vmem:[%s1243_s0 + $0x1d8] sm:$0xff] }
  0x1e   :  { %244 = vmatpush.msrb.mxu0 %v38_v54  ;;  %284 = vmatpush.msrb.mxu2 %v40_v56  ;;  %v42_v23 = vld [vmem:[%s1243_s0 + $0xc0] sm:$0xff]  ;;  %v59_v24 = vld [vmem:[%s1243_s0 + $0x148] sm:$0xff]  ;;  %v44_v25 = vld [vmem:[%s1243_s0 + $0xd0] sm:$0xff] }
  0x1f   :  { %648 = vmatmul.msk.f32.vlgmr.msra.gmra.mxu2 %vm146_vm0, %v870_v58  ;;  %264 = vmatpush.msrb.mxu1 %v39_v60  ;;  %v61_v26 = vld [vmem:[%s1243_s0 + $0x158] sm:$0xff]  ;;  %v26_v27 = vld [vmem:[%s1243_s0 + $0x40] sm:$0xff]  ;;  %v43_v28 = vld [vmem:[%s1243_s0 + $0xc8] sm:$0xff] }
  0x20   :  { %245 = vmatpush.msrb.mxu0 %v22_v59  ;;  %285 = vmatpush.msrb.mxu2 %v24_v61  ;;  %v28_v29 = vld [vmem:[%s1243_s0 + $0x50] sm:$0xff]  ;;  %v45_v30 = vld [vmem:[%s1243_s0 + $0xd8] sm:$0xff]  ;;  %v142_v31 = vld [vmem:[%s1243_s0 + $0x3e0] sm:$0xff] }
  0x21   :  { %304 = vmatpush.msrb.mxu3 %v41_v62  ;;  %646 = vmatmul.msk.f32.vlgmr.msra.gmra.mxu0 %vm146_vm0, %v870_v58  ;;  %v144_v32 = vld [vmem:[%s1243_s0 + $0x3f0] sm:$0xff]  ;;  %v27_v33 = vld [vmem:[%s1243_s0 + $0x48] sm:$0xff]  ;;  %v29_v34 = vld [vmem:[%s1243_s0 + $0x58] sm:$0xff] }
  0x22   :  { %649 = vmatmul.msk.f32.vlgmr.msra.gmra.mxu3 %vm146_vm0, %v870_v58  ;;  %318 = vmatpush.msra.mxu0 %v138_v63  ;;  %v126_v35 = vld [vmem:[%s1243_s0 + $0x360] sm:$0xff]  ;;  %v143_v36 = vld [vmem:[%s1243_s0 + $0x3e8] sm:$0xff]  ;;  %v128_v37 = vld [vmem:[%s1243_s0 + $0x370] sm:$0xff] }
  0x23   :  { %358 = vmatpush.msra.mxu2 %v140_v0  ;;  %265 = vmatpush.msrb.mxu1 %v23_v1  ;;  %v145_v38 = vld [vmem:[%s1243_s0 + $0x3f8] sm:$0xff]  ;;  %v110_v39 = vld [vmem:[%s1243_s0 + $0x2e0] sm:$0xff]  ;;  %v127_v40 = vld [vmem:[%s1243_s0 + $0x368] sm:$0xff] }
  0x24   :  { %305 = vmatpush.msrb.mxu3 %v25_v2  ;;  %647 = vmatmul.msk.f32.vlgmr.msra.gmra.mxu1 %vm146_vm0, %v870_v58  ;;  %v112_v41 = vld [vmem:[%s1243_s0 + $0x2f0] sm:$0xff]  ;;  %v129_v42 = vld [vmem:[%s1243_s0 + $0x378] sm:$0xff]  ;;  %v94_v43 = vld [vmem:[%s1243_s0 + $0x260] sm:$0xff] }
  0x25   :  { %319 = vmatpush.msra.mxu0 %v122_v3  ;;  %338 = vmatpush.msra.mxu1 %v139_v4  ;;  %v111_v44 = vld [vmem:[%s1243_s0 + $0x2e8] sm:$0xff]  ;;  %v96_v45 = vld [vmem:[%s1243_s0 + $0x270] sm:$0xff]  ;;  %v113_v46 = vld [vmem:[%s1243_s0 + $0x2f8] sm:$0xff] }
  0x26   :  { %359 = vmatpush.msra.mxu2 %v124_v5  ;;  %378 = vmatpush.msra.mxu3 %v141_v6  ;;  %v78_v47 = vld [vmem:[%s1243_s0 + $0x1e0] sm:$0xff]  ;;  %v95_v48 = vld [vmem:[%s1243_s0 + $0x268] sm:$0xff]  ;;  %v80_v49 = vld [vmem:[%s1243_s0 + $0x1f0] sm:$0xff] }
  0x27   :  { %320 = vmatpush.msra.mxu0 %v106_v7  ;;  %339 = vmatpush.msra.mxu1 %v123_v8  ;;  %v97_v50 = vld [vmem:[%s1243_s0 + $0x278] sm:$0xff]  ;;  %v62_v51 = vld [vmem:[%s1243_s0 + $0x160] sm:$0xff]  ;;  %v79_v52 = vld [vmem:[%s1243_s0 + $0x1e8] sm:$0xff] }
  0x28   :  { %360 = vmatpush.msra.mxu2 %v108_v9  ;;  %379 = vmatpush.msra.mxu3 %v125_v10  ;;  %v64_v53 = vld [vmem:[%s1243_s0 + $0x170] sm:$0xff]  ;;  %v81_v54 = vld [vmem:[%s1243_s0 + $0x1f8] sm:$0xff]  ;;  %v46_v55 = vld [vmem:[%s1243_s0 + $0xe0] sm:$0xff] }
  0x29   :  { %652 = vmatmul.msk.f32.vlgmr.msrb.gmra.mxu2 %vm146_vm0, %v870_v58  ;;  %321 = vmatpush.msra.mxu0 %v90_v11  ;;  %v63_v56 = vld [vmem:[%s1243_s0 + $0x168] sm:$0xff]  ;;  %v48_v57 = vld [vmem:[%s1243_s0 + $0xf0] sm:$0xff]  ;;  %v65_v59 = vld [vmem:[%s1243_s0 + $0x178] sm:$0xff] }
  0x2a   :  { %340 = vmatpush.msra.mxu1 %v107_v12  ;;  %361 = vmatpush.msra.mxu2 %v92_v13  ;;  %v30_v60 = vld [vmem:[%s1243_s0 + $0x60] sm:$0xff]  ;;  %v47_v61 = vld [vmem:[%s1243_s0 + $0xe8] sm:$0xff]  ;;  %v32_v62 = vld [vmem:[%s1243_s0 + $0x70] sm:$0xff] }
  0x2b   :  { %380 = vmatpush.msra.mxu3 %v109_v14  ;;  %650 = vmatmul.msk.f32.vlgmr.msrb.gmra.mxu0 %vm146_vm0, %v870_v58  ;;  %v49_v63 = vld [vmem:[%s1243_s0 + $0xf8] sm:$0xff]  ;;  %v31_v0 = vld [vmem:[%s1243_s0 + $0x68] sm:$0xff] }
  0x2c   :  { %653 = vmatmul.msk.f32.vlgmr.msrb.gmra.mxu3 %vm146_vm0, %v870_v58  ;;  %322 = vmatpush.msra.mxu0 %v74_v15  ;;  %v33_v1 = vld [vmem:[%s1243_s0 + $0x78] sm:$0xff] }
  0x2d   :  { %341 = vmatpush.msra.mxu1 %v91_v16  ;;  %362 = vmatpush.msra.mxu2 %v76_v17 }
  0x2e   :  { %381 = vmatpush.msra.mxu3 %v93_v18  ;;  %651 = vmatmul.msk.f32.vlgmr.msrb.gmra.mxu1 %vm146_vm0, %v870_v58 }
  0x2f   :  { %323 = vmatpush.msra.mxu0 %v58_v19  ;;  %342 = vmatpush.msra.mxu1 %v75_v20 }
  0x30   :  { %363 = vmatpush.msra.mxu2 %v60_v21  ;;  %382 = vmatpush.msra.mxu3 %v77_v22 }
  0x31   :  { %324 = vmatpush.msra.mxu0 %v42_v23  ;;  %343 = vmatpush.msra.mxu1 %v59_v24 }
  0x32   :  { %364 = vmatpush.msra.mxu2 %v44_v25  ;;  %383 = vmatpush.msra.mxu3 %v61_v26 }
  0x33   :  { %325 = vmatpush.msra.mxu0 %v26_v27  ;;  %344 = vmatpush.msra.mxu1 %v43_v28 }
  0x34   :  { %365 = vmatpush.msra.mxu2 %v28_v29  ;;  %384 = vmatpush.msra.mxu3 %v45_v30 }
  0x35   :  { %656 = vmatmul.msk.f32.vlgmr.msra.gmra.mxu2 %vm146_vm0, %v870_v58  ;;  %398 = vmatpush.msrb.mxu0 %v142_v31 }
  0x36   :  { %438 = vmatpush.msrb.mxu2 %v144_v32  ;;  %654 = vmatmul.msk.f32.vlgmr.msra.gmra.mxu0 %vm146_vm0, %v870_v58 }
  0x37   :  { %345 = vmatpush.msra.mxu1 %v27_v33  ;;  %385 = vmatpush.msra.mxu3 %v29_v34 }
  0x38   :  { %657 = vmatmul.msk.f32.vlgmr.msra.gmra.mxu3 %vm146_vm0, %v870_v58  ;;  %399 = vmatpush.msrb.mxu0 %v126_v35 }
  0x39   :  { %418 = vmatpush.msrb.mxu1 %v143_v36  ;;  %439 = vmatpush.msrb.mxu2 %v128_v37 }
  0x3a   :  { %458 = vmatpush.msrb.mxu3 %v145_v38  ;;  %655 = vmatmul.msk.f32.vlgmr.msra.gmra.mxu1 %vm146_vm0, %v870_v58 }
  0x3b   :  { %400 = vmatpush.msrb.mxu0 %v110_v39  ;;  %419 = vmatpush.msrb.mxu1 %v127_v40 }
  0x3c   :  { %440 = vmatpush.msrb.mxu2 %v112_v41  ;;  %459 = vmatpush.msrb.mxu3 %v129_v42 }
  0x3d   :  { %401 = vmatpush.msrb.mxu0 %v94_v43  ;;  %420 = vmatpush.msrb.mxu1 %v111_v44 }
  0x3e   :  { %441 = vmatpush.msrb.mxu2 %v96_v45  ;;  %460 = vmatpush.msrb.mxu3 %v113_v46 }
  0x3f   :  { %402 = vmatpush.msrb.mxu0 %v78_v47  ;;  %421 = vmatpush.msrb.mxu1 %v95_v48 }
  0x40   :  { %442 = vmatpush.msrb.mxu2 %v80_v49  ;;  %461 = vmatpush.msrb.mxu3 %v97_v50 }
  0x41   :  { %403 = vmatpush.msrb.mxu0 %v62_v51  ;;  %422 = vmatpush.msrb.mxu1 %v79_v52 }
  0x42   :  { %443 = vmatpush.msrb.mxu2 %v64_v53  ;;  %462 = vmatpush.msrb.mxu3 %v81_v54 }
  0x43   :  { %404 = vmatpush.msrb.mxu0 %v46_v55  ;;  %423 = vmatpush.msrb.mxu1 %v63_v56 }
  0x44   :  { %444 = vmatpush.msrb.mxu2 %v48_v57  ;;  %463 = vmatpush.msrb.mxu3 %v65_v59 }
  0x45   :  { %405 = vmatpush.msrb.mxu0 %v30_v60  ;;  %424 = vmatpush.msrb.mxu1 %v47_v61 }
  0x46   :  { %445 = vmatpush.msrb.mxu2 %v32_v62  ;;  %464 = vmatpush.msrb.mxu3 %v49_v63 }
  0x47   :  { %658 = vmatmul.msk.f32.vlgmr.msrb.gmra.mxu0 %vm146_vm0, %v870_v58  ;;  %660 = vmatmul.msk.f32.vlgmr.msrb.gmra.mxu2 %vm146_vm0, %v870_v58 }
  0x48   :  { %425 = vmatpush.msrb.mxu1 %v31_v0  ;;  %465 = vmatpush.msrb.mxu3 %v33_v1 }
  0x49   :  { %659 = vmatmul.msk.f32.vlgmr.msrb.gmra.mxu1 %vm146_vm0, %v870_v58  ;;  %661 = vmatmul.msk.f32.vlgmr.msrb.gmra.mxu3 %vm146_vm0, %v870_v58 }
  0x9e   :  { %v167_v2 = vpop.f32.mrf.mxu0 }
  0xa1   :  { %v187_v3 = vpop.f32.mrf.mxu1 }
  0xa2   :  { %v470_v4 = vadd.f32 %v187_v3, %v167_v2  ;;  %v207_v5 = vpop.f32.mrf.mxu2 }
  0xa4   :  { %v471_v6 = vadd.f32 %v470_v4, %v207_v5 }
  0xa5   :  { %v227_v7 = vpop.f32.mrf.mxu3 }
  0xa6   :  { %v472_v8 = vadd.f32 %v471_v6, %v227_v7 }
  0xa8   :  { %v247_v9 = vpop.f32.mrf.mxu0 }
  0xa9   :  { %v473_v10 = vadd.f32 %v472_v8, %v247_v9 }
  0xab   :  { %v267_v11 = vpop.f32.mrf.mxu1 }
  0xac   :  { %v474_v12 = vadd.f32 %v473_v10, %v267_v11  ;;  %v287_v13 = vpop.f32.mrf.mxu2 }
  0xae   :  { %v475_v14 = vadd.f32 %v474_v12, %v287_v13 }
  0xaf   :  { %v307_v15 = vpop.f32.mrf.mxu3 }
  0xb0   :  { %v476_v16 = vadd.f32 %v475_v14, %v307_v15 }
  0xb3   :  { %v327_v17 = vpop.f32.mrf.mxu0 }
  0xb4   :  { %v477_v18 = vadd.f32 %v476_v16, %v327_v17 }
  0xb7   :  { %v347_v19 = vpop.f32.mrf.mxu1 }
  0xb8   :  { %v478_v20 = vadd.f32 %v477_v18, %v347_v19  ;;  %v367_v58 = vpop.f32.mrf.mxu2  ;;  %v667_v18 = vmov 0  }
  0xb9   :  { %663 = vset.pattern.permute.xlu1 %v667_v18  ;;  %664 = vset.pattern.permute.xlu0 %v667_v18 }
  0xba   :  { %v479_v21 = vadd.f32 %v478_v20, %v367_v58 }
  0xbb   :  { %v387_v22 = vpop.f32.mrf.mxu3 }
  0xbc   :  { %v480_v23 = vadd.f32 %v479_v21, %v387_v22 }
  0xc4   :  { %v407_v24 = vpop.f32.mrf.mxu0 }
  0xc5   :  { %v481_v25 = vadd.f32 %v480_v23, %v407_v24 }
  0xc6   :  { %v427_v26 = vpop.f32.mrf.mxu1 }
  0xc7   :  { %v482_v27 = vadd.f32 %v481_v25, %v427_v26 }
  0xca   :  { %v447_v28 = vpop.f32.mrf.mxu2 }
  0xcb   :  { %v483_v29 = vadd.f32 %v482_v27, %v447_v28 }
  0xcc   :  { %v467_v30 = vpop.f32.mrf.mxu3 }
  0xcd   :  { %v484_v31 = vadd.f32 %v483_v29, %v467_v30 }
  0xcf   :  { %485 = vadd.xlane.f32.xlu0 %v484_v31 }
 0x142   :  { %v486_v32 = vpop.xlane.xlu0 %485 }
 0x143   :  { %v487_v33 = vmul.f32 0.00048828125, %v486_v32 }
 0x145   :  { %v1114_v34 = vsub.f32 %v167_v2, %v487_v33  ;;  %v1116_v35 = vsub.f32 %v187_v3, %v487_v33  ;;  %v1118_v36 = vsub.f32 %v207_v5, %v487_v33  ;;  %v1124_v39 = vsub.f32 %v227_v7, %v487_v33 }
 0x146   :  { %v1126_v40 = vsub.f32 %v247_v9, %v487_v33  ;;  %v1130_v43 = vsub.f32 %v267_v11, %v487_v33  ;;  %v1134_v46 = vsub.f32 %v287_v13, %v487_v33  ;;  %v1138_v49 = vsub.f32 %v307_v15, %v487_v33 }
 0x147   :  { %v504_v37 = vmul.f32 %v1114_v34, %v1114_v34  ;;  %v505_v38 = vmul.f32 %v1116_v35, %v1116_v35  ;;  %v506_v41 = vmul.f32 %v1118_v36, %v1118_v36  ;;  %v507_v44 = vmul.f32 %v1124_v39, %v1124_v39 }
 0x148   :  { %v508_v47 = vmul.f32 %v1126_v40, %v1126_v40  ;;  %v509_v50 = vmul.f32 %v1130_v43, %v1130_v43  ;;  %v1142_v52 = vsub.f32 %v327_v17, %v487_v33  ;;  %v510_v53 = vmul.f32 %v1134_v46, %v1134_v46 }
 0x149   :  { %v520_v42 = vadd.f32 %v505_v38, %v504_v37  ;;  %v1146_v55 = vsub.f32 %v347_v19, %v487_v33  ;;  %v511_v56 = vmul.f32 %v1138_v49, %v1138_v49  ;;  %v1150_v59 = vsub.f32 %v367_v58, %v487_v33 }
 0x14a   :  { %v512_v60 = vmul.f32 %v1142_v52, %v1142_v52  ;;  %v1154_v62 = vsub.f32 %v387_v22, %v487_v33  ;;  %v1158_v1 = vsub.f32 %v407_v24, %v487_v33  ;;  %v501_v4 = vsub.f32 %v427_v26, %v487_v33  ;;  %v538_v26 = vld [vmem:[%s1245_s2] sm:$0xff] }
 0x14b   :  { %v521_v45 = vadd.f32 %v520_v42, %v506_v41  ;;  %v513_v63 = vmul.f32 %v1146_v55, %v1146_v55  ;;  %v514_v2 = vmul.f32 %v1150_v59, %v1150_v59  ;;  %v1164_v7 = vsub.f32 %v447_v28, %v487_v33 }
 0x14c   :  { %v515_v5 = vmul.f32 %v1154_v62, %v1154_v62  ;;  %v516_v8 = vmul.f32 %v1158_v1, %v1158_v1  ;;  %v1168_v10 = vsub.f32 %v467_v30, %v487_v33  ;;  %v517_v11 = vmul.f32 %v501_v4, %v501_v4  ;;  %v572_v30 = vld [vmem:[%s1246_s3] sm:$0xff] }
 0x14d   :  { %v522_v48 = vadd.f32 %v521_v45, %v507_v44  ;;  %v518_v13 = vmul.f32 %v1164_v7, %v1164_v7 }
 0x14e   :  { %v519_v15 = vmul.f32 %v1168_v10, %v1168_v10 }
 0x14f   :  { %v523_v51 = vadd.f32 %v522_v48, %v508_v47 }
 0x151   :  { %v524_v54 = vadd.f32 %v523_v51, %v509_v50 }
 0x153   :  { %v525_v57 = vadd.f32 %v524_v54, %v510_v53 }
 0x155   :  { %v526_v61 = vadd.f32 %v525_v57, %v511_v56 }
 0x157   :  { %v527_v0 = vadd.f32 %v526_v61, %v512_v60 }
 0x159   :  { %v528_v3 = vadd.f32 %v527_v0, %v513_v63 }
 0x15b   :  { %v529_v6 = vadd.f32 %v528_v3, %v514_v2 }
 0x15d   :  { %v530_v9 = vadd.f32 %v529_v6, %v515_v5 }
 0x15f   :  { %v531_v12 = vadd.f32 %v530_v9, %v516_v8 }
 0x161   :  { %v532_v14 = vadd.f32 %v531_v12, %v517_v11 }
 0x163   :  { %v533_v16 = vadd.f32 %v532_v14, %v518_v13 }
 0x165   :  { %v534_v17 = vadd.f32 %v533_v16, %v519_v15 }
 0x167   :  { %535 = vadd.xlane.f32.xlu0 %v534_v17 }
 0x1da   :  { %v536_v19 = vpop.xlane.xlu0 %535 }
 0x1db   :  { %v537_v20 = vmul.f32 0.00048828125, %v536_v19 }
 0x1dd   :  { %v539_v58 = vadd.f32 1e-05, %v537_v20 }
 0x1df   :  { %665 = vrsqrt.f32 %v539_v58  ;;  %vm546_vm2 = vweird.f32 %v539_v58 }
 0x1e5   :  { %v666_v21 = vpop.eup %665 }
 0x1e6   :  { %v541_v22 = vmul.f32 %v666_v21, %v539_v58  ;;  %vm547_vm1 = vweird.f32 %v666_v21 }
 0x1e7   :  { %vm548_vm3 = vmor %vm546_vm2, %vm547_vm1 }
 0x1e8   :  { %v542_v23 = vmul.f32 %v666_v21, %v541_v22 }
 0x1ea   :  { %v543_v24 = vmul.f32 0.5, %v542_v23 }
 0x1ec   :  { %v544_v25 = vsub.f32 1.5, %v543_v24 }
 0x1ee   :  { %v545_v27 = vmul.f32 %v666_v21, %v544_v25 }
 0x1f0   :  { %v549_v28 = vsel %vm548_vm3, %v666_v21, %v545_v27 }
 0x1f1   :  { %v550_v29 = vmul.f32 %v549_v28, %v538_v26 }
 0x1f3   :  { %553 = vperm.xlu1 %663, %v550_v29  }
 0x1fb   :  { %575 = vperm.xlu1 %663, %v572_v30  }
 0x265   :  { %v554_v31 = vpop.permute.xlu1 %553 }
 0x266   :  { %v556_v32 = vmul.f32 %v554_v31, %v1114_v34  ;;  %v557_v33 = vmul.f32 %v554_v31, %v1116_v35  ;;  %v558_v37 = vmul.f32 %v554_v31, %v1118_v36  ;;  %v559_v38 = vmul.f32 %v554_v31, %v1124_v39 }
 0x267   :  { %v560_v41 = vmul.f32 %v554_v31, %v1126_v40  ;;  %v561_v42 = vmul.f32 %v554_v31, %v1130_v43  ;;  %v562_v45 = vmul.f32 %v554_v31, %v1134_v46  ;;  %v563_v51 = vmul.f32 %v554_v31, %v1138_v49 }
 0x268   :  { %v564_v35 = vmul.f32 %v554_v31, %v1142_v52  ;;  %v565_v36 = vmul.f32 %v554_v31, %v1146_v55  ;;  %v566_v39 = vmul.f32 %v554_v31, %v1150_v59  ;;  %v567_v43 = vmul.f32 %v554_v31, %v1154_v62 }
 0x269   :  { %v568_v56 = vmul.f32 %v554_v31, %v1158_v1  ;;  %v569_v46 = vmul.f32 %v554_v31, %v501_v4  ;;  %v570_v52 = vmul.f32 %v554_v31, %v1164_v7  ;;  %v571_v8 = vmul.f32 %v554_v31, %v1168_v10 }
 0x26d   :  { %v576_v44 = vpop.permute.xlu1 %575 }
 0x26e   :  { %v578_v47 = vadd.f32 %v576_v44, %v556_v32  ;;  %v579_v48 = vadd.f32 %v576_v44, %v557_v33  ;;  %v580_v50 = vadd.f32 %v576_v44, %v558_v37  ;;  %v581_v53 = vadd.f32 %v576_v44, %v559_v38 }
 0x26f   :  { %v582_v34 = vadd.f32 %v576_v44, %v560_v41  ;;  %v583_v54 = vadd.f32 %v576_v44, %v561_v42  ;;  %v584_v40 = vadd.f32 %v576_v44, %v562_v45  ;;  %v585_v57 = vadd.f32 %v576_v44, %v563_v51 }
 0x270   :  { %v586_v60 = vadd.f32 %v576_v44, %v564_v35  ;;  %v594_v61 = vmul.f32 0.2, %v578_v47  ;;  %v595_v63 = vmul.f32 0.2, %v579_v48  ;;  %v596_v49 = vmul.f32 0.2, %v580_v50 }
 0x271   :  { %v587_v0 = vadd.f32 %v576_v44, %v565_v36  ;;  %v597_v2 = vmul.f32 0.2, %v581_v53  ;;  %v598_v3 = vmul.f32 0.2, %v582_v34  ;;  %v599_v5 = vmul.f32 0.2, %v583_v54 }
 0x272   :  { %v588_v55 = vadd.f32 %v576_v44, %v566_v39  ;;  %v600_v6 = vmul.f32 0.2, %v584_v40  ;;  %v610_v59 = vmax.f32 %v578_v47, %v594_v61  ;;  %v589_v62 = vadd.f32 %v576_v44, %v567_v43 }
 0x273   :  { %v601_v9 = vmul.f32 0.2, %v585_v57  ;;  %v611_v1 = vmax.f32 %v579_v48, %v595_v63  ;;  %v590_v4 = vadd.f32 %v576_v44, %v568_v56  ;;  %v591_v11 = vadd.f32 %v576_v44, %v569_v46 }
 0x274   :  { %v602_v12 = vmul.f32 0.2, %v586_v60  ;;  %v612_v13 = vmax.f32 %v580_v50, %v596_v49  ;;  %626 = vst [vmem:[%s1247_s4] sm:$0xff] %v610_v59  ;;  %v603_v14 = vmul.f32 0.2, %v587_v0  ;;  %v613_v15 = vmax.f32 %v581_v53, %v597_v2 }
 0x275   :  { %v614_v16 = vmax.f32 %v582_v34, %v598_v3  ;;  %v615_v7 = vmax.f32 %v583_v54, %v599_v5  ;;  %627 = vst [vmem:[%s1247_s4 + $0x8] sm:$0xff] %v611_v1  ;;  %v592_v10 = vadd.f32 %v576_v44, %v570_v52  ;;  %v604_v17 = vmul.f32 0.2, %v588_v55 }
 0x276   :  { %v616_v18 = vmax.f32 %v584_v40, %v600_v6  ;;  %628 = vst [vmem:[%s1247_s4 + $0x10] sm:$0xff] %v612_v13  ;;  %v593_v19 = vadd.f32 %v576_v44, %v571_v8  ;;  %v605_v20 = vmul.f32 0.2, %v589_v62  ;;  %v617_v58 = vmax.f32 %v585_v57, %v601_v9 }
 0x277   :  { %629 = vst [vmem:[%s1247_s4 + $0x18] sm:$0xff] %v613_v15  ;;  %v606_v21 = vmul.f32 0.2, %v590_v4  ;;  %v618_v22 = vmax.f32 %v586_v60, %v602_v12  ;;  %v607_v23 = vmul.f32 0.2, %v591_v11  ;;  %v619_v24 = vmax.f32 %v587_v0, %v603_v14 }
 0x278   :  { %630 = vst [vmem:[%s1247_s4 + $0x20] sm:$0xff] %v614_v16  ;;  %v608_v25 = vmul.f32 0.2, %v592_v10  ;;  %v620_v26 = vmax.f32 %v588_v55, %v604_v17  ;;  %v609_v27 = vmul.f32 0.2, %v593_v19  ;;  %v621_v28 = vmax.f32 %v589_v62, %v605_v20 }
 0x279   :  { %631 = vst [vmem:[%s1247_s4 + $0x28] sm:$0xff] %v615_v7  ;;  %v622_v29 = vmax.f32 %v590_v4, %v606_v21  ;;  %v623_v30 = vmax.f32 %v591_v11, %v607_v23 }
 0x27a   :  { %632 = vst [vmem:[%s1247_s4 + $0x30] sm:$0xff] %v616_v18  ;;  %v624_v31 = vmax.f32 %v592_v10, %v608_v25  ;;  %v625_v32 = vmax.f32 %v593_v19, %v609_v27 }
 0x27b   :  { %633 = vst [vmem:[%s1247_s4 + $0x38] sm:$0xff] %v617_v58 }
 0x27c   :  { %634 = vst [vmem:[%s1247_s4 + $0x40] sm:$0xff] %v618_v22 }
 0x27d   :  { %635 = vst [vmem:[%s1247_s4 + $0x48] sm:$0xff] %v619_v24 }
 0x27e   :  { %636 = vst [vmem:[%s1247_s4 + $0x50] sm:$0xff] %v620_v26 }
 0x27f   :  { %637 = vst [vmem:[%s1247_s4 + $0x58] sm:$0xff] %v621_v28 }
 0x280   :  { %638 = vst [vmem:[%s1247_s4 + $0x60] sm:$0xff] %v622_v29 }
 0x281   :  { %639 = vst [vmem:[%s1247_s4 + $0x68] sm:$0xff] %v623_v30 }
 0x282   :  { %640 = vst [vmem:[%s1247_s4 + $0x70] sm:$0xff] %v624_v31 }
 0x283   :  { %641 = vst [vmem:[%s1247_s4 + $0x78] sm:$0xff] %v625_v32 }

// kernel: encoder_forward.8
= control target key start
LH: loop header
LB: loop body
LE: loop exit
PB: predicated region body
PF: predicated region fallthrough
CT: control target
= control target key end

     0   :  { %s615_s0 = inlined_call_operand.vmem [shape: f32[128,512], index: 0, kind: input, shape index: {}]   ;;  %s616_s1 = inlined_call_operand.vmem [shape: f32[16,128], index: 1, kind: input, shape index: {}]   ;;  %s617_s3 = inlined_call_operand.vmem [shape: f32[16,1], index: 3, kind: input, shape index: {}]   ;;  %s618_s2 = inlined_call_operand.vmem [shape: f32[16,1], index: 2, kind: input, shape index: {}]   ;;  %s619_s4 = inlined_call_operand.vmem [shape: f32[16,512], index: 4, kind: output, shape index: {}]  }
   0x1   :  { %v81_v0 = vld [vmem:[%s615_s0 + $0x1f0] sm:$0xff]  ;;  %v82_v2 = vld [vmem:[%s615_s0 + $0x1f8] sm:$0xff]  ;;  %v79_v3 = vld [vmem:[%s615_s0 + $0x1e0] sm:$0xff] }
   0x2   :  { %v77_v1 = vld [vmem:[%s615_s0 + $0x1d0] sm:$0xff]  ;;  %129 = vmatpush.msra.mxu2 %v81_v0  ;;  %152 = vmatpush.msra.mxu3 %v82_v2  ;;  %v80_v4 = vld [vmem:[%s615_s0 + $0x1e8] sm:$0xff]  ;;  %v78_v6 = vld [vmem:[%s615_s0 + $0x1d8] sm:$0xff] }
   0x3   :  { %v73_v5 = vld [vmem:[%s615_s0 + $0x1b0] sm:$0xff]  ;;  %83 = vmatpush.msra.mxu0 %v79_v3  ;;  %106 = vmatpush.msra.mxu1 %v80_v4  ;;  %v75_v7 = vld [vmem:[%s615_s0 + $0x1c0] sm:$0xff]  ;;  %v76_v8 = vld [vmem:[%s615_s0 + $0x1c8] sm:$0xff] }
   0x4   :  { %130 = vmatpush.msra.mxu2 %v77_v1  ;;  %153 = vmatpush.msra.mxu3 %v78_v6  ;;  %v74_v9 = vld [vmem:[%s615_s0 + $0x1b8] sm:$0xff]  ;;  %v71_v10 = vld [vmem:[%s615_s0 + $0x1a0] sm:$0xff]  ;;  %v69_v11 = vld [vmem:[%s615_s0 + $0x190] sm:$0xff] }
   0x5   :  { %84 = vmatpush.msra.mxu0 %v75_v7  ;;  %107 = vmatpush.msra.mxu1 %v76_v8  ;;  %v72_v12 = vld [vmem:[%s615_s0 + $0x1a8] sm:$0xff]  ;;  %v70_v13 = vld [vmem:[%s615_s0 + $0x198] sm:$0xff]  ;;  %v67_v14 = vld [vmem:[%s615_s0 + $0x180] sm:$0xff] }
   0x6   :  { %131 = vmatpush.msra.mxu2 %v73_v5  ;;  %154 = vmatpush.msra.mxu3 %v74_v9  ;;  %v68_v15 = vld [vmem:[%s615_s0 + $0x188] sm:$0xff]  ;;  %v65_v16 = vld [vmem:[%s615_s0 + $0x170] sm:$0xff]  ;;  %v66_v17 = vld [vmem:[%s615_s0 + $0x178] sm:$0xff] }
   0x7   :  { %85 = vmatpush.msra.mxu0 %v71_v10  ;;  %108 = vmatpush.msra.mxu1 %v72_v12  ;;  %v63_v18 = vld [vmem:[%s615_s0 + $0x160] sm:$0xff]  ;;  %v64_v19 = vld [vmem:[%s615_s0 + $0x168] sm:$0xff]  ;;  %v61_v20 = vld [vmem:[%s615_s0 + $0x150] sm:$0xff] }
   0x8   :  { %132 = vmatpush.msra.mxu2 %v69_v11  ;;  %155 = vmatpush.msra.mxu3 %v70_v13  ;;  %v62_v21 = vld [vmem:[%s615_s0 + $0x158] sm:$0xff]  ;;  %v59_v22 = vld [vmem:[%s615_s0 + $0x140] sm:$0xff]  ;;  %v60_v23 = vld [vmem:[%s615_s0 + $0x148] sm:$0xff] }
   0x9   :  { %86 = vmatpush.msra.mxu0 %v67_v14  ;;  %109 = vmatpush.msra.mxu1 %v68_v15  ;;  %v57_v24 = vld [vmem:[%s615_s0 + $0x130] sm:$0xff]  ;;  %v58_v25 = vld [vmem:[%s615_s0 + $0x138] sm:$0xff]  ;;  %v55_v26 = vld [vmem:[%s615_s0 + $0x120] sm:$0xff] }
   0xa   :  { %133 = vmatpush.msra.mxu2 %v65_v16  ;;  %156 = vmatpush.msra.mxu3 %v66_v17  ;;  %v56_v27 = vld [vmem:[%s615_s0 + $0x128] sm:$0xff]  ;;  %v53_v28 = vld [vmem:[%s615_s0 + $0x110] sm:$0xff]  ;;  %v54_v29 = vld [vmem:[%s615_s0 + $0x118] sm:$0xff] }
   0xb   :  { %87 = vmatpush.msra.mxu0 %v63_v18  ;;  %110 = vmatpush.msra.mxu1 %v64_v19  ;;  %v51_v30 = vld [vmem:[%s615_s0 + $0x100] sm:$0xff]  ;;  %v52_v31 = vld [vmem:[%s615_s0 + $0x108] sm:$0xff]  ;;  %v49_v32 = vld [vmem:[%s615_s0 + $0xf0] sm:$0xff] }
   0xc   :  { %134 = vmatpush.msra.mxu2 %v61_v20  ;;  %157 = vmatpush.msra.mxu3 %v62_v21  ;;  %v50_v33 = vld [vmem:[%s615_s0 + $0xf8] sm:$0xff]  ;;  %v47_v34 = vld [vmem:[%s615_s0 + $0xe0] sm:$0xff]  ;;  %v48_v35 = vld [vmem:[%s615_s0 + $0xe8] sm:$0xff] }
   0xd   :  { %88 = vmatpush.msra.mxu0 %v59_v22  ;;  %111 = vmatpush.msra.mxu1 %v60_v23  ;;  %v45_v36 = vld [vmem:[%s615_s0 + $0xd0] sm:$0xff]  ;;  %v46_v37 = vld [vmem:[%s615_s0 + $0xd8] sm:$0xff]  ;;  %v43_v38 = vld [vmem:[%s615_s0 + $0xc0] sm:$0xff] }
   0xe   :  { %135 = vmatpush.msra.mxu2 %v57_v24  ;;  %158 = vmatpush.msra.mxu3 %v58_v25  ;;  %v44_v39 = vld [vmem:[%s615_s0 + $0xc8] sm:$0xff]  ;;  %v41_v40 = vld [vmem:[%s615_s0 + $0xb0] sm:$0xff]  ;;  %v42_v41 = vld [vmem:[%s615_s0 + $0xb8] sm:$0xff] }
   0xf   :  { %89 = vmatpush.msra.mxu0 %v55_v26  ;;  %112 = vmatpush.msra.mxu1 %v56_v27  ;;  %v39_v42 = vld [vmem:[%s615_s0 + $0xa0] sm:$0xff]  ;;  %v40_v43 = vld [vmem:[%s615_s0 + $0xa8] sm:$0xff]  ;;  %v37_v44 = vld [vmem:[%s615_s0 + $0x90] sm:$0xff] }
  0x10   :  { %136 = vmatpush.msra.mxu2 %v53_v28  ;;  %159 = vmatpush.msra.mxu3 %v54_v29  ;;  %v38_v45 = vld [vmem:[%s615_s0 + $0x98] sm:$0xff]  ;;  %v35_v46 = vld [vmem:[%s615_s0 + $0x80] sm:$0xff]  ;;  %v36_v47 = vld [vmem:[%s615_s0 + $0x88] sm:$0xff] }
  0x11   :  { %90 = vmatpush.msra.mxu0 %v51_v30  ;;  %113 = vmatpush.msra.mxu1 %v52_v31  ;;  %v33_v48 = vld [vmem:[%s615_s0 + $0x70] sm:$0xff]  ;;  %v34_v49 = vld [vmem:[%s615_s0 + $0x78] sm:$0xff]  ;;  %v31_v50 = vld [vmem:[%s615_s0 + $0x60] sm:$0xff] }
  0x12   :  { %137 = vmatpush.msra.mxu2 %v49_v32  ;;  %160 = vmatpush.msra.mxu3 %v50_v33  ;;  %v32_v51 = vld [vmem:[%s615_s0 + $0x68] sm:$0xff]  ;;  %v29_v52 = vld [vmem:[%s615_s0 + $0x50] sm:$0xff]  ;;  %v30_v53 = vld [vmem:[%s615_s0 + $0x58] sm:$0xff] }
  0x13   :  { %91 = vmatpush.msra.mxu0 %v47_v34  ;;  %114 = vmatpush.msra.mxu1 %v48_v35  ;;  %v27_v54 = vld [vmem:[%s615_s0 + $0x40] sm:$0xff]  ;;  %v28_v55 = vld [vmem:[%s615_s0 + $0x48] sm:$0xff]  ;;  %v25_v56 = vld [vmem:[%s615_s0 + $0x30] sm:$0xff] }
  0x14   :  { %138 = vmatpush.msra.mxu2 %v45_v36  ;;  %161 = vmatpush.msra.mxu3 %v46_v37  ;;  %v26_v57 = vld [vmem:[%s615_s0 + $0x38] sm:$0xff]  ;;  %v23_v58 = vld [vmem:[%s615_s0 + $0x20] sm:$0xff]  ;;  %v24_v59 = vld [vmem:[%s615_s0 + $0x28] sm:$0xff] }
  0x15   :  { %92 = vmatpush.msra.mxu0 %v43_v38  ;;  %115 = vmatpush.msra.mxu1 %v44_v39  ;;  %v21_v60 = vld [vmem:[%s615_s0 + $0x10] sm:$0xff]  ;;  %v22_v61 = vld [vmem:[%s615_s0 + $0x18] sm:$0xff]  ;;  %v17_v62 = vld [vmem:[%s616_s1] sm:$0xff] }
  0x16   :  { %139 = vmatpush.msra.mxu2 %v41_v40  ;;  %162 = vmatpush.msra.mxu3 %v42_v41  ;;  %v19_v63 = vld [vmem:[%s615_s0] sm:$0xff]  ;;  %v20_v0 = vld [vmem:[%s615_s0 + $0x8] sm:$0xff] }
  0x17   :  { %93 = vmatpush.msra.mxu0 %v39_v42  ;;  %116 = vmatpush.msra.mxu1 %v40_v43  ;;  %v18_v1 = vld [vmem:[%s616_s1 + $0x8] sm:$0xff]  ;;  %v315_v42 = vmov 0   ;;  %v259_v43 = vld [vmem:[%s617_s3] sm:$0xff] }
  0x18   :  { %140 = vmatpush.msra.mxu2 %v37_v44  ;;  %163 = vmatpush.msra.mxu3 %v38_v45  ;;  %v260_v44 = vld [vmem:[%s617_s3 + $0x8] sm:$0xff] }
  0x19   :  { %94 = vmatpush.msra.mxu0 %v35_v46  ;;  %117 = vmatpush.msra.mxu1 %v36_v47 }
  0x1a   :  { %141 = vmatpush.msra.mxu2 %v33_v48  ;;  %164 = vmatpush.msra.mxu3 %v34_v49 }
  0x1b   :  { %95 = vmatpush.msra.mxu0 %v31_v50  ;;  %118 = vmatpush.msra.mxu1 %v32_v51 }
  0x1c   :  { %142 = vmatpush.msra.mxu2 %v29_v52  ;;  %165 = vmatpush.msra.mxu3 %v30_v53 }
  0x1d   :  { %96 = vmatpush.msra.mxu0 %v27_v54  ;;  %119 = vmatpush.msra.mxu1 %v28_v55 }
  0x1e   :  { %143 = vmatpush.msra.mxu2 %v25_v56  ;;  %166 = vmatpush.msra.mxu3 %v26_v57 }
  0x1f   :  { %97 = vmatpush.msra.mxu0 %v23_v58  ;;  %120 = vmatpush.msra.mxu1 %v24_v59  ;;  %v215_v58 = vld [vmem:[%s618_s2] sm:$0xff] }
  0x20   :  { %144 = vmatpush.msra.mxu2 %v21_v60  ;;  %167 = vmatpush.msra.mxu3 %v22_v61 }
  0x21   :  { %145 = vmatmul.f32.vlgmr.msra.gmra.mxu2 %v17_v62  ;;  %168 = vmatmul.f32.vlgmr.msra.gmra.mxu3 %v17_v62 }
  0x22   :  { %98 = vmatpush.msra.mxu0 %v19_v63  ;;  %121 = vmatpush.msra.mxu1 %v20_v0 }
  0x23   :  { %99 = vmatmul.f32.vlgmr.msra.gmra.mxu0 %v17_v62  ;;  %122 = vmatmul.f32.vlgmr.msra.gmra.mxu1 %v17_v62 }
  0x24   :  { %309 = vset.pattern.permute.xlu0 %v315_v42  ;;  %310 = vset.pattern.permute.xlu1 %v315_v42 }
  0x25   :  { %308 = vset.pattern.permute.xlu2 %v315_v42 }
  0x29   :  { %148 = vmatmul.f32.gmra.mxu2 %v18_v1  ;;  %171 = vmatmul.f32.gmra.mxu3 %v18_v1 }
  0x2b   :  { %102 = vmatmul.f32.gmra.mxu0 %v18_v1  ;;  %125 = vmatmul.f32.gmra.mxu1 %v18_v1  ;;  %v216_v1 = vld [vmem:[%s618_s2 + $0x8] sm:$0xff] }
  0xa0   :  { %v100_v2 = vpop.f32.mrf.mxu0  ;;  %v123_v3 = vpop.f32.mrf.mxu1 }
  0xa1   :  { %v175_v4 = vadd.f32 %v123_v3, %v100_v2 }
  0xa4   :  { %v146_v5 = vpop.f32.mrf.mxu2  ;;  %v169_v6 = vpop.f32.mrf.mxu3 }
  0xa5   :  { %v176_v7 = vadd.f32 %v175_v4, %v146_v5 }
  0xa7   :  { %v177_v8 = vadd.f32 %v176_v7, %v169_v6 }
  0xa8   :  { %v103_v9 = vpop.f32.mrf.mxu0  ;;  %v126_v10 = vpop.f32.mrf.mxu1 }
  0xa9   :  { %178 = vadd.xlane.f32.xlu0 %v177_v8  ;;  %v180_v11 = vadd.f32 %v126_v10, %v103_v9 }
  0xac   :  { %v149_v12 = vpop.f32.mrf.mxu2  ;;  %v172_v13 = vpop.f32.mrf.mxu3 }
  0xad   :  { %v181_v14 = vadd.f32 %v180_v11, %v149_v12 }
  0xaf   :  { %v182_v15 = vadd.f32 %v181_v14, %v172_v13 }
  0xb1   :  { %183 = vadd.xlane.f32.xlu0 %v182_v15 }
  0xc5   :  { %263 = vperm.xlu0 %309, %v259_v43  }
 0x11c   :  { %v179_v16 = vpop.xlane.xlu0 %178 }
 0x11d   :  { %v185_v17 = vmul.f32 0.001953125, %v179_v16 }
 0x11f   :  { %v539_v18 = vsub.f32 %v100_v2, %v185_v17  ;;  %v541_v19 = vsub.f32 %v123_v3, %v185_v17  ;;  %v543_v20 = vsub.f32 %v146_v5, %v185_v17  ;;  %v545_v21 = vsub.f32 %v169_v6, %v185_v17 }
 0x121   :  { %v195_v22 = vmul.f32 %v539_v18, %v539_v18  ;;  %v196_v23 = vmul.f32 %v541_v19, %v541_v19  ;;  %v197_v24 = vmul.f32 %v543_v20, %v543_v20  ;;  %v198_v28 = vmul.f32 %v545_v21, %v545_v21 }
 0x123   :  { %v203_v25 = vadd.f32 %v196_v23, %v195_v22 }
 0x124   :  { %v184_v26 = vpop.xlane.xlu0 %183 }
 0x125   :  { %v186_v27 = vmul.f32 0.001953125, %v184_v26  ;;  %v204_v29 = vadd.f32 %v203_v25, %v197_v24 }
 0x127   :  { %v555_v30 = vsub.f32 %v103_v9, %v186_v27  ;;  %v557_v31 = vsub.f32 %v126_v10, %v186_v27  ;;  %v205_v32 = vadd.f32 %v204_v29, %v198_v28  ;;  %v559_v33 = vsub.f32 %v149_v12, %v186_v27 }
 0x128   :  { %v561_v34 = vsub.f32 %v172_v13, %v186_v27 }
 0x129   :  { %206 = vadd.xlane.f32.xlu1 %v205_v32  ;;  %v199_v35 = vmul.f32 %v555_v30, %v555_v30  ;;  %v200_v36 = vmul.f32 %v557_v31, %v557_v31  ;;  %v201_v37 = vmul.f32 %v559_v33, %v559_v33 }
 0x12a   :  { %v202_v39 = vmul.f32 %v561_v34, %v561_v34 }
 0x12b   :  { %v208_v38 = vadd.f32 %v200_v36, %v199_v35 }
 0x12d   :  { %v209_v40 = vadd.f32 %v208_v38, %v201_v37 }
 0x12f   :  { %v210_v41 = vadd.f32 %v209_v40, %v202_v39 }
 0x131   :  { %211 = vadd.xlane.f32.xlu1 %v210_v41 }
 0x137   :  { %v264_v6 = vpop.permute.xlu0 %263 }
 0x14a   :  { %268 = vperm.xlu1 %310, %v260_v44  }
 0x19c   :  { %v207_v45 = vpop.xlane.xlu1 %206 }
 0x19d   :  { %v213_v46 = vmul.f32 0.001953125, %v207_v45 }
 0x19f   :  { %v217_v47 = vadd.f32 1e-05, %v213_v46 }
 0x1a1   :  { %311 = vrsqrt.f32 %v217_v47  ;;  %vm225_vm1 = vweird.f32 %v217_v47 }
 0x1a4   :  { %v212_v48 = vpop.xlane.xlu1 %211 }
 0x1a5   :  { %v214_v49 = vmul.f32 0.001953125, %v212_v48 }
 0x1a7   :  { %v312_v50 = vpop.eup %311  ;;  %v218_v51 = vadd.f32 1e-05, %v214_v49 }
 0x1a8   :  { %v220_v52 = vmul.f32 %v312_v50, %v217_v47  ;;  %vm226_vm0 = vweird.f32 %v312_v50 }
 0x1a9   :  { %313 = vrsqrt.f32 %v218_v51  ;;  %vm227_vm2 = vmor %vm225_vm1, %vm226_vm0  ;;  %vm235_vm4 = vweird.f32 %v218_v51 }
 0x1aa   :  { %v221_v53 = vmul.f32 %v312_v50, %v220_v52 }
 0x1ac   :  { %v222_v54 = vmul.f32 0.5, %v221_v53 }
 0x1ae   :  { %v223_v55 = vsub.f32 1.5, %v222_v54 }
 0x1af   :  { %v314_v56 = vpop.eup %313 }
 0x1b0   :  { %v230_v57 = vmul.f32 %v314_v56, %v218_v51  ;;  %v224_v59 = vmul.f32 %v312_v50, %v223_v55  ;;  %vm236_vm3 = vweird.f32 %v314_v56 }
 0x1b1   :  { %vm237_vm5 = vmor %vm235_vm4, %vm236_vm3 }
 0x1b2   :  { %v231_v60 = vmul.f32 %v314_v56, %v230_v57  ;;  %v228_v61 = vsel %vm227_vm2, %v312_v50, %v224_v59 }
 0x1b3   :  { %v239_v62 = vmul.f32 %v228_v61, %v215_v58 }
 0x1b4   :  { %v232_v63 = vmul.f32 0.5, %v231_v60 }
 0x1b5   :  { %243 = vperm.xlu2 %308, %v239_v62  }
 0x1b6   :  { %v233_v0 = vsub.f32 1.5, %v232_v63 }
 0x1b8   :  { %v234_v2 = vmul.f32 %v314_v56, %v233_v0 }
 0x1ba   :  { %v238_v3 = vsel %vm237_vm5, %v314_v56, %v234_v2 }
 0x1bb   :  { %v240_v4 = vmul.f32 %v238_v3, %v216_v1 }
 0x1bd   :  { %248 = vperm.xlu2 %308, %v240_v4  }
 0x20f   :  { %v244_v5 = vpop.permute.xlu2 %243 }
 0x210   :  { %v251_v7 = vmul.f32 %v244_v5, %v539_v18  ;;  %v252_v8 = vmul.f32 %v244_v5, %v541_v19  ;;  %v253_v9 = vmul.f32 %v244_v5, %v543_v20  ;;  %v254_v10 = vmul.f32 %v244_v5, %v545_v21  ;;  %v269_v18 = vpop.permute.xlu1 %268 }
 0x212   :  { %v271_v11 = vadd.f32 %v264_v6, %v251_v7  ;;  %v272_v12 = vadd.f32 %v264_v6, %v252_v8  ;;  %v273_v13 = vadd.f32 %v264_v6, %v253_v9  ;;  %v274_v14 = vadd.f32 %v264_v6, %v254_v10 }
 0x214   :  { %v279_v15 = vmul.f32 0.2, %v271_v11  ;;  %v280_v16 = vmul.f32 0.2, %v272_v12  ;;  %v281_v17 = vmul.f32 0.2, %v273_v13 }
 0x215   :  { %v282_v22 = vmul.f32 0.2, %v274_v14 }
 0x216   :  { %v287_v23 = vmax.f32 %v271_v11, %v279_v15  ;;  %v288_v24 = vmax.f32 %v272_v12, %v280_v16  ;;  %v289_v25 = vmax.f32 %v273_v13, %v281_v17 }
 0x217   :  { %v290_v26 = vmax.f32 %v274_v14, %v282_v22  ;;  %v249_v27 = vpop.permute.xlu2 %248 }
 0x218   :  { %295 = vst [vmem:[%s619_s4] sm:$0xff] %v287_v23  ;;  %v255_v19 = vmul.f32 %v249_v27, %v555_v30  ;;  %v256_v20 = vmul.f32 %v249_v27, %v557_v31  ;;  %v257_v21 = vmul.f32 %v249_v27, %v559_v33  ;;  %v258_v28 = vmul.f32 %v249_v27, %v561_v34 }
 0x219   :  { %296 = vst [vmem:[%s619_s4 + $0x8] sm:$0xff] %v288_v24 }
 0x21a   :  { %297 = vst [vmem:[%s619_s4 + $0x10] sm:$0xff] %v289_v25  ;;  %v275_v29 = vadd.f32 %v269_v18, %v255_v19  ;;  %v276_v32 = vadd.f32 %v269_v18, %v256_v20  ;;  %v277_v35 = vadd.f32 %v269_v18, %v257_v21  ;;  %v278_v36 = vadd.f32 %v269_v18, %v258_v28 }
 0x21b   :  { %298 = vst [vmem:[%s619_s4 + $0x18] sm:$0xff] %v290_v26 }
 0x21c   :  { %v283_v30 = vmul.f32 0.2, %v275_v29  ;;  %v284_v31 = vmul.f32 0.2, %v276_v32  ;;  %v285_v33 = vmul.f32 0.2, %v277_v35 }
 0x21d   :  { %v286_v34 = vmul.f32 0.2, %v278_v36 }
 0x21e   :  { %v291_v37 = vmax.f32 %v275_v29, %v283_v30  ;;  %v292_v38 = vmax.f32 %v276_v32, %v284_v31  ;;  %v293_v39 = vmax.f32 %v277_v35, %v285_v33 }
 0x21f   :  { %v294_v40 = vmax.f32 %v278_v36, %v286_v34 }
 0x220   :  { %299 = vst [vmem:[%s619_s4 + $0x20] sm:$0xff] %v291_v37 }
 0x221   :  { %300 = vst [vmem:[%s619_s4 + $0x28] sm:$0xff] %v292_v38 }
 0x222   :  { %301 = vst [vmem:[%s619_s4 + $0x30] sm:$0xff] %v293_v39 }
 0x223   :  { %302 = vst [vmem:[%s619_s4 + $0x38] sm:$0xff] %v294_v40 }

// kernel: encoder_forward.9
= control target key start
LH: loop header
LB: loop body
LE: loop exit
PB: predicated region body
PF: predicated region fallthrough
CT: control target
= control target key end

     0   :  { %s513_s0 = inlined_call_operand.vmem [shape: f32[256,128], index: 0, kind: input, shape index: {}]   ;;  %s514_s1 = inlined_call_operand.vmem [shape: f32[32,256], index: 1, kind: input, shape index: {}]   ;;  %s515_s2 = inlined_call_operand.vmem [shape: f32[32,1], index: 2, kind: input, shape index: {}]   ;;  %s516_s3 = inlined_call_operand.vmem [shape: f32[32,1], index: 3, kind: input, shape index: {}]   ;;  %s517_s4 = inlined_call_operand.vmem [shape: f32[32,128], index: 4, kind: output, shape index: {}]  }
   0x1   :  { %v40_v0 = vld [vmem:[%s513_s0 + $0x78] sm:$0xff]  ;;  %v39_v2 = vld [vmem:[%s513_s0 + $0x70] sm:$0xff]  ;;  %v38_v4 = vld [vmem:[%s513_s0 + $0x68] sm:$0xff] }
   0x2   :  { %v56_v1 = vld [vmem:[%s513_s0 + $0xf8] sm:$0xff]  ;;  %57 = vmatpush.msra.mxu0 %v40_v0  ;;  %267 = vmatpush.msra.mxu2 %v40_v0  ;;  %v55_v3 = vld [vmem:[%s513_s0 + $0xf0] sm:$0xff]  ;;  %v54_v5 = vld [vmem:[%s513_s0 + $0xe8] sm:$0xff] }
   0x3   :  { %86 = vmatpush.msra.mxu1 %v56_v1  ;;  %283 = vmatpush.msra.mxu3 %v56_v1  ;;  %v37_v6 = vld [vmem:[%s513_s0 + $0x60] sm:$0xff]  ;;  %v36_v8 = vld [vmem:[%s513_s0 + $0x58] sm:$0xff]  ;;  %v35_v10 = vld [vmem:[%s513_s0 + $0x50] sm:$0xff] }
   0x4   :  { %58 = vmatpush.msra.mxu0 %v39_v2  ;;  %268 = vmatpush.msra.mxu2 %v39_v2  ;;  %v53_v7 = vld [vmem:[%s513_s0 + $0xe0] sm:$0xff]  ;;  %v52_v9 = vld [vmem:[%s513_s0 + $0xd8] sm:$0xff]  ;;  %v51_v11 = vld [vmem:[%s513_s0 + $0xd0] sm:$0xff] }
   0x5   :  { %87 = vmatpush.msra.mxu1 %v55_v3  ;;  %284 = vmatpush.msra.mxu3 %v55_v3  ;;  %v34_v12 = vld [vmem:[%s513_s0 + $0x48] sm:$0xff]  ;;  %v33_v14 = vld [vmem:[%s513_s0 + $0x40] sm:$0xff]  ;;  %v32_v16 = vld [vmem:[%s513_s0 + $0x38] sm:$0xff] }
   0x6   :  { %59 = vmatpush.msra.mxu0 %v38_v4  ;;  %269 = vmatpush.msra.mxu2 %v38_v4  ;;  %v50_v13 = vld [vmem:[%s513_s0 + $0xc8] sm:$0xff]  ;;  %v49_v15 = vld [vmem:[%s513_s0 + $0xc0] sm:$0xff]  ;;  %v48_v17 = vld [vmem:[%s513_s0 + $0xb8] sm:$0xff]  ;;  %v311_v4 = vmov 0  }
   0x7   :  { %88 = vmatpush.msra.mxu1 %v54_v5  ;;  %285 = vmatpush.msra.mxu3 %v54_v5  ;;  %v31_v18 = vld [vmem:[%s513_s0 + $0x30] sm:$0xff]  ;;  %v30_v20 = vld [vmem:[%s513_s0 + $0x28] sm:$0xff]  ;;  %v29_v22 = vld [vmem:[%s513_s0 + $0x20] sm:$0xff] }
   0x8   :  { %60 = vmatpush.msra.mxu0 %v37_v6  ;;  %270 = vmatpush.msra.mxu2 %v37_v6  ;;  %v47_v19 = vld [vmem:[%s513_s0 + $0xb0] sm:$0xff]  ;;  %v46_v21 = vld [vmem:[%s513_s0 + $0xa8] sm:$0xff]  ;;  %v45_v23 = vld [vmem:[%s513_s0 + $0xa0] sm:$0xff] }
   0x9   :  { %89 = vmatpush.msra.mxu1 %v53_v7  ;;  %286 = vmatpush.msra.mxu3 %v53_v7  ;;  %v28_v24 = vld [vmem:[%s513_s0 + $0x18] sm:$0xff]  ;;  %v27_v26 = vld [vmem:[%s513_s0 + $0x10] sm:$0xff]  ;;  %v26_v28 = vld [vmem:[%s513_s0 + $0x8] sm:$0xff] }
   0xa   :  { %61 = vmatpush.msra.mxu0 %v36_v8  ;;  %271 = vmatpush.msra.mxu2 %v36_v8  ;;  %v44_v25 = vld [vmem:[%s513_s0 + $0x98] sm:$0xff]  ;;  %v43_v27 = vld [vmem:[%s513_s0 + $0x90] sm:$0xff]  ;;  %v42_v29 = vld [vmem:[%s513_s0 + $0x88] sm:$0xff] }
   0xb   :  { %90 = vmatpush.msra.mxu1 %v52_v9  ;;  %287 = vmatpush.msra.mxu3 %v52_v9  ;;  %v25_v30 = vld [vmem:[%s513_s0] sm:$0xff]  ;;  %v18_v34 = vld [vmem:[%s514_s1 + $0x8] sm:$0xff]  ;;  %v19_v36 = vld [vmem:[%s514_s1 + $0x10] sm:$0xff] }
   0xc   :  { %62 = vmatpush.msra.mxu0 %v35_v10  ;;  %272 = vmatpush.msra.mxu2 %v35_v10  ;;  %v41_v31 = vld [vmem:[%s513_s0 + $0x80] sm:$0xff]  ;;  %v22_v35 = vld [vmem:[%s514_s1 + $0x28] sm:$0xff]  ;;  %v23_v37 = vld [vmem:[%s514_s1 + $0x30] sm:$0xff] }
   0xd   :  { %91 = vmatpush.msra.mxu1 %v51_v11  ;;  %288 = vmatpush.msra.mxu3 %v51_v11  ;;  %v17_v32 = vld [vmem:[%s514_s1] sm:$0xff]  ;;  %v20_v38 = vld [vmem:[%s514_s1 + $0x18] sm:$0xff] }
   0xe   :  { %63 = vmatpush.msra.mxu0 %v34_v12  ;;  %273 = vmatpush.msra.mxu2 %v34_v12  ;;  %v21_v33 = vld [vmem:[%s514_s1 + $0x20] sm:$0xff]  ;;  %v24_v39 = vld [vmem:[%s514_s1 + $0x38] sm:$0xff] }
   0xf   :  { %92 = vmatpush.msra.mxu1 %v50_v13  ;;  %289 = vmatpush.msra.mxu3 %v50_v13 }
  0x10   :  { %64 = vmatpush.msra.mxu0 %v33_v14  ;;  %274 = vmatpush.msra.mxu2 %v33_v14 }
  0x11   :  { %93 = vmatpush.msra.mxu1 %v49_v15  ;;  %290 = vmatpush.msra.mxu3 %v49_v15 }
  0x12   :  { %65 = vmatpush.msra.mxu0 %v32_v16  ;;  %275 = vmatpush.msra.mxu2 %v32_v16 }
  0x13   :  { %94 = vmatpush.msra.mxu1 %v48_v17  ;;  %291 = vmatpush.msra.mxu3 %v48_v17 }
  0x14   :  { %66 = vmatpush.msra.mxu0 %v31_v18  ;;  %276 = vmatpush.msra.mxu2 %v31_v18 }
  0x15   :  { %95 = vmatpush.msra.mxu1 %v47_v19  ;;  %292 = vmatpush.msra.mxu3 %v47_v19 }
  0x16   :  { %67 = vmatpush.msra.mxu0 %v30_v20  ;;  %277 = vmatpush.msra.mxu2 %v30_v20 }
  0x17   :  { %96 = vmatpush.msra.mxu1 %v46_v21  ;;  %293 = vmatpush.msra.mxu3 %v46_v21 }
  0x18   :  { %68 = vmatpush.msra.mxu0 %v29_v22  ;;  %278 = vmatpush.msra.mxu2 %v29_v22 }
  0x19   :  { %97 = vmatpush.msra.mxu1 %v45_v23  ;;  %294 = vmatpush.msra.mxu3 %v45_v23 }
  0x1a   :  { %69 = vmatpush.msra.mxu0 %v28_v24  ;;  %279 = vmatpush.msra.mxu2 %v28_v24 }
  0x1b   :  { %98 = vmatpush.msra.mxu1 %v44_v25  ;;  %295 = vmatpush.msra.mxu3 %v44_v25 }
  0x1c   :  { %70 = vmatpush.msra.mxu0 %v27_v26  ;;  %280 = vmatpush.msra.mxu2 %v27_v26 }
  0x1d   :  { %99 = vmatpush.msra.mxu1 %v43_v27  ;;  %296 = vmatpush.msra.mxu3 %v43_v27  ;;  %v147_v27 = vld [vmem:[%s515_s2] sm:$0xff] }
  0x1e   :  { %71 = vmatpush.msra.mxu0 %v26_v28  ;;  %281 = vmatpush.msra.mxu2 %v26_v28 }
  0x1f   :  { %100 = vmatpush.msra.mxu1 %v42_v29  ;;  %297 = vmatpush.msra.mxu3 %v42_v29 }
  0x20   :  { %72 = vmatpush.msra.mxu0 %v25_v30  ;;  %282 = vmatpush.msra.mxu2 %v25_v30 }
  0x21   :  { %101 = vmatpush.msra.mxu1 %v41_v31  ;;  %298 = vmatpush.msra.mxu3 %v41_v31 }
  0x22   :  { %73 = vmatmul.f32.vlgmr.msra.gmra.mxu0 %v17_v32  ;;  %79 = vmatmul.f32.vlgmr.msra.gmra.mxu2 %v21_v33 }
  0x23   :  { %102 = vmatmul.f32.vlgmr.msra.gmra.mxu1 %v18_v34  ;;  %108 = vmatmul.f32.vlgmr.msra.gmra.mxu3 %v22_v35 }
  0x24   :  { %300 = vset.pattern.permute.xlu2 %v311_v4  ;;  %302 = vset.pattern.permute.xlu1 %v311_v4 }
  0x25   :  { %301 = vset.pattern.permute.xlu0 %v311_v4 }
  0x2a   :  { %76 = vmatmul.f32.gmra.mxu0 %v19_v36  ;;  %82 = vmatmul.f32.gmra.mxu2 %v23_v37 }
  0x2b   :  { %105 = vmatmul.f32.gmra.mxu1 %v20_v38  ;;  %111 = vmatmul.f32.gmra.mxu3 %v24_v39  ;;  %v149_v38 = vld [vmem:[%s515_s2 + $0x10] sm:$0xff] }
  0x9f   :  { %v74_v40 = vpop.f32.mrf.mxu0 }
  0xa0   :  { %v103_v41 = vpop.f32.mrf.mxu1 }
  0xa1   :  { %v104_v42 = vadd.f32 %v103_v41, %v74_v40 }
  0xa3   :  { %115 = vadd.xlane.f32.xlu0 %v104_v42 }
  0xa5   :  { %v80_v43 = vpop.f32.mrf.mxu2 }
  0xa6   :  { %v109_v44 = vpop.f32.mrf.mxu3 }
  0xa7   :  { %v110_v45 = vadd.f32 %v109_v44, %v80_v43  ;;  %v77_v46 = vpop.f32.mrf.mxu0 }
  0xa8   :  { %v106_v47 = vpop.f32.mrf.mxu1 }
  0xa9   :  { %v107_v48 = vadd.f32 %v106_v47, %v77_v46  ;;  %119 = vadd.xlane.f32.xlu1 %v110_v45  ;;  %v223_v46 = vld [vmem:[%s516_s3] sm:$0xff] }
  0xab   :  { %117 = vadd.xlane.f32.xlu0 %v107_v48 }
  0xad   :  { %v83_v49 = vpop.f32.mrf.mxu2 }
  0xae   :  { %v112_v50 = vpop.f32.mrf.mxu3 }
  0xaf   :  { %v113_v51 = vadd.f32 %v112_v50, %v83_v49 }
  0xb1   :  { %121 = vadd.xlane.f32.xlu1 %v113_v51 }
 0x116   :  { %v116_v52 = vpop.xlane.xlu0 %115 }
 0x117   :  { %v123_v53 = vmul.f32 0.0078125, %v116_v52  ;;  %v150_v52 = vld [vmem:[%s515_s2 + $0x18] sm:$0xff] }
 0x119   :  { %v457_v54 = vsub.f32 %v104_v42, %v123_v53  ;;  %v148_v42 = vld [vmem:[%s515_s2 + $0x8] sm:$0xff] }
 0x11b   :  { %v131_v55 = vmul.f32 %v457_v54, %v457_v54 }
 0x11c   :  { %v120_v56 = vpop.xlane.xlu1 %119 }
 0x11d   :  { %v125_v57 = vmul.f32 0.0078125, %v120_v56  ;;  %135 = vadd.xlane.f32.xlu2 %v131_v55  ;;  %v226_v56 = vld [vmem:[%s516_s3 + $0x18] sm:$0xff] }
 0x11e   :  { %v118_v58 = vpop.xlane.xlu0 %117 }
 0x11f   :  { %v461_v59 = vsub.f32 %v110_v45, %v125_v57  ;;  %v124_v60 = vmul.f32 0.0078125, %v118_v58  ;;  %v225_v57 = vld [vmem:[%s516_s3 + $0x10] sm:$0xff] }
 0x121   :  { %v463_v61 = vsub.f32 %v107_v48, %v124_v60  ;;  %v133_v62 = vmul.f32 %v461_v59, %v461_v59 }
 0x123   :  { %139 = vadd.xlane.f32.xlu0 %v133_v62  ;;  %v132_v63 = vmul.f32 %v463_v61, %v463_v61 }
 0x124   :  { %v122_v0 = vpop.xlane.xlu1 %121 }
 0x125   :  { %v126_v1 = vmul.f32 0.0078125, %v122_v0  ;;  %137 = vadd.xlane.f32.xlu2 %v132_v63 }
 0x127   :  { %v469_v2 = vsub.f32 %v113_v51, %v126_v1  ;;  %v224_v51 = vld [vmem:[%s516_s3 + $0x8] sm:$0xff] }
 0x129   :  { %v134_v3 = vmul.f32 %v469_v2, %v469_v2 }
 0x12b   :  { %141 = vadd.xlane.f32.xlu1 %v134_v3 }
 0x190   :  { %v136_v5 = vpop.xlane.xlu2 %135 }
 0x191   :  { %v143_v6 = vmul.f32 0.0078125, %v136_v5 }
 0x193   :  { %v151_v7 = vadd.f32 1e-05, %v143_v6 }
 0x195   :  { %303 = vrsqrt.f32 %v151_v7  ;;  %vm161_vm1 = vweird.f32 %v151_v7 }
 0x196   :  { %v140_v8 = vpop.xlane.xlu0 %139 }
 0x197   :  { %v145_v9 = vmul.f32 0.0078125, %v140_v8 }
 0x198   :  { %v138_v10 = vpop.xlane.xlu2 %137 }
 0x199   :  { %v153_v11 = vadd.f32 1e-05, %v145_v9  ;;  %v144_v12 = vmul.f32 0.0078125, %v138_v10 }
 0x19b   :  { %v304_v13 = vpop.eup %303  ;;  %305 = vrsqrt.f32 %v153_v11  ;;  %v152_v14 = vadd.f32 1e-05, %v144_v12  ;;  %vm181_vm4 = vweird.f32 %v153_v11 }
 0x19c   :  { %v156_v15 = vmul.f32 %v304_v13, %v151_v7  ;;  %vm162_vm0 = vweird.f32 %v304_v13 }
 0x19d   :  { %307 = vrsqrt.f32 %v152_v14  ;;  %vm163_vm2 = vmor %vm161_vm1, %vm162_vm0  ;;  %vm171_vm7 = vweird.f32 %v152_v14 }
 0x19e   :  { %v157_v16 = vmul.f32 %v304_v13, %v156_v15  ;;  %v142_v17 = vpop.xlane.xlu1 %141 }
 0x19f   :  { %v146_v18 = vmul.f32 0.0078125, %v142_v17 }
 0x1a0   :  { %v158_v19 = vmul.f32 0.5, %v157_v16 }
 0x1a1   :  { %v306_v20 = vpop.eup %305  ;;  %v154_v21 = vadd.f32 1e-05, %v146_v18 }
 0x1a2   :  { %v159_v22 = vsub.f32 1.5, %v158_v19  ;;  %v176_v23 = vmul.f32 %v306_v20, %v153_v11  ;;  %vm182_vm3 = vweird.f32 %v306_v20 }
 0x1a3   :  { %v308_v24 = vpop.eup %307  ;;  %309 = vrsqrt.f32 %v154_v21  ;;  %vm183_vm6 = vmor %vm181_vm4, %vm182_vm3  ;;  %vm191_vm10 = vweird.f32 %v154_v21 }
 0x1a4   :  { %v177_v25 = vmul.f32 %v306_v20, %v176_v23  ;;  %v166_v26 = vmul.f32 %v308_v24, %v152_v14  ;;  %v160_v28 = vmul.f32 %v304_v13, %v159_v22  ;;  %vm172_vm5 = vweird.f32 %v308_v24 }
 0x1a5   :  { %vm173_vm8 = vmor %vm171_vm7, %vm172_vm5 }
 0x1a6   :  { %v178_v29 = vmul.f32 0.5, %v177_v25  ;;  %v167_v30 = vmul.f32 %v308_v24, %v166_v26  ;;  %v164_v31 = vsel %vm163_vm2, %v304_v13, %v160_v28 }
 0x1a7   :  { %v195_v32 = vmul.f32 %v164_v31, %v147_v27 }
 0x1a8   :  { %v179_v33 = vsub.f32 1.5, %v178_v29  ;;  %v168_v34 = vmul.f32 0.5, %v167_v30 }
 0x1a9   :  { %v310_v35 = vpop.eup %309  ;;  %201 = vperm.xlu2 %300, %v195_v32  }
 0x1aa   :  { %v169_v36 = vsub.f32 1.5, %v168_v34  ;;  %v186_v37 = vmul.f32 %v310_v35, %v154_v21  ;;  %v180_v39 = vmul.f32 %v306_v20, %v179_v33  ;;  %vm192_vm9 = vweird.f32 %v310_v35 }
 0x1ab   :  { %vm193_vm11 = vmor %vm191_vm10, %vm192_vm9 }
 0x1ac   :  { %v187_v40 = vmul.f32 %v310_v35, %v186_v37  ;;  %v184_v41 = vsel %vm183_vm6, %v306_v20, %v180_v39  ;;  %v170_v43 = vmul.f32 %v308_v24, %v169_v36 }
 0x1ad   :  { %v197_v44 = vmul.f32 %v184_v41, %v149_v38 }
 0x1ae   :  { %v188_v45 = vmul.f32 0.5, %v187_v40  ;;  %v174_v47 = vsel %vm173_vm8, %v308_v24, %v170_v43 }
 0x1af   :  { %211 = vperm.xlu1 %302, %v197_v44   ;;  %v196_v48 = vmul.f32 %v174_v47, %v148_v42 }
 0x1b0   :  { %v189_v49 = vsub.f32 1.5, %v188_v45 }
 0x1b1   :  { %229 = vperm.xlu2 %300, %v223_v46   ;;  %206 = vperm.xlu0 %301, %v196_v48  }
 0x1b2   :  { %v190_v50 = vmul.f32 %v310_v35, %v189_v49 }
 0x1b4   :  { %v194_v53 = vsel %vm193_vm11, %v310_v35, %v190_v50 }
 0x1b5   :  { %v198_v55 = vmul.f32 %v194_v53, %v150_v52 }
 0x1b7   :  { %234 = vperm.xlu1 %302, %v224_v51  }
 0x1b9   :  { %216 = vperm.xlu2 %300, %v198_v55  }
 0x1bf   :  { %244 = vperm.xlu1 %302, %v226_v56  }
 0x1c1   :  { %239 = vperm.xlu2 %300, %v225_v57  }
 0x203   :  { %v202_v58 = vpop.permute.xlu2 %201 }
 0x204   :  { %v219_v60 = vmul.f32 %v202_v58, %v457_v54 }
 0x20b   :  { %v230_v62 = vpop.permute.xlu2 %229 }
 0x20c   :  { %v247_v63 = vadd.f32 %v230_v62, %v219_v60 }
 0x20e   :  { %v251_v0 = vmul.f32 0.2, %v247_v63 }
 0x210   :  { %v255_v1 = vmax.f32 %v247_v63, %v251_v0 }
 0x212   :  { %259 = vst [vmem:[%s517_s4] sm:$0xff] %v255_v1 }
 0x213   :  { %v217_v3 = vpop.permute.xlu2 %216 }
 0x214   :  { %v222_v15 = vmul.f32 %v217_v3, %v469_v2 }
 0x21b   :  { %v240_v6 = vpop.permute.xlu2 %239 }
 0x221   :  { %v212_v4 = vpop.permute.xlu1 %211 }
 0x222   :  { %v221_v5 = vmul.f32 %v212_v4, %v461_v59 }
 0x223   :  { %v207_v8 = vpop.permute.xlu0 %206 }
 0x224   :  { %v249_v7 = vadd.f32 %v240_v6, %v221_v5  ;;  %v220_v11 = vmul.f32 %v207_v8, %v463_v61 }
 0x226   :  { %v253_v9 = vmul.f32 0.2, %v249_v7 }
 0x228   :  { %v257_v10 = vmax.f32 %v249_v7, %v253_v9 }
 0x229   :  { %v235_v54 = vpop.permute.xlu1 %234 }
 0x22a   :  { %261 = vst [vmem:[%s517_s4 + $0x10] sm:$0xff] %v257_v10  ;;  %v248_v12 = vadd.f32 %v235_v54, %v220_v11 }
 0x22c   :  { %v252_v13 = vmul.f32 0.2, %v248_v12 }
 0x22e   :  { %v256_v14 = vmax.f32 %v248_v12, %v252_v13 }
 0x230   :  { %260 = vst [vmem:[%s517_s4 + $0x8] sm:$0xff] %v256_v14 }
 0x231   :  { %v245_v59 = vpop.permute.xlu1 %244 }
 0x232   :  { %v250_v16 = vadd.f32 %v245_v59, %v222_v15 }
 0x234   :  { %v254_v17 = vmul.f32 0.2, %v250_v16 }
 0x236   :  { %v258_v18 = vmax.f32 %v250_v16, %v254_v17 }
 0x238   :  { %262 = vst [vmem:[%s517_s4 + $0x18] sm:$0xff] %v258_v18 }

// kernel: encoder_forward.10
= control target key start
LH: loop header
LB: loop body
LE: loop exit
PB: predicated region body
PF: predicated region fallthrough
CT: control target
= control target key end

     0   :  { %vm213_vm0 = vcmask 261120   ;;  %s720_s0 = inlined_call_operand.vmem [shape: f32[512,32], index: 0, kind: input, shape index: {}]   ;;  %s721_s1 = inlined_call_operand.vmem [shape: f32[32,512], index: 1, kind: input, shape index: {}]   ;;  %s722_s3 = inlined_call_operand.vmem [shape: f32[32,1], index: 3, kind: input, shape index: {}]   ;;  %s723_s2 = inlined_call_operand.vmem [shape: f32[32,1], index: 2, kind: input, shape index: {}]   ;;  %s724_s4 = inlined_call_operand.vmem [shape: f32[32,32], index: 4, kind: output, shape index: {}]  }
   0x1   :  { %v80_v0 = vld [vmem:[%s720_s0 + $0x178] sm:$0xff]  ;;  %v79_v1 = vld [vmem:[%s720_s0 + $0x170] sm:$0xff]  ;;  %v78_v5 = vld [vmem:[%s720_s0 + $0x168] sm:$0xff] }
   0x2   :  { %v96_v2 = vld [vmem:[%s720_s0 + $0x1f8] sm:$0xff]  ;;  %155 = vmatpush.msra.mxu2 %v80_v0  ;;  %v95_v6 = vld [vmem:[%s720_s0 + $0x1f0] sm:$0xff]  ;;  %v94_v9 = vld [vmem:[%s720_s0 + $0x1e8] sm:$0xff] }
   0x3   :  { %184 = vmatpush.msra.mxu3 %v96_v2  ;;  %v48_v3 = vld [vmem:[%s720_s0 + $0x78] sm:$0xff]  ;;  %v47_v7 = vld [vmem:[%s720_s0 + $0x70] sm:$0xff]  ;;  %v46_v10 = vld [vmem:[%s720_s0 + $0x68] sm:$0xff] }
   0x4   :  { %v64_v4 = vld [vmem:[%s720_s0 + $0xf8] sm:$0xff]  ;;  %97 = vmatpush.msra.mxu0 %v48_v3  ;;  %v63_v8 = vld [vmem:[%s720_s0 + $0xf0] sm:$0xff]  ;;  %156 = vmatpush.msra.mxu2 %v79_v1  ;;  %v77_v11 = vld [vmem:[%s720_s0 + $0x160] sm:$0xff] }
   0x5   :  { %126 = vmatpush.msra.mxu1 %v64_v4  ;;  %185 = vmatpush.msra.mxu3 %v95_v6  ;;  %v62_v12 = vld [vmem:[%s720_s0 + $0xe8] sm:$0xff]  ;;  %v93_v13 = vld [vmem:[%s720_s0 + $0x1e0] sm:$0xff]  ;;  %v76_v16 = vld [vmem:[%s720_s0 + $0x158] sm:$0xff] }
   0x6   :  { %98 = vmatpush.msra.mxu0 %v47_v7  ;;  %157 = vmatpush.msra.mxu2 %v78_v5  ;;  %v45_v14 = vld [vmem:[%s720_s0 + $0x60] sm:$0xff]  ;;  %v92_v17 = vld [vmem:[%s720_s0 + $0x1d8] sm:$0xff]  ;;  %v75_v20 = vld [vmem:[%s720_s0 + $0x150] sm:$0xff] }
   0x7   :  { %127 = vmatpush.msra.mxu1 %v63_v8  ;;  %186 = vmatpush.msra.mxu3 %v94_v9  ;;  %v61_v15 = vld [vmem:[%s720_s0 + $0xe0] sm:$0xff]  ;;  %v44_v18 = vld [vmem:[%s720_s0 + $0x58] sm:$0xff]  ;;  %v91_v21 = vld [vmem:[%s720_s0 + $0x1d0] sm:$0xff] }
   0x8   :  { %99 = vmatpush.msra.mxu0 %v46_v10  ;;  %158 = vmatpush.msra.mxu2 %v77_v11  ;;  %v60_v19 = vld [vmem:[%s720_s0 + $0xd8] sm:$0xff]  ;;  %v43_v22 = vld [vmem:[%s720_s0 + $0x50] sm:$0xff]  ;;  %v74_v24 = vld [vmem:[%s720_s0 + $0x148] sm:$0xff] }
   0x9   :  { %128 = vmatpush.msra.mxu1 %v62_v12  ;;  %187 = vmatpush.msra.mxu3 %v93_v13  ;;  %v59_v23 = vld [vmem:[%s720_s0 + $0xd0] sm:$0xff]  ;;  %v90_v25 = vld [vmem:[%s720_s0 + $0x1c8] sm:$0xff]  ;;  %v73_v28 = vld [vmem:[%s720_s0 + $0x140] sm:$0xff] }
   0xa   :  { %100 = vmatpush.msra.mxu0 %v45_v14  ;;  %159 = vmatpush.msra.mxu2 %v76_v16  ;;  %v42_v26 = vld [vmem:[%s720_s0 + $0x48] sm:$0xff]  ;;  %v89_v29 = vld [vmem:[%s720_s0 + $0x1c0] sm:$0xff]  ;;  %v72_v32 = vld [vmem:[%s720_s0 + $0x138] sm:$0xff] }
   0xb   :  { %129 = vmatpush.msra.mxu1 %v61_v15  ;;  %188 = vmatpush.msra.mxu3 %v92_v17  ;;  %v58_v27 = vld [vmem:[%s720_s0 + $0xc8] sm:$0xff]  ;;  %v41_v30 = vld [vmem:[%s720_s0 + $0x40] sm:$0xff]  ;;  %v88_v33 = vld [vmem:[%s720_s0 + $0x1b8] sm:$0xff] }
   0xc   :  { %101 = vmatpush.msra.mxu0 %v44_v18  ;;  %160 = vmatpush.msra.mxu2 %v75_v20  ;;  %v57_v31 = vld [vmem:[%s720_s0 + $0xc0] sm:$0xff]  ;;  %v40_v34 = vld [vmem:[%s720_s0 + $0x38] sm:$0xff]  ;;  %v71_v36 = vld [vmem:[%s720_s0 + $0x130] sm:$0xff] }
   0xd   :  { %130 = vmatpush.msra.mxu1 %v60_v19  ;;  %189 = vmatpush.msra.mxu3 %v91_v21  ;;  %v56_v35 = vld [vmem:[%s720_s0 + $0xb8] sm:$0xff]  ;;  %v87_v37 = vld [vmem:[%s720_s0 + $0x1b0] sm:$0xff]  ;;  %v70_v40 = vld [vmem:[%s720_s0 + $0x128] sm:$0xff] }
   0xe   :  { %102 = vmatpush.msra.mxu0 %v43_v22  ;;  %161 = vmatpush.msra.mxu2 %v74_v24  ;;  %v39_v38 = vld [vmem:[%s720_s0 + $0x30] sm:$0xff]  ;;  %v86_v41 = vld [vmem:[%s720_s0 + $0x1a8] sm:$0xff]  ;;  %v69_v44 = vld [vmem:[%s720_s0 + $0x120] sm:$0xff] }
   0xf   :  { %131 = vmatpush.msra.mxu1 %v59_v23  ;;  %190 = vmatpush.msra.mxu3 %v90_v25  ;;  %v55_v39 = vld [vmem:[%s720_s0 + $0xb0] sm:$0xff]  ;;  %v38_v42 = vld [vmem:[%s720_s0 + $0x28] sm:$0xff]  ;;  %v85_v45 = vld [vmem:[%s720_s0 + $0x1a0] sm:$0xff] }
  0x10   :  { %103 = vmatpush.msra.mxu0 %v42_v26  ;;  %162 = vmatpush.msra.mxu2 %v73_v28  ;;  %v54_v43 = vld [vmem:[%s720_s0 + $0xa8] sm:$0xff]  ;;  %v37_v46 = vld [vmem:[%s720_s0 + $0x20] sm:$0xff]  ;;  %v68_v48 = vld [vmem:[%s720_s0 + $0x118] sm:$0xff] }
  0x11   :  { %132 = vmatpush.msra.mxu1 %v58_v27  ;;  %191 = vmatpush.msra.mxu3 %v89_v29  ;;  %v53_v47 = vld [vmem:[%s720_s0 + $0xa0] sm:$0xff]  ;;  %v84_v49 = vld [vmem:[%s720_s0 + $0x198] sm:$0xff]  ;;  %v67_v52 = vld [vmem:[%s720_s0 + $0x110] sm:$0xff] }
  0x12   :  { %104 = vmatpush.msra.mxu0 %v41_v30  ;;  %163 = vmatpush.msra.mxu2 %v72_v32  ;;  %v36_v50 = vld [vmem:[%s720_s0 + $0x18] sm:$0xff]  ;;  %v83_v53 = vld [vmem:[%s720_s0 + $0x190] sm:$0xff]  ;;  %v66_v56 = vld [vmem:[%s720_s0 + $0x108] sm:$0xff] }
  0x13   :  { %133 = vmatpush.msra.mxu1 %v57_v31  ;;  %192 = vmatpush.msra.mxu3 %v88_v33  ;;  %v52_v51 = vld [vmem:[%s720_s0 + $0x98] sm:$0xff]  ;;  %v35_v54 = vld [vmem:[%s720_s0 + $0x10] sm:$0xff]  ;;  %v82_v57 = vld [vmem:[%s720_s0 + $0x188] sm:$0xff] }
  0x14   :  { %105 = vmatpush.msra.mxu0 %v40_v34  ;;  %164 = vmatpush.msra.mxu2 %v71_v36  ;;  %v51_v55 = vld [vmem:[%s720_s0 + $0x90] sm:$0xff]  ;;  %v34_v58 = vld [vmem:[%s720_s0 + $0x8] sm:$0xff]  ;;  %v65_v60 = vld [vmem:[%s720_s0 + $0x100] sm:$0xff] }
  0x15   :  { %134 = vmatpush.msra.mxu1 %v56_v35  ;;  %193 = vmatpush.msra.mxu3 %v87_v37  ;;  %v50_v59 = vld [vmem:[%s720_s0 + $0x88] sm:$0xff]  ;;  %v81_v61 = vld [vmem:[%s720_s0 + $0x180] sm:$0xff]  ;;  %v19_v62 = vld [vmem:[%s721_s1 + $0x10] sm:$0xff] }
  0x16   :  { %106 = vmatpush.msra.mxu0 %v39_v38  ;;  %165 = vmatpush.msra.mxu2 %v70_v40  ;;  %v20_v63 = vld [vmem:[%s721_s1 + $0x18] sm:$0xff]  ;;  %v33_v0 = vld [vmem:[%s720_s0] sm:$0xff]  ;;  %v18_v3 = vld [vmem:[%s721_s1 + $0x8] sm:$0xff] }
  0x17   :  { %135 = vmatpush.msra.mxu1 %v55_v39  ;;  %194 = vmatpush.msra.mxu3 %v86_v41  ;;  %v49_v1 = vld [vmem:[%s720_s0 + $0x80] sm:$0xff]  ;;  %v23_v4 = vld [vmem:[%s721_s1 + $0x30] sm:$0xff]  ;;  %v24_v5 = vld [vmem:[%s721_s1 + $0x38] sm:$0xff] }
  0x18   :  { %107 = vmatpush.msra.mxu0 %v38_v42  ;;  %166 = vmatpush.msra.mxu2 %v69_v44  ;;  %v17_v2 = vld [vmem:[%s721_s1] sm:$0xff]  ;;  %v22_v7 = vld [vmem:[%s721_s1 + $0x28] sm:$0xff]  ;;  %v27_v8 = vld [vmem:[%s721_s1 + $0x50] sm:$0xff] }
  0x19   :  { %136 = vmatpush.msra.mxu1 %v54_v43  ;;  %195 = vmatpush.msra.mxu3 %v85_v45  ;;  %v21_v6 = vld [vmem:[%s721_s1 + $0x20] sm:$0xff]  ;;  %v28_v9 = vld [vmem:[%s721_s1 + $0x58] sm:$0xff]  ;;  %v26_v11 = vld [vmem:[%s721_s1 + $0x48] sm:$0xff] }
  0x1a   :  { %108 = vmatpush.msra.mxu0 %v37_v46  ;;  %167 = vmatpush.msra.mxu2 %v68_v48  ;;  %v25_v10 = vld [vmem:[%s721_s1 + $0x40] sm:$0xff]  ;;  %v31_v12 = vld [vmem:[%s721_s1 + $0x70] sm:$0xff]  ;;  %v32_v13 = vld [vmem:[%s721_s1 + $0x78] sm:$0xff] }
  0x1b   :  { %137 = vmatpush.msra.mxu1 %v53_v47  ;;  %196 = vmatpush.msra.mxu3 %v84_v49  ;;  %v29_v14 = vld [vmem:[%s721_s1 + $0x60] sm:$0xff]  ;;  %v30_v15 = vld [vmem:[%s721_s1 + $0x68] sm:$0xff] }
  0x1c   :  { %109 = vmatpush.msra.mxu0 %v36_v50  ;;  %168 = vmatpush.msra.mxu2 %v67_v52 }
  0x1d   :  { %138 = vmatpush.msra.mxu1 %v52_v51  ;;  %197 = vmatpush.msra.mxu3 %v83_v53 }
  0x1e   :  { %110 = vmatpush.msra.mxu0 %v35_v54  ;;  %169 = vmatpush.msra.mxu2 %v66_v56 }
  0x1f   :  { %139 = vmatpush.msra.mxu1 %v51_v55  ;;  %198 = vmatpush.msra.mxu3 %v82_v57 }
  0x20   :  { %111 = vmatpush.msra.mxu0 %v34_v58  ;;  %170 = vmatpush.msra.mxu2 %v65_v60 }
  0x21   :  { %140 = vmatpush.msra.mxu1 %v50_v59  ;;  %199 = vmatpush.msra.mxu3 %v81_v61 }
  0x22   :  { %171 = vmatmul.f32.vlgmr.msra.gmra.mxu2 %v19_v62  ;;  %200 = vmatmul.f32.vlgmr.msra.gmra.mxu3 %v20_v63 }
  0x23   :  { %112 = vmatpush.msra.mxu0 %v33_v0  ;;  %141 = vmatpush.msra.mxu1 %v49_v1 }
  0x24   :  { %113 = vmatmul.f32.vlgmr.msra.gmra.mxu0 %v17_v2  ;;  %142 = vmatmul.f32.vlgmr.msra.gmra.mxu1 %v18_v3 }
  0x2a   :  { %174 = vmatmul.f32.gmra.mxu2 %v23_v4  ;;  %203 = vmatmul.f32.gmra.mxu3 %v24_v5  ;;  %v386_v4 = vmov 0  }
  0x2b   :  { %375 = vset.pattern.permute.xlu2 %v386_v4  ;;  %377 = vset.pattern.permute.xlu1 %v386_v4 }
  0x2c   :  { %116 = vmatmul.f32.gmra.mxu0 %v21_v6  ;;  %145 = vmatmul.f32.gmra.mxu1 %v22_v7  ;;  %v331_v6 = vld [vmem:[%s722_s3 + $0x8] sm:$0xff] }
  0x2d   :  { %376 = vset.pattern.permute.xlu0 %v386_v4 }
  0x32   :  { %177 = vmatmul.f32.gmra.mxu2 %v27_v8  ;;  %206 = vmatmul.f32.gmra.mxu3 %v28_v9 }
  0x34   :  { %119 = vmatmul.f32.gmra.mxu0 %v25_v10  ;;  %148 = vmatmul.f32.gmra.mxu1 %v26_v11 }
  0x3a   :  { %180 = vmatmul.f32.gmra.mxu2 %v31_v12  ;;  %209 = vmatmul.f32.gmra.mxu3 %v32_v13 }
  0x3c   :  { %122 = vmatmul.f32.gmra.mxu0 %v29_v14  ;;  %151 = vmatmul.f32.gmra.mxu1 %v30_v15 }
  0xa1   :  { %v114_v16 = vpop.f32.mrf.mxu0  ;;  %v143_v17 = vpop.f32.mrf.mxu1 }
  0xa2   :  { %v144_v18 = vadd.f32 %v143_v17, %v114_v16 }
  0xa5   :  { %v172_v19 = vpop.f32.mrf.mxu2  ;;  %v201_v20 = vpop.f32.mrf.mxu3 }
  0xa6   :  { %v173_v21 = vadd.f32 %v172_v19, %v144_v18 }
  0xa8   :  { %v202_v22 = vadd.f32 %v201_v20, %v173_v21 }
  0xa9   :  { %v146_v23 = vpop.f32.mrf.mxu1  ;;  %v117_v24 = vpop.f32.mrf.mxu0 }
  0xaa   :  { %v214_v25 = vsel %vm213_vm0, %v202_v22, 0.0  ;;  %v147_v26 = vadd.f32 %v146_v23, %v117_v24 }
  0xab   :  { %215 = vadd.xlane.f32.xlu0 %v214_v25 }
  0xad   :  { %v175_v27 = vpop.f32.mrf.mxu2  ;;  %v204_v28 = vpop.f32.mrf.mxu3 }
  0xae   :  { %v176_v29 = vadd.f32 %v175_v27, %v147_v26 }
  0xb0   :  { %v205_v30 = vadd.f32 %v204_v28, %v176_v29 }
  0xb1   :  { %v149_v31 = vpop.f32.mrf.mxu1  ;;  %v120_v32 = vpop.f32.mrf.mxu0 }
  0xb2   :  { %v217_v33 = vsel %vm213_vm0, %v205_v30, 0.0  ;;  %v150_v34 = vadd.f32 %v149_v31, %v120_v32 }
  0xb3   :  { %218 = vadd.xlane.f32.xlu0 %v217_v33 }
  0xb5   :  { %v178_v35 = vpop.f32.mrf.mxu2  ;;  %v207_v36 = vpop.f32.mrf.mxu3 }
  0xb6   :  { %v179_v37 = vadd.f32 %v178_v35, %v150_v34  ;;  %v255_v34 = vld [vmem:[%s723_s2 + $0x8] sm:$0xff] }
  0xb8   :  { %v208_v38 = vadd.f32 %v207_v36, %v179_v37  ;;  %v330_v37 = vld [vmem:[%s722_s3] sm:$0xff] }
  0xb9   :  { %v152_v39 = vpop.f32.mrf.mxu1  ;;  %v123_v40 = vpop.f32.mrf.mxu0 }
  0xba   :  { %v220_v41 = vsel %vm213_vm0, %v208_v38, 0.0  ;;  %v153_v42 = vadd.f32 %v152_v39, %v123_v40 }
  0xbb   :  { %221 = vadd.xlane.f32.xlu1 %v220_v41 }
  0xbd   :  { %v181_v43 = vpop.f32.mrf.mxu2  ;;  %v210_v44 = vpop.f32.mrf.mxu3 }
  0xbe   :  { %v182_v45 = vadd.f32 %v181_v43, %v153_v42 }
  0xc0   :  { %v211_v46 = vadd.f32 %v210_v44, %v182_v45  ;;  %v256_v44 = vld [vmem:[%s723_s2 + $0x10] sm:$0xff] }
  0xc2   :  { %v223_v47 = vsel %vm213_vm0, %v211_v46, 0.0 }
  0xc3   :  { %224 = vadd.xlane.f32.xlu1 %v223_v47 }
 0x11e   :  { %v216_v48 = vpop.xlane.xlu0 %215 }
 0x11f   :  { %v226_v49 = vmul.f32 0.03125, %v216_v48 }
 0x121   :  { %v656_v50 = vsub.f32 %v202_v22, %v226_v49  ;;  %v254_v22 = vld [vmem:[%s723_s2] sm:$0xff] }
 0x123   :  { %v234_v51 = vmul.f32 %v656_v50, %v656_v50 }
 0x125   :  { %v238_v52 = vsel %vm213_vm0, %v234_v51, 0.0 }
 0x126   :  { %239 = vadd.xlane.f32.xlu2 %v238_v52  ;;  %v219_v53 = vpop.xlane.xlu0 %218  ;;  %v257_v52 = vld [vmem:[%s723_s2 + $0x18] sm:$0xff] }
 0x127   :  { %v227_v54 = vmul.f32 0.03125, %v219_v53 }
 0x129   :  { %v661_v55 = vsub.f32 %v205_v30, %v227_v54  ;;  %v333_v54 = vld [vmem:[%s722_s3 + $0x18] sm:$0xff] }
 0x12b   :  { %v235_v56 = vmul.f32 %v661_v55, %v661_v55 }
 0x12d   :  { %v241_v57 = vsel %vm213_vm0, %v235_v56, 0.0 }
 0x12e   :  { %242 = vadd.xlane.f32.xlu2 %v241_v57  ;;  %v222_v58 = vpop.xlane.xlu1 %221 }
 0x12f   :  { %v228_v59 = vmul.f32 0.03125, %v222_v58  ;;  %v332_v58 = vld [vmem:[%s722_s3 + $0x10] sm:$0xff] }
 0x131   :  { %v666_v60 = vsub.f32 %v208_v38, %v228_v59 }
 0x133   :  { %v236_v61 = vmul.f32 %v666_v60, %v666_v60 }
 0x135   :  { %v244_v62 = vsel %vm213_vm0, %v236_v61, 0.0 }
 0x136   :  { %245 = vadd.xlane.f32.xlu0 %v244_v62  ;;  %v225_v63 = vpop.xlane.xlu1 %224 }
 0x137   :  { %v229_v0 = vmul.f32 0.03125, %v225_v63 }
 0x139   :  { %v671_v1 = vsub.f32 %v211_v46, %v229_v0 }
 0x13b   :  { %v237_v2 = vmul.f32 %v671_v1, %v671_v1 }
 0x13d   :  { %v247_v3 = vsel %vm213_vm0, %v237_v2, 0.0 }
 0x13e   :  { %248 = vadd.xlane.f32.xlu1 %v247_v3 }
 0x157   :  { %341 = vperm.xlu1 %377, %v331_v6  }
 0x199   :  { %v240_v5 = vpop.xlane.xlu2 %239 }
 0x19a   :  { %v250_v7 = vmul.f32 0.03125, %v240_v5 }
 0x19c   :  { %v258_v8 = vadd.f32 1e-05, %v250_v7 }
 0x19e   :  { %378 = vrsqrt.f32 %v258_v8  ;;  %vm268_vm2 = vweird.f32 %v258_v8 }
 0x1a1   :  { %v243_v9 = vpop.xlane.xlu2 %242 }
 0x1a2   :  { %v251_v10 = vmul.f32 0.03125, %v243_v9 }
 0x1a4   :  { %v379_v11 = vpop.eup %378  ;;  %v259_v12 = vadd.f32 1e-05, %v251_v10 }
 0x1a5   :  { %v263_v13 = vmul.f32 %v379_v11, %v258_v8  ;;  %vm269_vm1 = vweird.f32 %v379_v11 }
 0x1a6   :  { %380 = vrsqrt.f32 %v259_v12  ;;  %vm270_vm3 = vmor %vm268_vm2, %vm269_vm1  ;;  %vm278_vm5 = vweird.f32 %v259_v12 }
 0x1a7   :  { %v264_v14 = vmul.f32 %v379_v11, %v263_v13 }
 0x1a9   :  { %v265_v15 = vmul.f32 0.5, %v264_v14  ;;  %v246_v16 = vpop.xlane.xlu0 %245 }
 0x1aa   :  { %v252_v17 = vmul.f32 0.03125, %v246_v16 }
 0x1ab   :  { %v266_v18 = vsub.f32 1.5, %v265_v15 }
 0x1ac   :  { %v381_v19 = vpop.eup %380  ;;  %v260_v20 = vadd.f32 1e-05, %v252_v17 }
 0x1ad   :  { %v273_v21 = vmul.f32 %v381_v19, %v259_v12  ;;  %v267_v23 = vmul.f32 %v379_v11, %v266_v18  ;;  %vm279_vm4 = vweird.f32 %v381_v19 }
 0x1ae   :  { %382 = vrsqrt.f32 %v260_v20  ;;  %vm280_vm6 = vmor %vm278_vm5, %vm279_vm4  ;;  %vm288_vm8 = vweird.f32 %v260_v20 }
 0x1af   :  { %v274_v24 = vmul.f32 %v381_v19, %v273_v21  ;;  %v271_v25 = vsel %vm270_vm3, %v379_v11, %v267_v23 }
 0x1b0   :  { %v302_v26 = vmul.f32 %v271_v25, %v254_v22 }
 0x1b1   :  { %v275_v27 = vmul.f32 0.5, %v274_v24  ;;  %v249_v28 = vpop.xlane.xlu1 %248 }
 0x1b2   :  { %v253_v29 = vmul.f32 0.03125, %v249_v28  ;;  %308 = vperm.xlu2 %375, %v302_v26  }
 0x1b3   :  { %v276_v30 = vsub.f32 1.5, %v275_v27 }
 0x1b4   :  { %v383_v31 = vpop.eup %382  ;;  %v261_v32 = vadd.f32 1e-05, %v253_v29 }
 0x1b5   :  { %v283_v33 = vmul.f32 %v383_v31, %v260_v20  ;;  %v277_v35 = vmul.f32 %v381_v19, %v276_v30  ;;  %vm289_vm7 = vweird.f32 %v383_v31 }
 0x1b6   :  { %384 = vrsqrt.f32 %v261_v32  ;;  %vm290_vm9 = vmor %vm288_vm8, %vm289_vm7  ;;  %vm298_vm11 = vweird.f32 %v261_v32 }
 0x1b7   :  { %v284_v36 = vmul.f32 %v383_v31, %v283_v33  ;;  %v281_v38 = vsel %vm280_vm6, %v381_v19, %v277_v35 }
 0x1b8   :  { %v303_v39 = vmul.f32 %v281_v38, %v255_v34 }
 0x1b9   :  { %v285_v40 = vmul.f32 0.5, %v284_v36 }
 0x1ba   :  { %336 = vperm.xlu2 %375, %v330_v37   ;;  %313 = vperm.xlu0 %376, %v303_v39  }
 0x1bb   :  { %v286_v41 = vsub.f32 1.5, %v285_v40 }
 0x1bc   :  { %v385_v42 = vpop.eup %384 }
 0x1bd   :  { %v293_v43 = vmul.f32 %v385_v42, %v261_v32  ;;  %v287_v45 = vmul.f32 %v383_v31, %v286_v41  ;;  %vm299_vm10 = vweird.f32 %v385_v42 }
 0x1be   :  { %vm300_vm12 = vmor %vm298_vm11, %vm299_vm10 }
 0x1bf   :  { %v294_v46 = vmul.f32 %v385_v42, %v293_v43  ;;  %v291_v47 = vsel %vm290_vm9, %v383_v31, %v287_v45 }
 0x1c0   :  { %v304_v48 = vmul.f32 %v291_v47, %v256_v44 }
 0x1c1   :  { %v295_v49 = vmul.f32 0.5, %v294_v46 }
 0x1c2   :  { %318 = vperm.xlu1 %377, %v304_v48  }
 0x1c3   :  { %v296_v51 = vsub.f32 1.5, %v295_v49 }
 0x1c5   :  { %v297_v53 = vmul.f32 %v385_v42, %v296_v51 }
 0x1c7   :  { %v301_v56 = vsel %vm300_vm12, %v385_v42, %v297_v53 }
 0x1c8   :  { %v305_v57 = vmul.f32 %v301_v56, %v257_v52 }
 0x1c9   :  { %v342_v3 = vpop.permute.xlu1 %341 }
 0x1ca   :  { %351 = vperm.xlu1 %377, %v333_v54   ;;  %323 = vperm.xlu2 %375, %v305_v57  }
 0x1d2   :  { %346 = vperm.xlu2 %375, %v332_v58  }
 0x20c   :  { %v309_v59 = vpop.permute.xlu2 %308 }
 0x20d   :  { %v326_v61 = vmul.f32 %v309_v59, %v656_v50 }
 0x214   :  { %v337_v62 = vpop.permute.xlu2 %336 }
 0x215   :  { %v354_v63 = vadd.f32 %v337_v62, %v326_v61 }
 0x217   :  { %v358_v0 = vmul.f32 0.2, %v354_v63 }
 0x219   :  { %v362_v2 = vmax.f32 %v354_v63, %v358_v0 }
 0x21b   :  { %366 = vst.msk [vmem:[%s724_s4] sm:$0xff] %vm213_vm0, %v362_v2 }
 0x224   :  { %v324_v4 = vpop.permute.xlu2 %323 }
 0x225   :  { %v329_v14 = vmul.f32 %v324_v4, %v671_v1 }
 0x22c   :  { %v314_v5 = vpop.permute.xlu0 %313  ;;  %v347_v11 = vpop.permute.xlu2 %346 }
 0x22d   :  { %v327_v6 = vmul.f32 %v314_v5, %v661_v55 }
 0x22f   :  { %v355_v7 = vadd.f32 %v342_v3, %v327_v6 }
 0x231   :  { %v359_v8 = vmul.f32 0.2, %v355_v7 }
 0x233   :  { %v363_v9 = vmax.f32 %v355_v7, %v359_v8 }
 0x234   :  { %v319_v10 = vpop.permute.xlu1 %318 }
 0x235   :  { %367 = vst.msk [vmem:[%s724_s4 + $0x8] sm:$0xff] %vm213_vm0, %v363_v9  ;;  %v328_v50 = vmul.f32 %v319_v10, %v666_v60 }
 0x237   :  { %v356_v12 = vadd.f32 %v347_v11, %v328_v50 }
 0x239   :  { %v360_v13 = vmul.f32 0.2, %v356_v12 }
 0x23b   :  { %v364_v15 = vmax.f32 %v356_v12, %v360_v13 }
 0x23c   :  { %v352_v16 = vpop.permute.xlu1 %351 }
 0x23d   :  { %368 = vst.msk [vmem:[%s724_s4 + $0x10] sm:$0xff] %vm213_vm0, %v364_v15  ;;  %v357_v55 = vadd.f32 %v352_v16, %v329_v14 }
 0x23f   :  { %v361_v17 = vmul.f32 0.2, %v357_v55 }
 0x241   :  { %v365_v18 = vmax.f32 %v357_v55, %v361_v17 }
 0x243   :  { %369 = vst.msk [vmem:[%s724_s4 + $0x18] sm:$0xff] %vm213_vm0, %v365_v18 }

// kernel: encoder_forward.11
= control target key start
LH: loop header
LB: loop body
LE: loop exit
PB: predicated region body
PF: predicated region fallthrough
CT: control target
= control target key end

     0   :  { %vm173_vm0 = vcmask 517120   ;;  %s401_s1 = inlined_call_operand.vmem [shape: f32[512,64], index: 1, kind: input, shape index: {}]   ;;  %s402_s0 = inlined_call_operand.vmem [shape: f32[2,512], index: 0, kind: input, shape index: {}]   ;;  %s403_s2 = inlined_call_operand.vmem [shape: f32[1,64], index: 2, kind: input, shape index: {}]   ;;  %s404_s3 = inlined_call_operand.vmem [shape: f32[2,64], index: 3, kind: output, shape index: {}]  }
   0x1   :  { %v62_v0 = vld [vmem:[%s401_s1 + $0x178] sm:$0xff]  ;;  %v61_v2 = vld [vmem:[%s401_s1 + $0x170] sm:$0xff]  ;;  %v60_v6 = vld [vmem:[%s401_s1 + $0x168] sm:$0xff] }
   0x2   :  { %v30_v1 = vld [vmem:[%s401_s1 + $0x78] sm:$0xff]  ;;  %133 = vmatpush.msra.mxu2 %v62_v0  ;;  %v29_v4 = vld [vmem:[%s401_s1 + $0x70] sm:$0xff]  ;;  %v28_v8 = vld [vmem:[%s401_s1 + $0x68] sm:$0xff] }
   0x3   :  { %93 = vmatpush.msra.mxu0 %v30_v1  ;;  %v78_v3 = vld [vmem:[%s401_s1 + $0x1f8] sm:$0xff]  ;;  %v77_v7 = vld [vmem:[%s401_s1 + $0x1f0] sm:$0xff]  ;;  %v76_v10 = vld [vmem:[%s401_s1 + $0x1e8] sm:$0xff] }
   0x4   :  { %v46_v5 = vld [vmem:[%s401_s1 + $0xf8] sm:$0xff]  ;;  %153 = vmatpush.msra.mxu3 %v78_v3  ;;  %134 = vmatpush.msra.mxu2 %v61_v2  ;;  %v45_v9 = vld [vmem:[%s401_s1 + $0xf0] sm:$0xff]  ;;  %v59_v11 = vld [vmem:[%s401_s1 + $0x160] sm:$0xff] }
   0x5   :  { %113 = vmatpush.msra.mxu1 %v46_v5  ;;  %94 = vmatpush.msra.mxu0 %v29_v4  ;;  %v27_v12 = vld [vmem:[%s401_s1 + $0x60] sm:$0xff]  ;;  %v44_v13 = vld [vmem:[%s401_s1 + $0xe8] sm:$0xff]  ;;  %v58_v16 = vld [vmem:[%s401_s1 + $0x158] sm:$0xff] }
   0x6   :  { %154 = vmatpush.msra.mxu3 %v77_v7  ;;  %135 = vmatpush.msra.mxu2 %v60_v6  ;;  %v75_v14 = vld [vmem:[%s401_s1 + $0x1e0] sm:$0xff]  ;;  %v26_v17 = vld [vmem:[%s401_s1 + $0x58] sm:$0xff]  ;;  %v57_v20 = vld [vmem:[%s401_s1 + $0x150] sm:$0xff] }
   0x7   :  { %114 = vmatpush.msra.mxu1 %v45_v9  ;;  %95 = vmatpush.msra.mxu0 %v28_v8  ;;  %v43_v15 = vld [vmem:[%s401_s1 + $0xe0] sm:$0xff]  ;;  %v74_v18 = vld [vmem:[%s401_s1 + $0x1d8] sm:$0xff]  ;;  %v25_v21 = vld [vmem:[%s401_s1 + $0x50] sm:$0xff] }
   0x8   :  { %155 = vmatpush.msra.mxu3 %v76_v10  ;;  %136 = vmatpush.msra.mxu2 %v59_v11  ;;  %v42_v19 = vld [vmem:[%s401_s1 + $0xd8] sm:$0xff]  ;;  %v73_v22 = vld [vmem:[%s401_s1 + $0x1d0] sm:$0xff]  ;;  %v56_v24 = vld [vmem:[%s401_s1 + $0x148] sm:$0xff] }
   0x9   :  { %115 = vmatpush.msra.mxu1 %v44_v13  ;;  %96 = vmatpush.msra.mxu0 %v27_v12  ;;  %v41_v23 = vld [vmem:[%s401_s1 + $0xd0] sm:$0xff]  ;;  %v24_v25 = vld [vmem:[%s401_s1 + $0x48] sm:$0xff]  ;;  %v55_v28 = vld [vmem:[%s401_s1 + $0x140] sm:$0xff] }
   0xa   :  { %156 = vmatpush.msra.mxu3 %v75_v14  ;;  %137 = vmatpush.msra.mxu2 %v58_v16  ;;  %v72_v26 = vld [vmem:[%s401_s1 + $0x1c8] sm:$0xff]  ;;  %v23_v29 = vld [vmem:[%s401_s1 + $0x40] sm:$0xff]  ;;  %v54_v32 = vld [vmem:[%s401_s1 + $0x138] sm:$0xff] }
   0xb   :  { %116 = vmatpush.msra.mxu1 %v43_v15  ;;  %97 = vmatpush.msra.mxu0 %v26_v17  ;;  %v40_v27 = vld [vmem:[%s401_s1 + $0xc8] sm:$0xff]  ;;  %v71_v30 = vld [vmem:[%s401_s1 + $0x1c0] sm:$0xff]  ;;  %v22_v33 = vld [vmem:[%s401_s1 + $0x38] sm:$0xff] }
   0xc   :  { %157 = vmatpush.msra.mxu3 %v74_v18  ;;  %138 = vmatpush.msra.mxu2 %v57_v20  ;;  %v39_v31 = vld [vmem:[%s401_s1 + $0xc0] sm:$0xff]  ;;  %v70_v34 = vld [vmem:[%s401_s1 + $0x1b8] sm:$0xff]  ;;  %v53_v36 = vld [vmem:[%s401_s1 + $0x130] sm:$0xff] }
   0xd   :  { %117 = vmatpush.msra.mxu1 %v42_v19  ;;  %98 = vmatpush.msra.mxu0 %v25_v21  ;;  %v38_v35 = vld [vmem:[%s401_s1 + $0xb8] sm:$0xff]  ;;  %v21_v37 = vld [vmem:[%s401_s1 + $0x30] sm:$0xff]  ;;  %v52_v40 = vld [vmem:[%s401_s1 + $0x128] sm:$0xff] }
   0xe   :  { %158 = vmatpush.msra.mxu3 %v73_v22  ;;  %139 = vmatpush.msra.mxu2 %v56_v24  ;;  %v69_v38 = vld [vmem:[%s401_s1 + $0x1b0] sm:$0xff]  ;;  %v20_v41 = vld [vmem:[%s401_s1 + $0x28] sm:$0xff]  ;;  %v51_v44 = vld [vmem:[%s401_s1 + $0x120] sm:$0xff] }
   0xf   :  { %118 = vmatpush.msra.mxu1 %v41_v23  ;;  %99 = vmatpush.msra.mxu0 %v24_v25  ;;  %v37_v39 = vld [vmem:[%s401_s1 + $0xb0] sm:$0xff]  ;;  %v68_v42 = vld [vmem:[%s401_s1 + $0x1a8] sm:$0xff]  ;;  %v19_v45 = vld [vmem:[%s401_s1 + $0x20] sm:$0xff] }
  0x10   :  { %159 = vmatpush.msra.mxu3 %v72_v26  ;;  %140 = vmatpush.msra.mxu2 %v55_v28  ;;  %v36_v43 = vld [vmem:[%s401_s1 + $0xa8] sm:$0xff]  ;;  %v14_v46 = vld [vmem:[%s402_s0] sm:$0xff]  ;;  %v50_v49 = vld [vmem:[%s401_s1 + $0x118] sm:$0xff] }
  0x11   :  { %119 = vmatpush.msra.mxu1 %v40_v27  ;;  %100 = vmatpush.msra.mxu0 %v23_v29  ;;  %v67_v47 = vld [vmem:[%s401_s1 + $0x1a0] sm:$0xff]  ;;  %84 = vst [vmem:[#allocation1] ss:$4 sm:$0xff] %v14_v46  ;;  %v18_v50 = vld [vmem:[%s401_s1 + $0x18] sm:$0xff]  ;;  %v49_v53 = vld [vmem:[%s401_s1 + $0x110] sm:$0xff] }
  0x12   :  { %160 = vmatpush.msra.mxu3 %v71_v30  ;;  %141 = vmatpush.msra.mxu2 %v54_v32  ;;  %v35_v48 = vld [vmem:[%s401_s1 + $0xa0] sm:$0xff]  ;;  %v66_v51 = vld [vmem:[%s401_s1 + $0x198] sm:$0xff]  ;;  %v17_v54 = vld [vmem:[%s401_s1 + $0x10] sm:$0xff] }
  0x13   :  { %120 = vmatpush.msra.mxu1 %v39_v31  ;;  %101 = vmatpush.msra.mxu0 %v22_v33  ;;  %v34_v52 = vld [vmem:[%s401_s1 + $0x98] sm:$0xff]  ;;  %v65_v55 = vld [vmem:[%s401_s1 + $0x190] sm:$0xff]  ;;  %v48_v57 = vld [vmem:[%s401_s1 + $0x108] sm:$0xff] }
  0x14   :  { %161 = vmatpush.msra.mxu3 %v70_v34  ;;  %142 = vmatpush.msra.mxu2 %v53_v36  ;;  %v33_v56 = vld [vmem:[%s401_s1 + $0x90] sm:$0xff]  ;;  %v16_v58 = vld [vmem:[%s401_s1 + $0x8] sm:$0xff]  ;;  %v47_v61 = vld [vmem:[%s401_s1 + $0x100] sm:$0xff] }
  0x15   :  { %121 = vmatpush.msra.mxu1 %v38_v35  ;;  %102 = vmatpush.msra.mxu0 %v21_v37  ;;  %v64_v59 = vld [vmem:[%s401_s1 + $0x188] sm:$0xff]  ;;  %v15_v62 = vld [vmem:[%s401_s1] sm:$0xff] }
  0x16   :  { %162 = vmatpush.msra.mxu3 %v69_v38  ;;  %143 = vmatpush.msra.mxu2 %v52_v40  ;;  %v32_v60 = vld [vmem:[%s401_s1 + $0x88] sm:$0xff]  ;;  %v63_v0 = vld [vmem:[%s401_s1 + $0x180] sm:$0xff] }
  0x17   :  { %122 = vmatpush.msra.mxu1 %v37_v39  ;;  %103 = vmatpush.msra.mxu0 %v20_v41  ;;  %v31_v3 = vld [vmem:[%s401_s1 + $0x80] sm:$0xff] }
  0x18   :  { %163 = vmatpush.msra.mxu3 %v68_v42  ;;  %144 = vmatpush.msra.mxu2 %v51_v44  ;;  %v87_v63 = vld.sshfl [vmem:[#allocation1 + $0x10] sm:$0xff pattern:$0x73625140]  ;;  %v85_v1 = vld.sshfl [vmem:[#allocation1] sm:$0xff pattern:$0x73625140] }
  0x19   :  { %123 = vmatpush.msra.mxu1 %v36_v43  ;;  %104 = vmatpush.msra.mxu0 %v19_v45  ;;  %v88_v2 = vld.sshfl [vmem:[#allocation1 + $0x18] sm:$0xff pattern:$0x73625140]  ;;  %v86_v4 = vld.sshfl [vmem:[#allocation1 + $0x8] sm:$0xff pattern:$0x73625140] }
  0x1a   :  { %164 = vmatpush.msra.mxu3 %v67_v47  ;;  %145 = vmatpush.msra.mxu2 %v50_v49  ;;  %v179_v5 = vld [vmem:[%s403_s2] ss:$0 sm:$0xff] }
  0x1b   :  { %124 = vmatpush.msra.mxu1 %v35_v48  ;;  %105 = vmatpush.msra.mxu0 %v18_v50 }
  0x1c   :  { %165 = vmatpush.msra.mxu3 %v66_v51  ;;  %146 = vmatpush.msra.mxu2 %v49_v53 }
  0x1d   :  { %125 = vmatpush.msra.mxu1 %v34_v52  ;;  %106 = vmatpush.msra.mxu0 %v17_v54 }
  0x1e   :  { %166 = vmatpush.msra.mxu3 %v65_v55  ;;  %147 = vmatpush.msra.mxu2 %v48_v57 }
  0x1f   :  { %126 = vmatpush.msra.mxu1 %v33_v56  ;;  %107 = vmatpush.msra.mxu0 %v16_v58 }
  0x20   :  { %167 = vmatpush.msra.mxu3 %v64_v59  ;;  %148 = vmatpush.msra.mxu2 %v47_v61 }
  0x21   :  { %127 = vmatpush.msra.mxu1 %v32_v60  ;;  %108 = vmatpush.msra.mxu0 %v15_v62 }
  0x22   :  { %149 = vmatmul.f32.vlgmr.msra.gmra.mxu2 %v87_v63  ;;  %168 = vmatpush.msra.mxu3 %v63_v0 }
  0x23   :  { %109 = vmatmul.f32.vlgmr.msra.gmra.mxu0 %v85_v1  ;;  %169 = vmatmul.f32.vlgmr.msra.gmra.mxu3 %v88_v2 }
  0x24   :  { %128 = vmatpush.msra.mxu1 %v31_v3 }
  0x25   :  { %129 = vmatmul.f32.vlgmr.msra.gmra.mxu1 %v86_v4 }
  0xa0   :  { %v110_v6 = vpop.f32.mrf.mxu0 }
  0xa1   :  { %v111_v7 = vadd.f32 %v179_v5, %v110_v6 }
  0xa2   :  { %v130_v8 = vpop.f32.mrf.mxu1 }
  0xa3   :  { %v131_v9 = vadd.f32 %v130_v8, %v111_v7 }
  0xa5   :  { %v150_v10 = vpop.f32.mrf.mxu2 }
  0xa6   :  { %v151_v11 = vadd.f32 %v150_v10, %v131_v9  ;;  %v170_v12 = vpop.f32.mrf.mxu3 }
  0xa8   :  { %v171_v13 = vadd.f32 %v170_v12, %v151_v11 }
  0xaa   :  { %174 = vst.msk [vmem:[%s404_s3] sm:$0x3] %vm173_vm0, %v171_v13 }

</bundles_post_ra>
